<compile_context>
chip_gen: v6e
topology: v6e:2x2x1
jax: 0.10.0
libtpu: 0.0.40
codegen_flags: <defaults>
</compile_context>

<pallas_src>
import functools

import jax
import jax.numpy as jnp
from jax.experimental import pallas as pl
from jax.experimental.pallas import tpu as pltpu

_EPS = 1e-5                    # BatchNorm2d default eps
_MXU_DTYPE = jnp.float32       # set to jnp.bfloat16 on v6e/v7x for more MXU TF/s


# ---------------------------------------------------------------------------
# Kernel 1: 3x3 conv (BN folded into weight/bias) + ReLU.  NHWC, one batch/step.
# ---------------------------------------------------------------------------
def _conv3x3_bn_relu_kernel(xp_ref, w_ref, b_ref, o_ref, *, H, W):
    cin = xp_ref.shape[-1]
    cout = o_ref.shape[-1]
    xp = xp_ref[0].astype(_MXU_DTYPE)                       # (H+2, W+2, Cin)
    acc = jnp.zeros((H * W, cout), jnp.float32)
    for t in range(9):                                      # statically unrolled taps
        kh, kw = divmod(t, 3)
        xs = xp[kh:kh + H, kw:kw + W, :].reshape(H * W, cin)
        acc = acc + jnp.dot(xs, w_ref[t].astype(_MXU_DTYPE),
                            preferred_element_type=jnp.float32)
    y = jnp.maximum(acc + b_ref[...], 0.0)                  # folded-BN bias + ReLU
    o_ref[0] = y.reshape(H, W, cout)


# ---------------------------------------------------------------------------
# Kernel 2: 3x3 conv + BN + ReLU with the module's trailing 1x1 conv fused in.
# ---------------------------------------------------------------------------
def _conv3x3_bn_relu_proj_kernel(xp_ref, w_ref, b_ref, pw_ref, pb_ref, o_ref,
                                 *, H, W):
    cin = xp_ref.shape[-1]
    cmid = w_ref.shape[-1]
    cout = o_ref.shape[-1]
    xp = xp_ref[0].astype(_MXU_DTYPE)                       # (H+2, W+2, Cin)
    acc = jnp.zeros((H * W, cmid), jnp.float32)
    for t in range(9):
        kh, kw = divmod(t, 3)
        xs = xp[kh:kh + H, kw:kw + W, :].reshape(H * W, cin)
        acc = acc + jnp.dot(xs, w_ref[t].astype(_MXU_DTYPE),
                            preferred_element_type=jnp.float32)
    y = jnp.maximum(acc + b_ref[...], 0.0)                  # (H*W, Cmid)
    y = jnp.dot(y.astype(_MXU_DTYPE), pw_ref[...].astype(_MXU_DTYPE),
                preferred_element_type=jnp.float32) + pb_ref[...]
    o_ref[0] = y.reshape(H, W, cout)


# ---------------------------------------------------------------------------
# Kernel 3: query-projection head.  The PyTorch nq-loop of grouped convs is
# collapsed (by linearity) into one per-batch 3x3 filter + bias; the kernel does
# the dynamic per-batch conv with 9 VPU FMAs and a single lane reduction.
# ---------------------------------------------------------------------------
def _proj_head_kernel(xp_ref, w_ref, b_ref, o_ref, *, H, W):
    c = xp_ref.shape[-1]
    xp = xp_ref[0]                                          # (H+2, W+2, C)
    w = w_ref[0]                                            # (9, C)
    acc = jnp.zeros((H, W, c), jnp.float32)
    for t in range(9):
        kh, kw = divmod(t, 3)
        acc = acc + xp[kh:kh + H, kw:kw + W, :] * w[t:t + 1, :]
    o_ref[0] = jnp.sum(acc, axis=-1) + b_ref[0]             # (H, W) + (1, 1)


# ---------------------------------------------------------------------------
# pallas_call wrappers
# ---------------------------------------------------------------------------
def _conv3x3_bn_relu(x_nhwc, w_taps, bias):
    B, H, W, cin = x_nhwc.shape
    cout = w_taps.shape[-1]
    xp = jnp.pad(x_nhwc, ((0, 0), (1, 1), (1, 1), (0, 0)))
    return pl.pallas_call(
        functools.partial(_conv3x3_bn_relu_kernel, H=H, W=W),
        out_shape=jax.ShapeDtypeStruct((B, H, W, cout), jnp.float32),
        grid_spec=pltpu.PrefetchScalarGridSpec(
            num_scalar_prefetch=0,
            grid=(B,),
            in_specs=[
                pl.BlockSpec((1, H + 2, W + 2, cin), lambda b: (b, 0, 0, 0)),
                pl.BlockSpec((9, cin, cout), lambda b: (0, 0, 0)),
                pl.BlockSpec((1, cout), lambda b: (0, 0)),
            ],
            out_specs=pl.BlockSpec((1, H, W, cout), lambda b: (b, 0, 0, 0)),
        ),
        compiler_params=pltpu.CompilerParams(dimension_semantics=("parallel",)),
    )(xp, w_taps, bias)


def _conv3x3_bn_relu_proj(x_nhwc, w_taps, bias, pw, pb):
    B, H, W, cin = x_nhwc.shape
    cmid = w_taps.shape[-1]
    cout = pw.shape[-1]
    xp = jnp.pad(x_nhwc, ((0, 0), (1, 1), (1, 1), (0, 0)))
    return pl.pallas_call(
        functools.partial(_conv3x3_bn_relu_proj_kernel, H=H, W=W),
        out_shape=jax.ShapeDtypeStruct((B, H, W, cout), jnp.float32),
        grid_spec=pltpu.PrefetchScalarGridSpec(
            num_scalar_prefetch=0,
            grid=(B,),
            in_specs=[
                pl.BlockSpec((1, H + 2, W + 2, cin), lambda b: (b, 0, 0, 0)),
                pl.BlockSpec((9, cin, cmid), lambda b: (0, 0, 0)),
                pl.BlockSpec((1, cmid), lambda b: (0, 0)),
                pl.BlockSpec((cmid, cout), lambda b: (0, 0)),
                pl.BlockSpec((1, cout), lambda b: (0, 0)),
            ],
            out_specs=pl.BlockSpec((1, H, W, cout), lambda b: (b, 0, 0, 0)),
        ),
        compiler_params=pltpu.CompilerParams(dimension_semantics=("parallel",)),
    )(xp, w_taps, bias, pw, pb)


def _projector_head(feat_nhwc, weff, beff):
    B, H, W, c = feat_nhwc.shape
    xp = jnp.pad(feat_nhwc, ((0, 0), (1, 1), (1, 1), (0, 0)))
    return pl.pallas_call(
        functools.partial(_proj_head_kernel, H=H, W=W),
        out_shape=jax.ShapeDtypeStruct((B, H, W), jnp.float32),
        grid_spec=pltpu.PrefetchScalarGridSpec(
            num_scalar_prefetch=0,
            grid=(B,),
            in_specs=[
                pl.BlockSpec((1, H + 2, W + 2, c), lambda b: (b, 0, 0, 0)),
                pl.BlockSpec((1, 9, c), lambda b: (b, 0, 0)),
                pl.BlockSpec((1, 1, 1), lambda b: (b, 0, 0)),
            ],
            out_specs=pl.BlockSpec((1, H, W), lambda b: (b, 0, 0)),
        ),
        compiler_params=pltpu.CompilerParams(dimension_semantics=("parallel",)),
    )(xp, weff, beff)


# ---------------------------------------------------------------------------
# Host-side constant folding + full forward
# ---------------------------------------------------------------------------
def _fold_conv_bn(w_oihw, gamma, beta, mean, var):
    """Fold eval-mode BatchNorm into a (9, Cin, Cout) tap-major weight + bias."""
    scale = gamma / jnp.sqrt(var + _EPS)                    # (Cout,)
    wf = w_oihw * scale[:, None, None, None]                # (Cout, Cin, 3, 3)
    bias = beta - mean * scale                              # (Cout,)
    cout, cin = w_oihw.shape[0], w_oihw.shape[1]
    w_taps = jnp.transpose(wf, (2, 3, 1, 0)).reshape(9, cin, cout)
    return w_taps, bias[None, :]


def projector_forward(x, word, score, params):
    """x: (B, 2*in_dim, Hin, Win)  NCHW
       word: (nq, B, word_dim)
       score: (nq, B, 1)
       returns (B, 1, 4*Hin, 4*Win)   -- matches Projector.forward."""
    (w1, g1, be1, m1, v1,
     w2, g2, be2, m2, v2,
     w3, b3, wt, bt) = params
    B, c2, hin, win = x.shape
    c = w2.shape[0]                          # in_dim
    nq = word.shape[0]

    # NCHW -> NHWC once; channels live on the lane axis for every kernel below.
    h = jnp.transpose(x, (0, 2, 3, 1)).astype(jnp.float32)

    # TODO(synk): bilinear 2x upsample (nn.Upsample, align_corners=False) runs
    # as jax.image.resize in XLA, not as a Pallas kernel.
    h = jax.image.resize(h, (B, 2 * hin, 2 * win, c2), method="bilinear")
    w1_taps, b1f = _fold_conv_bn(w1, g1, be1, m1, v1)
    h = _conv3x3_bn_relu(h, w1_taps, b1f)                   # (B, 2Hin, 2Win, 2C)

    h = jax.image.resize(h, (B, 4 * hin, 4 * win, c2), method="bilinear")
    w2_taps, b2f = _fold_conv_bn(w2, g2, be2, m2, v2)
    pw = jnp.transpose(w3[:, :, 0, 0], (1, 0))              # (C, C) 1x1 conv
    pb = b3[None, :]
    feat = _conv3x3_bn_relu_proj(h, w2_taps, b2f, pw, pb)   # (B, H, W, C)

    # txt Linear + collapse of the per-query loop (linearity of convolution):
    #   sum_i score_i * (x * W_i + b_i)  ==  x * (sum_i score_i W_i) + sum_i score_i b_i
    wf = jnp.einsum("nbd,od->nbo", word, wt) + bt           # (nq, B, 9*C+1)
    w_dyn = wf[..., :-1].reshape(nq, B, c, 3, 3)
    b_dyn = wf[..., -1]                                     # (nq, B)
    s = score[:, :, 0]                                      # (nq, B)
    weff = jnp.einsum("nb,nbcij->bcij", s, w_dyn)           # (B, C, 3, 3)
    beff = jnp.einsum("nb,nb->b", s, b_dyn)                 # (B,)
    weff_t = jnp.transpose(weff, (0, 2, 3, 1)).reshape(B, 9, c)   # tap-major

    out_hw = _projector_head(feat, weff_t, beff.reshape(B, 1, 1))  # (B, H, W)
    return out_hw[:, None, :, :]                            # (B, 1, H, W)


# ---------------------------------------------------------------------------
# Pure-JAX reference mirroring the PyTorch forward (literal per-query loop).
# TODO(synk): BatchNorm2d is evaluated with running statistics (inference
# semantics) in both paths; PyTorch training-mode batch stats are not modeled.
# ---------------------------------------------------------------------------
def _reference(x, word, score, params):
    (w1, g1, be1, m1, v1, w2, g2, be2, m2, v2, w3, b3, wt, bt) = params

    def bn(h, g, be, m, v):
        return ((h - m[None, :, None, None]) /
                jnp.sqrt(v + _EPS)[None, :, None, None]) * g[None, :, None, None] \
               + be[None, :, None, None]

    def conv(h, w):
        return jax.lax.conv_general_dilated(
            h, w, (1, 1), "SAME", dimension_numbers=("NCHW", "OIHW", "NCHW"))

    B, c2, hin, win = x.shape
    h = jax.image.resize(x.astype(jnp.float32), (B, c2, 2 * hin, 2 * win),
                         method="bilinear")
    h = jax.nn.relu(bn(conv(h, w1), g1, be1, m1, v1))
    h = jax.image.resize(h, (B, c2, 4 * hin, 4 * win), method="bilinear")
    h = jax.nn.relu(bn(conv(h, w2), g2, be2, m2, v2))
    h = conv(h, w3) + b3[None, :, None, None]               # 1x1 conv

    B, C, H, W = h.shape
    nq = word.shape[0]
    wf = jnp.einsum("nbd,od->nbo", word, wt) + bt
    hp = jnp.pad(h, ((0, 0), (0, 0), (1, 1), (1, 1)))
    out = jnp.zeros((B, 1, H, W), jnp.float32)
    for i in range(nq):                                     # literal module loop
        wi = wf[i, :, :-1].reshape(B, C, 3, 3)
        bi = wf[i, :, -1]
        each = jnp.zeros((B, H, W), jnp.float32)
        for kh in range(3):
            for kw in range(3):
                each = each + jnp.einsum("bchw,bc->bhw",
                                         hp[:, :, kh:kh + H, kw:kw + W],
                                         wi[:, :, kh, kw])
        each = each + bi[:, None, None]
        out = out + (each * score[i, :, 0][:, None, None])[:, None, :, :]
    return out


if __name__ == "__main__":
    # Small shapes consistent with the module (in_dim 256 -> 16, word_dim 512 -> 32,
    # 26x26 -> 4x4, query_number 12 -> 4; kernel_size fixed at 3).
    B, in_dim, word_dim, nq = 2, 16, 32, 4
    Hin = Win = 4
    C2, C = 2 * in_dim, in_dim
    out_dim = C * 9 + 1

    key = jax.random.PRNGKey(0)
    ks = jax.random.split(key, 18)
    n = lambda k, shape, s=1.0: s * jax.random.normal(k, shape, jnp.float32)

    params = (
        n(ks[0], (C2, C2, 3, 3), (C2 * 9) ** -0.5),                  # conv1 W
        1.0 + 0.1 * n(ks[1], (C2,)), 0.1 * n(ks[2], (C2,)),          # bn1 gamma, beta
        0.1 * n(ks[3], (C2,)),                                       # bn1 mean
        jax.random.uniform(ks[4], (C2,), jnp.float32, 0.5, 1.5),     # bn1 var
        n(ks[5], (C, C2, 3, 3), (C2 * 9) ** -0.5),                   # conv2 W
        1.0 + 0.1 * n(ks[6], (C,)), 0.1 * n(ks[7], (C,)),            # bn2 gamma, beta
        0.1 * n(ks[8], (C,)),                                        # bn2 mean
        jax.random.uniform(ks[9], (C,), jnp.float32, 0.5, 1.5),      # bn2 var
        n(ks[10], (C, C, 1, 1), C ** -0.5),                          # conv 1x1 W
        0.1 * n(ks[11], (C,)),                                       # conv 1x1 b
        n(ks[12], (out_dim, word_dim), word_dim ** -0.5),            # txt W
        0.1 * n(ks[13], (out_dim,)),                                 # txt b
    )

    x = n(ks[14], (B, C2, Hin, Win))
    word = n(ks[15], (nq, B, word_dim))
    score = jax.random.uniform(ks[16], (nq, B, 1), jnp.float32)

    out = jax.jit(projector_forward)(x, word, score, params)
    out = jax.block_until_ready(out)

    ref = _reference(x, word, score, params)
    assert out.shape == (B, 1, 4 * Hin, 4 * Win), out.shape
    assert jnp.allclose(out, ref, atol=3e-3, rtol=3e-3), \
        f"max abs err {jnp.max(jnp.abs(out - ref))}"

    print("KERNEL_OK")
</pallas_src>

<mosaic_0001>
module attributes {stable_mosaic.version = 11 : i64} {
  func.func @_conv3x3_bn_relu_kernel(%arg0: i32, %arg1: memref<1x10x10x32xf32, #tpu.memory_space<vmem>>, %arg2: memref<9x32x32xf32, #tpu.memory_space<vmem>>, %arg3: memref<1x32xf32, #tpu.memory_space<vmem>>, %arg4: memref<1x8x8x32xf32, #tpu.memory_space<vmem>>) attributes {dimension_semantics = [#tpu.dimension_semantics<parallel>], iteration_bounds = array<i64: 2>, scalar_prefetch = 0 : i64, scratch_operands = 0 : i64, tpu.core_type = #tpu.core_type<tc>, window_params = [{transform_indices = @transform_0, window_bounds = array<i64: 1, 10, 10, 32>}, {pipeline_mode = #tpu.pipeline_mode<synchronous>, transform_indices = @transform_1, window_bounds = array<i64: 9, 32, 32>}, {pipeline_mode = #tpu.pipeline_mode<synchronous>, transform_indices = @transform_2, window_bounds = array<i64: 1, 32>}, {transform_indices = @transform_3, window_bounds = array<i64: 1, 8, 8, 32>}]} {
    %c0 = arith.constant 0 : index
    %c0_0 = arith.constant 0 : index
    %c0_1 = arith.constant 0 : index
    %c0_2 = arith.constant 0 : index
    %0 = vector.load %arg1[%c0, %c0_0, %c0_1, %c0_2] : memref<1x10x10x32xf32, #tpu.memory_space<vmem>>, vector<1x10x10x32xf32>
    %1 = vector.shape_cast %0 : vector<1x10x10x32xf32> to vector<10x10x32xf32>
    %cst = arith.constant 0.000000e+00 : f32
    %2 = vector.broadcast %cst : f32 to vector<64x32xf32>
    %3 = vector.extract_strided_slice %1 {offsets = [0, 0, 0], sizes = [8, 8, 32], strides = [1, 1, 1]} : vector<10x10x32xf32> to vector<8x8x32xf32>
    %4 = vector.shape_cast %3 : vector<8x8x32xf32> to vector<64x32xf32>
    %c0_3 = arith.constant 0 : index
    %c0_4 = arith.constant 0 : index
    %c0_5 = arith.constant 0 : index
    %5 = vector.load %arg2[%c0_3, %c0_4, %c0_5] : memref<9x32x32xf32, #tpu.memory_space<vmem>>, vector<1x32x32xf32>
    %6 = vector.shape_cast %5 : vector<1x32x32xf32> to vector<32x32xf32>
    %cst_6 = arith.constant dense<0.000000e+00> : vector<64x32xf32>
    %7 = tpu.matmul %4, %6, %cst_6 {dimension_numbers = #tpu.dot_dimension_numbers<[1], [0], [0], [1], [0, 0, 1, 1], [], []>} : vector<64x32xf32>, vector<32x32xf32>, vector<64x32xf32> -> vector<64x32xf32>
    %8 = arith.addf %2, %7 : vector<64x32xf32>
    %9 = vector.extract_strided_slice %1 {offsets = [0, 1, 0], sizes = [8, 8, 32], strides = [1, 1, 1]} : vector<10x10x32xf32> to vector<8x8x32xf32>
    %10 = vector.shape_cast %9 : vector<8x8x32xf32> to vector<64x32xf32>
    %c1 = arith.constant 1 : index
    %c0_7 = arith.constant 0 : index
    %c0_8 = arith.constant 0 : index
    %11 = vector.load %arg2[%c1, %c0_7, %c0_8] : memref<9x32x32xf32, #tpu.memory_space<vmem>>, vector<1x32x32xf32>
    %12 = vector.shape_cast %11 : vector<1x32x32xf32> to vector<32x32xf32>
    %cst_9 = arith.constant dense<0.000000e+00> : vector<64x32xf32>
    %13 = tpu.matmul %10, %12, %cst_9 {dimension_numbers = #tpu.dot_dimension_numbers<[1], [0], [0], [1], [0, 0, 1, 1], [], []>} : vector<64x32xf32>, vector<32x32xf32>, vector<64x32xf32> -> vector<64x32xf32>
    %14 = arith.addf %8, %13 : vector<64x32xf32>
    %15 = vector.extract_strided_slice %1 {offsets = [0, 2, 0], sizes = [8, 8, 32], strides = [1, 1, 1]} : vector<10x10x32xf32> to vector<8x8x32xf32>
    %16 = vector.shape_cast %15 : vector<8x8x32xf32> to vector<64x32xf32>
    %c2 = arith.constant 2 : index
    %c0_10 = arith.constant 0 : index
    %c0_11 = arith.constant 0 : index
    %17 = vector.load %arg2[%c2, %c0_10, %c0_11] : memref<9x32x32xf32, #tpu.memory_space<vmem>>, vector<1x32x32xf32>
    %18 = vector.shape_cast %17 : vector<1x32x32xf32> to vector<32x32xf32>
    %cst_12 = arith.constant dense<0.000000e+00> : vector<64x32xf32>
    %19 = tpu.matmul %16, %18, %cst_12 {dimension_numbers = #tpu.dot_dimension_numbers<[1], [0], [0], [1], [0, 0, 1, 1], [], []>} : vector<64x32xf32>, vector<32x32xf32>, vector<64x32xf32> -> vector<64x32xf32>
    %20 = arith.addf %14, %19 : vector<64x32xf32>
    %21 = vector.extract_strided_slice %1 {offsets = [1, 0, 0], sizes = [8, 8, 32], strides = [1, 1, 1]} : vector<10x10x32xf32> to vector<8x8x32xf32>
    %22 = vector.shape_cast %21 : vector<8x8x32xf32> to vector<64x32xf32>
    %c3 = arith.constant 3 : index
    %c0_13 = arith.constant 0 : index
    %c0_14 = arith.constant 0 : index
    %23 = vector.load %arg2[%c3, %c0_13, %c0_14] : memref<9x32x32xf32, #tpu.memory_space<vmem>>, vector<1x32x32xf32>
    %24 = vector.shape_cast %23 : vector<1x32x32xf32> to vector<32x32xf32>
    %cst_15 = arith.constant dense<0.000000e+00> : vector<64x32xf32>
    %25 = tpu.matmul %22, %24, %cst_15 {dimension_numbers = #tpu.dot_dimension_numbers<[1], [0], [0], [1], [0, 0, 1, 1], [], []>} : vector<64x32xf32>, vector<32x32xf32>, vector<64x32xf32> -> vector<64x32xf32>
    %26 = arith.addf %20, %25 : vector<64x32xf32>
    %27 = vector.extract_strided_slice %1 {offsets = [1, 1, 0], sizes = [8, 8, 32], strides = [1, 1, 1]} : vector<10x10x32xf32> to vector<8x8x32xf32>
    %28 = vector.shape_cast %27 : vector<8x8x32xf32> to vector<64x32xf32>
    %c4 = arith.constant 4 : index
    %c0_16 = arith.constant 0 : index
    %c0_17 = arith.constant 0 : index
    %29 = vector.load %arg2[%c4, %c0_16, %c0_17] : memref<9x32x32xf32, #tpu.memory_space<vmem>>, vector<1x32x32xf32>
    %30 = vector.shape_cast %29 : vector<1x32x32xf32> to vector<32x32xf32>
    %cst_18 = arith.constant dense<0.000000e+00> : vector<64x32xf32>
    %31 = tpu.matmul %28, %30, %cst_18 {dimension_numbers = #tpu.dot_dimension_numbers<[1], [0], [0], [1], [0, 0, 1, 1], [], []>} : vector<64x32xf32>, vector<32x32xf32>, vector<64x32xf32> -> vector<64x32xf32>
    %32 = arith.addf %26, %31 : vector<64x32xf32>
    %33 = vector.extract_strided_slice %1 {offsets = [1, 2, 0], sizes = [8, 8, 32], strides = [1, 1, 1]} : vector<10x10x32xf32> to vector<8x8x32xf32>
    %34 = vector.shape_cast %33 : vector<8x8x32xf32> to vector<64x32xf32>
    %c5 = arith.constant 5 : index
    %c0_19 = arith.constant 0 : index
    %c0_20 = arith.constant 0 : index
    %35 = vector.load %arg2[%c5, %c0_19, %c0_20] : memref<9x32x32xf32, #tpu.memory_space<vmem>>, vector<1x32x32xf32>
    %36 = vector.shape_cast %35 : vector<1x32x32xf32> to vector<32x32xf32>
    %cst_21 = arith.constant dense<0.000000e+00> : vector<64x32xf32>
    %37 = tpu.matmul %34, %36, %cst_21 {dimension_numbers = #tpu.dot_dimension_numbers<[1], [0], [0], [1], [0, 0, 1, 1], [], []>} : vector<64x32xf32>, vector<32x32xf32>, vector<64x32xf32> -> vector<64x32xf32>
    %38 = arith.addf %32, %37 : vector<64x32xf32>
    %39 = vector.extract_strided_slice %1 {offsets = [2, 0, 0], sizes = [8, 8, 32], strides = [1, 1, 1]} : vector<10x10x32xf32> to vector<8x8x32xf32>
    %40 = vector.shape_cast %39 : vector<8x8x32xf32> to vector<64x32xf32>
    %c6 = arith.constant 6 : index
    %c0_22 = arith.constant 0 : index
    %c0_23 = arith.constant 0 : index
    %41 = vector.load %arg2[%c6, %c0_22, %c0_23] : memref<9x32x32xf32, #tpu.memory_space<vmem>>, vector<1x32x32xf32>
    %42 = vector.shape_cast %41 : vector<1x32x32xf32> to vector<32x32xf32>
    %cst_24 = arith.constant dense<0.000000e+00> : vector<64x32xf32>
    %43 = tpu.matmul %40, %42, %cst_24 {dimension_numbers = #tpu.dot_dimension_numbers<[1], [0], [0], [1], [0, 0, 1, 1], [], []>} : vector<64x32xf32>, vector<32x32xf32>, vector<64x32xf32> -> vector<64x32xf32>
    %44 = arith.addf %38, %43 : vector<64x32xf32>
    %45 = vector.extract_strided_slice %1 {offsets = [2, 1, 0], sizes = [8, 8, 32], strides = [1, 1, 1]} : vector<10x10x32xf32> to vector<8x8x32xf32>
    %46 = vector.shape_cast %45 : vector<8x8x32xf32> to vector<64x32xf32>
    %c7 = arith.constant 7 : index
    %c0_25 = arith.constant 0 : index
    %c0_26 = arith.constant 0 : index
    %47 = vector.load %arg2[%c7, %c0_25, %c0_26] : memref<9x32x32xf32, #tpu.memory_space<vmem>>, vector<1x32x32xf32>
    %48 = vector.shape_cast %47 : vector<1x32x32xf32> to vector<32x32xf32>
    %cst_27 = arith.constant dense<0.000000e+00> : vector<64x32xf32>
    %49 = tpu.matmul %46, %48, %cst_27 {dimension_numbers = #tpu.dot_dimension_numbers<[1], [0], [0], [1], [0, 0, 1, 1], [], []>} : vector<64x32xf32>, vector<32x32xf32>, vector<64x32xf32> -> vector<64x32xf32>
    %50 = arith.addf %44, %49 : vector<64x32xf32>
    %51 = vector.extract_strided_slice %1 {offsets = [2, 2, 0], sizes = [8, 8, 32], strides = [1, 1, 1]} : vector<10x10x32xf32> to vector<8x8x32xf32>
    %52 = vector.shape_cast %51 : vector<8x8x32xf32> to vector<64x32xf32>
    %c8 = arith.constant 8 : index
    %c0_28 = arith.constant 0 : index
    %c0_29 = arith.constant 0 : index
    %53 = vector.load %arg2[%c8, %c0_28, %c0_29] : memref<9x32x32xf32, #tpu.memory_space<vmem>>, vector<1x32x32xf32>
    %54 = vector.shape_cast %53 : vector<1x32x32xf32> to vector<32x32xf32>
    %cst_30 = arith.constant dense<0.000000e+00> : vector<64x32xf32>
    %55 = tpu.matmul %52, %54, %cst_30 {dimension_numbers = #tpu.dot_dimension_numbers<[1], [0], [0], [1], [0, 0, 1, 1], [], []>} : vector<64x32xf32>, vector<32x32xf32>, vector<64x32xf32> -> vector<64x32xf32>
    %56 = arith.addf %50, %55 : vector<64x32xf32>
    %c0_31 = arith.constant 0 : index
    %c0_32 = arith.constant 0 : index
    %57 = vector.load %arg3[%c0_31, %c0_32] : memref<1x32xf32, #tpu.memory_space<vmem>>, vector<1x32xf32>
    %58 = vector.broadcast %57 : vector<1x32xf32> to vector<64x32xf32>
    %59 = arith.addf %56, %58 : vector<64x32xf32>
    %cst_33 = arith.constant 0.000000e+00 : f32
    %60 = vector.broadcast %cst_33 : f32 to vector<64x32xf32>
    %61 = arith.maximumf %59, %60 : vector<64x32xf32>
    %62 = vector.shape_cast %61 : vector<64x32xf32> to vector<8x8x32xf32>
    %c0_34 = arith.constant 0 : index
    %c0_35 = arith.constant 0 : index
    %c0_36 = arith.constant 0 : index
    %c0_37 = arith.constant 0 : index
    %63 = vector.load %arg4[%c0_34, %c0_35, %c0_36, %c0_37] : memref<1x8x8x32xf32, #tpu.memory_space<vmem>>, vector<1x8x8x32xf32>
    %64 = vector.shape_cast %63 : vector<1x8x8x32xf32> to vector<8x8x32xf32>
    %65 = vector.shape_cast %62 : vector<8x8x32xf32> to vector<1x8x8x32xf32>
    tpu.vector_store %arg4[%c0_34, %c0_35, %c0_36, %c0_37], %65 {strides = array<i32>} : memref<1x8x8x32xf32, #tpu.memory_space<vmem>>, vector<1x8x8x32xf32>,
    return
  }
  func.func @transform_0(%arg0: i32) -> (i32, i32, i32, i32) {
    %c0_i32 = arith.constant 0 : i32
    %c0_i32_0 = arith.constant 0 : i32
    %c0_i32_1 = arith.constant 0 : i32
    %c0_i32_2 = arith.constant 0 : i32
    return %arg0, %c0_i32, %c0_i32_0, %c0_i32_1 : i32, i32, i32, i32
  }
  func.func @transform_1(%arg0: i32) -> (i32, i32, i32) {
    %c0_i32 = arith.constant 0 : i32
    %c0_i32_0 = arith.constant 0 : i32
    %c0_i32_1 = arith.constant 0 : i32
    %c0_i32_2 = arith.constant 0 : i32
    return %c0_i32, %c0_i32_0, %c0_i32_1 : i32, i32, i32
  }
  func.func @transform_2(%arg0: i32) -> (i32, i32) {
    %c0_i32 = arith.constant 0 : i32
    %c0_i32_0 = arith.constant 0 : i32
    %c0_i32_1 = arith.constant 0 : i32
    return %c0_i32, %c0_i32_0 : i32, i32
  }
  func.func @transform_3(%arg0: i32) -> (i32, i32, i32, i32) {
    %c0_i32 = arith.constant 0 : i32
    %c0_i32_0 = arith.constant 0 : i32
    %c0_i32_1 = arith.constant 0 : i32
    %c0_i32_2 = arith.constant 0 : i32
    return %arg0, %c0_i32, %c0_i32_0, %c0_i32_1 : i32, i32, i32, i32
  }
}

module attributes {stable_mosaic.version = 11 : i64} {
  func.func @_conv3x3_bn_relu_proj_kernel(%arg0: i32, %arg1: memref<1x18x18x32xf32, #tpu.memory_space<vmem>>, %arg2: memref<9x32x16xf32, #tpu.memory_space<vmem>>, %arg3: memref<1x16xf32, #tpu.memory_space<vmem>>, %arg4: memref<16x16xf32, #tpu.memory_space<vmem>>, %arg5: memref<1x16xf32, #tpu.memory_space<vmem>>, %arg6: memref<1x16x16x16xf32, #tpu.memory_space<vmem>>) attributes {dimension_semantics = [#tpu.dimension_semantics<parallel>], iteration_bounds = array<i64: 2>, scalar_prefetch = 0 : i64, scratch_operands = 0 : i64, tpu.core_type = #tpu.core_type<tc>, window_params = [{transform_indices = @transform_0, window_bounds = array<i64: 1, 18, 18, 32>}, {pipeline_mode = #tpu.pipeline_mode<synchronous>, transform_indices = @transform_1, window_bounds = array<i64: 9, 32, 16>}, {pipeline_mode = #tpu.pipeline_mode<synchronous>, transform_indices = @transform_2, window_bounds = array<i64: 1, 16>}, {pipeline_mode = #tpu.pipeline_mode<synchronous>, transform_indices = @transform_3, window_bounds = array<i64: 16, 16>}, {pipeline_mode = #tpu.pipeline_mode<synchronous>, transform_indices = @transform_4, window_bounds = array<i64: 1, 16>}, {transform_indices = @transform_5, window_bounds = array<i64: 1, 16, 16, 16>}]} {
    %c0 = arith.constant 0 : index
    %c0_0 = arith.constant 0 : index
    %c0_1 = arith.constant 0 : index
    %c0_2 = arith.constant 0 : index
    %0 = vector.load %arg1[%c0, %c0_0, %c0_1, %c0_2] : memref<1x18x18x32xf32, #tpu.memory_space<vmem>>, vector<1x18x18x32xf32>
    %1 = vector.shape_cast %0 : vector<1x18x18x32xf32> to vector<18x18x32xf32>
    %cst = arith.constant 0.000000e+00 : f32
    %2 = vector.broadcast %cst : f32 to vector<256x16xf32>
    %3 = vector.extract_strided_slice %1 {offsets = [0, 0, 0], sizes = [16, 16, 32], strides = [1, 1, 1]} : vector<18x18x32xf32> to vector<16x16x32xf32>
    %4 = vector.shape_cast %3 : vector<16x16x32xf32> to vector<256x32xf32>
    %c0_3 = arith.constant 0 : index
    %c0_4 = arith.constant 0 : index
    %c0_5 = arith.constant 0 : index
    %5 = vector.load %arg2[%c0_3, %c0_4, %c0_5] : memref<9x32x16xf32, #tpu.memory_space<vmem>>, vector<1x32x16xf32>
    %6 = vector.shape_cast %5 : vector<1x32x16xf32> to vector<32x16xf32>
    %cst_6 = arith.constant dense<0.000000e+00> : vector<256x16xf32>
    %7 = tpu.matmul %4, %6, %cst_6 {dimension_numbers = #tpu.dot_dimension_numbers<[1], [0], [0], [1], [0, 0, 1, 1], [], []>} : vector<256x32xf32>, vector<32x16xf32>, vector<256x16xf32> -> vector<256x16xf32>
    %8 = arith.addf %2, %7 : vector<256x16xf32>
    %9 = vector.extract_strided_slice %1 {offsets = [0, 1, 0], sizes = [16, 16, 32], strides = [1, 1, 1]} : vector<18x18x32xf32> to vector<16x16x32xf32>
    %10 = vector.shape_cast %9 : vector<16x16x32xf32> to vector<256x32xf32>
    %c1 = arith.constant 1 : index
    %c0_7 = arith.constant 0 : index
    %c0_8 = arith.constant 0 : index
    %11 = vector.load %arg2[%c1, %c0_7, %c0_8] : memref<9x32x16xf32, #tpu.memory_space<vmem>>, vector<1x32x16xf32>
    %12 = vector.shape_cast %11 : vector<1x32x16xf32> to vector<32x16xf32>
    %cst_9 = arith.constant dense<0.000000e+00> : vector<256x16xf32>
    %13 = tpu.matmul %10, %12, %cst_9 {dimension_numbers = #tpu.dot_dimension_numbers<[1], [0], [0], [1], [0, 0, 1, 1], [], []>} : vector<256x32xf32>, vector<32x16xf32>, vector<256x16xf32> -> vector<256x16xf32>
    %14 = arith.addf %8, %13 : vector<256x16xf32>
    %15 = vector.extract_strided_slice %1 {offsets = [0, 2, 0], sizes = [16, 16, 32], strides = [1, 1, 1]} : vector<18x18x32xf32> to vector<16x16x32xf32>
    %16 = vector.shape_cast %15 : vector<16x16x32xf32> to vector<256x32xf32>
    %c2 = arith.constant 2 : index
    %c0_10 = arith.constant 0 : index
    %c0_11 = arith.constant 0 : index
    %17 = vector.load %arg2[%c2, %c0_10, %c0_11] : memref<9x32x16xf32, #tpu.memory_space<vmem>>, vector<1x32x16xf32>
    %18 = vector.shape_cast %17 : vector<1x32x16xf32> to vector<32x16xf32>
    %cst_12 = arith.constant dense<0.000000e+00> : vector<256x16xf32>
    %19 = tpu.matmul %16, %18, %cst_12 {dimension_numbers = #tpu.dot_dimension_numbers<[1], [0], [0], [1], [0, 0, 1, 1], [], []>} : vector<256x32xf32>, vector<32x16xf32>, vector<256x16xf32> -> vector<256x16xf32>
    %20 = arith.addf %14, %19 : vector<256x16xf32>
    %21 = vector.extract_strided_slice %1 {offsets = [1, 0, 0], sizes = [16, 16, 32], strides = [1, 1, 1]} : vector<18x18x32xf32> to vector<16x16x32xf32>
    %22 = vector.shape_cast %21 : vector<16x16x32xf32> to vector<256x32xf32>
    %c3 = arith.constant 3 : index
    %c0_13 = arith.constant 0 : index
    %c0_14 = arith.constant 0 : index
    %23 = vector.load %arg2[%c3, %c0_13, %c0_14] : memref<9x32x16xf32, #tpu.memory_space<vmem>>, vector<1x32x16xf32>
    %24 = vector.shape_cast %23 : vector<1x32x16xf32> to vector<32x16xf32>
    %cst_15 = arith.constant dense<0.000000e+00> : vector<256x16xf32>
    %25 = tpu.matmul %22, %24, %cst_15 {dimension_numbers = #tpu.dot_dimension_numbers<[1], [0], [0], [1], [0, 0, 1, 1], [], []>} : vector<256x32xf32>, vector<32x16xf32>, vector<256x16xf32> -> vector<256x16xf32>
    %26 = arith.addf %20, %25 : vector<256x16xf32>
    %27 = vector.extract_strided_slice %1 {offsets = [1, 1, 0], sizes = [16, 16, 32], strides = [1, 1, 1]} : vector<18x18x32xf32> to vector<16x16x32xf32>
    %28 = vector.shape_cast %27 : vector<16x16x32xf32> to vector<256x32xf32>
    %c4 = arith.constant 4 : index
    %c0_16 = arith.constant 0 : index
    %c0_17 = arith.constant 0 : index
    %29 = vector.load %arg2[%c4, %c0_16, %c0_17] : memref<9x32x16xf32, #tpu.memory_space<vmem>>, vector<1x32x16xf32>
    %30 = vector.shape_cast %29 : vector<1x32x16xf32> to vector<32x16xf32>
    %cst_18 = arith.constant dense<0.000000e+00> : vector<256x16xf32>
    %31 = tpu.matmul %28, %30, %cst_18 {dimension_numbers = #tpu.dot_dimension_numbers<[1], [0], [0], [1], [0, 0, 1, 1], [], []>} : vector<256x32xf32>, vector<32x16xf32>, vector<256x16xf32> -> vector<256x16xf32>
    %32 = arith.addf %26, %31 : vector<256x16xf32>
    %33 = vector.extract_strided_slice %1 {offsets = [1, 2, 0], sizes = [16, 16, 32], strides = [1, 1, 1]} : vector<18x18x32xf32> to vector<16x16x32xf32>
    %34 = vector.shape_cast %33 : vector<16x16x32xf32> to vector<256x32xf32>
    %c5 = arith.constant 5 : index
    %c0_19 = arith.constant 0 : index
    %c0_20 = arith.constant 0 : index
    %35 = vector.load %arg2[%c5, %c0_19, %c0_20] : memref<9x32x16xf32, #tpu.memory_space<vmem>>, vector<1x32x16xf32>
    %36 = vector.shape_cast %35 : vector<1x32x16xf32> to vector<32x16xf32>
    %cst_21 = arith.constant dense<0.000000e+00> : vector<256x16xf32>
    %37 = tpu.matmul %34, %36, %cst_21 {dimension_numbers = #tpu.dot_dimension_numbers<[1], [0], [0], [1], [0, 0, 1, 1], [], []>} : vector<256x32xf32>, vector<32x16xf32>, vector<256x16xf32> -> vector<256x16xf32>
    %38 = arith.addf %32, %37 : vector<256x16xf32>
    %39 = vector.extract_strided_slice %1 {offsets = [2, 0, 0], sizes = [16, 16, 32], strides = [1, 1, 1]} : vector<18x18x32xf32> to vector<16x16x32xf32>
    %40 = vector.shape_cast %39 : vector<16x16x32xf32> to vector<256x32xf32>
    %c6 = arith.constant 6 : index
    %c0_22 = arith.constant 0 : index
    %c0_23 = arith.constant 0 : index
    %41 = vector.load %arg2[%c6, %c0_22, %c0_23] : memref<9x32x16xf32, #tpu.memory_space<vmem>>, vector<1x32x16xf32>
    %42 = vector.shape_cast %41 : vector<1x32x16xf32> to vector<32x16xf32>
    %cst_24 = arith.constant dense<0.000000e+00> : vector<256x16xf32>
    %43 = tpu.matmul %40, %42, %cst_24 {dimension_numbers = #tpu.dot_dimension_numbers<[1], [0], [0], [1], [0, 0, 1, 1], [], []>} : vector<256x32xf32>, vector<32x16xf32>, vector<256x16xf32> -> vector<256x16xf32>
    %44 = arith.addf %38, %43 : vector<256x16xf32>
    %45 = vector.extract_strided_slice %1 {offsets = [2, 1, 0], sizes = [16, 16, 32], strides = [1, 1, 1]} : vector<18x18x32xf32> to vector<16x16x32xf32>
    %46 = vector.shape_cast %45 : vector<16x16x32xf32> to vector<256x32xf32>
    %c7 = arith.constant 7 : index
    %c0_25 = arith.constant 0 : index
    %c0_26 = arith.constant 0 : index
    %47 = vector.load %arg2[%c7, %c0_25, %c0_26] : memref<9x32x16xf32, #tpu.memory_space<vmem>>, vector<1x32x16xf32>
    %48 = vector.shape_cast %47 : vector<1x32x16xf32> to vector<32x16xf32>
    %cst_27 = arith.constant dense<0.000000e+00> : vector<256x16xf32>
    %49 = tpu.matmul %46, %48, %cst_27 {dimension_numbers = #tpu.dot_dimension_numbers<[1], [0], [0], [1], [0, 0, 1, 1], [], []>} : vector<256x32xf32>, vector<32x16xf32>, vector<256x16xf32> -> vector<256x16xf32>
    %50 = arith.addf %44, %49 : vector<256x16xf32>
    %51 = vector.extract_strided_slice %1 {offsets = [2, 2, 0], sizes = [16, 16, 32], strides = [1, 1, 1]} : vector<18x18x32xf32> to vector<16x16x32xf32>
    %52 = vector.shape_cast %51 : vector<16x16x32xf32> to vector<256x32xf32>
    %c8 = arith.constant 8 : index
    %c0_28 = arith.constant 0 : index
    %c0_29 = arith.constant 0 : index
    %53 = vector.load %arg2[%c8, %c0_28, %c0_29] : memref<9x32x16xf32, #tpu.memory_space<vmem>>, vector<1x32x16xf32>
    %54 = vector.shape_cast %53 : vector<1x32x16xf32> to vector<32x16xf32>
    %cst_30 = arith.constant dense<0.000000e+00> : vector<256x16xf32>
    %55 = tpu.matmul %52, %54, %cst_30 {dimension_numbers = #tpu.dot_dimension_numbers<[1], [0], [0], [1], [0, 0, 1, 1], [], []>} : vector<256x32xf32>, vector<32x16xf32>, vector<256x16xf32> -> vector<256x16xf32>
    %56 = arith.addf %50, %55 : vector<256x16xf32>
    %c0_31 = arith.constant 0 : index
    %c0_32 = arith.constant 0 : index
    %57 = vector.load %arg3[%c0_31, %c0_32] : memref<1x16xf32, #tpu.memory_space<vmem>>, vector<1x16xf32>
    %58 = vector.broadcast %57 : vector<1x16xf32> to vector<256x16xf32>
    %59 = arith.addf %56, %58 : vector<256x16xf32>
    %cst_33 = arith.constant 0.000000e+00 : f32
    %60 = vector.broadcast %cst_33 : f32 to vector<256x16xf32>
    %61 = arith.maximumf %59, %60 : vector<256x16xf32>
    %c0_34 = arith.constant 0 : index
    %c0_35 = arith.constant 0 : index
    %62 = vector.load %arg4[%c0_34, %c0_35] : memref<16x16xf32, #tpu.memory_space<vmem>>, vector<16x16xf32>
    %cst_36 = arith.constant dense<0.000000e+00> : vector<256x16xf32>
    %63 = tpu.matmul %61, %62, %cst_36 {dimension_numbers = #tpu.dot_dimension_numbers<[1], [0], [0], [1], [0, 0, 1, 1], [], []>} : vector<256x16xf32>, vector<16x16xf32>, vector<256x16xf32> -> vector<256x16xf32>
    %c0_37 = arith.constant 0 : index
    %c0_38 = arith.constant 0 : index
    %64 = vector.load %arg5[%c0_37, %c0_38] : memref<1x16xf32, #tpu.memory_space<vmem>>, vector<1x16xf32>
    %65 = vector.broadcast %64 : vector<1x16xf32> to vector<256x16xf32>
    %66 = arith.addf %63, %65 : vector<256x16xf32>
    %67 = vector.shape_cast %66 : vector<256x16xf32> to vector<16x16x16xf32>
    %c0_39 = arith.constant 0 : index
    %c0_40 = arith.constant 0 : index
    %c0_41 = arith.constant 0 : index
    %c0_42 = arith.constant 0 : index
    %68 = vector.load %arg6[%c0_39, %c0_40, %c0_41, %c0_42] : memref<1x16x16x16xf32, #tpu.memory_space<vmem>>, vector<1x16x16x16xf32>
    %69 = vector.shape_cast %68 : vector<1x16x16x16xf32> to vector<16x16x16xf32>
    %70 = vector.shape_cast %67 : vector<16x16x16xf32> to vector<1x16x16x16xf32>
    tpu.vector_store %arg6[%c0_39, %c0_40, %c0_41, %c0_42], %70 {strides = array<i32>} : memref<1x16x16x16xf32, #tpu.memory_space<vmem>>, vector<1x16x16x16xf32>,
    return
  }
  func.func @transform_0(%arg0: i32) -> (i32, i32, i32, i32) {
    %c0_i32 = arith.constant 0 : i32
    %c0_i32_0 = arith.constant 0 : i32
    %c0_i32_1 = arith.constant 0 : i32
    %c0_i32_2 = arith.constant 0 : i32
    return %arg0, %c0_i32, %c0_i32_0, %c0_i32_1 : i32, i32, i32, i32
  }
  func.func @transform_1(%arg0: i32) -> (i32, i32, i32) {
    %c0_i32 = arith.constant 0 : i32
    %c0_i32_0 = arith.constant 0 : i32
    %c0_i32_1 = arith.constant 0 : i32
    %c0_i32_2 = arith.constant 0 : i32
    return %c0_i32, %c0_i32_0, %c0_i32_1 : i32, i32, i32
  }
  func.func @transform_2(%arg0: i32) -> (i32, i32) {
    %c0_i32 = arith.constant 0 : i32
    %c0_i32_0 = arith.constant 0 : i32
    %c0_i32_1 = arith.constant 0 : i32
    return %c0_i32, %c0_i32_0 : i32, i32
  }
  func.func @transform_3(%arg0: i32) -> (i32, i32) {
    %c0_i32 = arith.constant 0 : i32
    %c0_i32_0 = arith.constant 0 : i32
    %c0_i32_1 = arith.constant 0 : i32
    return %c0_i32, %c0_i32_0 : i32, i32
  }
  func.func @transform_4(%arg0: i32) -> (i32, i32) {
    %c0_i32 = arith.constant 0 : i32
    %c0_i32_0 = arith.constant 0 : i32
    %c0_i32_1 = arith.constant 0 : i32
    return %c0_i32, %c0_i32_0 : i32, i32
  }
  func.func @transform_5(%arg0: i32) -> (i32, i32, i32, i32) {
    %c0_i32 = arith.constant 0 : i32
    %c0_i32_0 = arith.constant 0 : i32
    %c0_i32_1 = arith.constant 0 : i32
    %c0_i32_2 = arith.constant 0 : i32
    return %arg0, %c0_i32, %c0_i32_0, %c0_i32_1 : i32, i32, i32, i32
  }
}

module attributes {stable_mosaic.version = 11 : i64} {
  func.func @_proj_head_kernel(%arg0: i32, %arg1: memref<1x18x18x16xf32, #tpu.memory_space<vmem>>, %arg2: memref<1x9x16xf32, #tpu.memory_space<vmem>>, %arg3: memref<1x1x1xf32, #tpu.memory_space<vmem>>, %arg4: memref<1x16x16xf32, #tpu.memory_space<vmem>>) attributes {dimension_semantics = [#tpu.dimension_semantics<parallel>], iteration_bounds = array<i64: 2>, scalar_prefetch = 0 : i64, scratch_operands = 0 : i64, tpu.core_type = #tpu.core_type<tc>, window_params = [{transform_indices = @transform_0, window_bounds = array<i64: 1, 18, 18, 16>}, {transform_indices = @transform_1, window_bounds = array<i64: 1, 9, 16>}, {transform_indices = @transform_2, window_bounds = array<i64: 1, 1, 1>}, {transform_indices = @transform_3, window_bounds = array<i64: 1, 16, 16>}]} {
    %c0 = arith.constant 0 : index
    %c0_0 = arith.constant 0 : index
    %c0_1 = arith.constant 0 : index
    %c0_2 = arith.constant 0 : index
    %0 = vector.load %arg1[%c0, %c0_0, %c0_1, %c0_2] : memref<1x18x18x16xf32, #tpu.memory_space<vmem>>, vector<1x18x18x16xf32>
    %1 = vector.shape_cast %0 : vector<1x18x18x16xf32> to vector<18x18x16xf32>
    %c0_3 = arith.constant 0 : index
    %c0_4 = arith.constant 0 : index
    %c0_5 = arith.constant 0 : index
    %2 = vector.load %arg2[%c0_3, %c0_4, %c0_5] : memref<1x9x16xf32, #tpu.memory_space<vmem>>, vector<1x9x16xf32>
    %3 = vector.shape_cast %2 : vector<1x9x16xf32> to vector<9x16xf32>
    %cst = arith.constant 0.000000e+00 : f32
    %4 = vector.broadcast %cst : f32 to vector<16x16x16xf32>
    %5 = vector.extract_strided_slice %1 {offsets = [0, 0, 0], sizes = [16, 16, 16], strides = [1, 1, 1]} : vector<18x18x16xf32> to vector<16x16x16xf32>
    %6 = vector.extract_strided_slice %3 {offsets = [0, 0], sizes = [1, 16], strides = [1, 1]} : vector<9x16xf32> to vector<1x16xf32>
    %7 = vector.shape_cast %6 : vector<1x16xf32> to vector<1x1x16xf32>
    %8 = vector.broadcast %7 : vector<1x1x16xf32> to vector<16x16x16xf32>
    %9 = arith.mulf %5, %8 : vector<16x16x16xf32>
    %10 = arith.addf %4, %9 : vector<16x16x16xf32>
    %11 = vector.extract_strided_slice %1 {offsets = [0, 1, 0], sizes = [16, 16, 16], strides = [1, 1, 1]} : vector<18x18x16xf32> to vector<16x16x16xf32>
    %12 = vector.extract_strided_slice %3 {offsets = [1, 0], sizes = [1, 16], strides = [1, 1]} : vector<9x16xf32> to vector<1x16xf32>
    %13 = vector.shape_cast %12 : vector<1x16xf32> to vector<1x1x16xf32>
    %14 = vector.broadcast %13 : vector<1x1x16xf32> to vector<16x16x16xf32>
    %15 = arith.mulf %11, %14 : vector<16x16x16xf32>
    %16 = arith.addf %10, %15 : vector<16x16x16xf32>
    %17 = vector.extract_strided_slice %1 {offsets = [0, 2, 0], sizes = [16, 16, 16], strides = [1, 1, 1]} : vector<18x18x16xf32> to vector<16x16x16xf32>
    %18 = vector.extract_strided_slice %3 {offsets = [2, 0], sizes = [1, 16], strides = [1, 1]} : vector<9x16xf32> to vector<1x16xf32>
    %19 = vector.shape_cast %18 : vector<1x16xf32> to vector<1x1x16xf32>
    %20 = vector.broadcast %19 : vector<1x1x16xf32> to vector<16x16x16xf32>
    %21 = arith.mulf %17, %20 : vector<16x16x16xf32>
    %22 = arith.addf %16, %21 : vector<16x16x16xf32>
    %23 = vector.extract_strided_slice %1 {offsets = [1, 0, 0], sizes = [16, 16, 16], strides = [1, 1, 1]} : vector<18x18x16xf32> to vector<16x16x16xf32>
    %24 = vector.extract_strided_slice %3 {offsets = [3, 0], sizes = [1, 16], strides = [1, 1]} : vector<9x16xf32> to vector<1x16xf32>
    %25 = vector.shape_cast %24 : vector<1x16xf32> to vector<1x1x16xf32>
    %26 = vector.broadcast %25 : vector<1x1x16xf32> to vector<16x16x16xf32>
    %27 = arith.mulf %23, %26 : vector<16x16x16xf32>
    %28 = arith.addf %22, %27 : vector<16x16x16xf32>
    %29 = vector.extract_strided_slice %1 {offsets = [1, 1, 0], sizes = [16, 16, 16], strides = [1, 1, 1]} : vector<18x18x16xf32> to vector<16x16x16xf32>
    %30 = vector.extract_strided_slice %3 {offsets = [4, 0], sizes = [1, 16], strides = [1, 1]} : vector<9x16xf32> to vector<1x16xf32>
    %31 = vector.shape_cast %30 : vector<1x16xf32> to vector<1x1x16xf32>
    %32 = vector.broadcast %31 : vector<1x1x16xf32> to vector<16x16x16xf32>
    %33 = arith.mulf %29, %32 : vector<16x16x16xf32>
    %34 = arith.addf %28, %33 : vector<16x16x16xf32>
    %35 = vector.extract_strided_slice %1 {offsets = [1, 2, 0], sizes = [16, 16, 16], strides = [1, 1, 1]} : vector<18x18x16xf32> to vector<16x16x16xf32>
    %36 = vector.extract_strided_slice %3 {offsets = [5, 0], sizes = [1, 16], strides = [1, 1]} : vector<9x16xf32> to vector<1x16xf32>
    %37 = vector.shape_cast %36 : vector<1x16xf32> to vector<1x1x16xf32>
    %38 = vector.broadcast %37 : vector<1x1x16xf32> to vector<16x16x16xf32>
    %39 = arith.mulf %35, %38 : vector<16x16x16xf32>
    %40 = arith.addf %34, %39 : vector<16x16x16xf32>
    %41 = vector.extract_strided_slice %1 {offsets = [2, 0, 0], sizes = [16, 16, 16], strides = [1, 1, 1]} : vector<18x18x16xf32> to vector<16x16x16xf32>
    %42 = vector.extract_strided_slice %3 {offsets = [6, 0], sizes = [1, 16], strides = [1, 1]} : vector<9x16xf32> to vector<1x16xf32>
    %43 = vector.shape_cast %42 : vector<1x16xf32> to vector<1x1x16xf32>
    %44 = vector.broadcast %43 : vector<1x1x16xf32> to vector<16x16x16xf32>
    %45 = arith.mulf %41, %44 : vector<16x16x16xf32>
    %46 = arith.addf %40, %45 : vector<16x16x16xf32>
    %47 = vector.extract_strided_slice %1 {offsets = [2, 1, 0], sizes = [16, 16, 16], strides = [1, 1, 1]} : vector<18x18x16xf32> to vector<16x16x16xf32>
    %48 = vector.extract_strided_slice %3 {offsets = [7, 0], sizes = [1, 16], strides = [1, 1]} : vector<9x16xf32> to vector<1x16xf32>
    %49 = vector.shape_cast %48 : vector<1x16xf32> to vector<1x1x16xf32>
    %50 = vector.broadcast %49 : vector<1x1x16xf32> to vector<16x16x16xf32>
    %51 = arith.mulf %47, %50 : vector<16x16x16xf32>
    %52 = arith.addf %46, %51 : vector<16x16x16xf32>
    %53 = vector.extract_strided_slice %1 {offsets = [2, 2, 0], sizes = [16, 16, 16], strides = [1, 1, 1]} : vector<18x18x16xf32> to vector<16x16x16xf32>
    %54 = vector.extract_strided_slice %3 {offsets = [8, 0], sizes = [1, 16], strides = [1, 1]} : vector<9x16xf32> to vector<1x16xf32>
    %55 = vector.shape_cast %54 : vector<1x16xf32> to vector<1x1x16xf32>
    %56 = vector.broadcast %55 : vector<1x1x16xf32> to vector<16x16x16xf32>
    %57 = arith.mulf %53, %56 : vector<16x16x16xf32>
    %58 = arith.addf %52, %57 : vector<16x16x16xf32>
    %cst_6 = arith.constant dense<0.000000e+00> : vector<16x16xf32>
    %59 = vector.multi_reduction <add>, %58, %cst_6 [2] : vector<16x16x16xf32> to vector<16x16xf32>
    %c0_7 = arith.constant 0 : index
    %c0_8 = arith.constant 0 : index
    %c0_9 = arith.constant 0 : index
    %60 = vector.load %arg3[%c0_7, %c0_8, %c0_9] : memref<1x1x1xf32, #tpu.memory_space<vmem>>, vector<1x1x1xf32>
    %61 = vector.shape_cast %60 : vector<1x1x1xf32> to vector<1x1xf32>
    %62 = vector.broadcast %61 : vector<1x1xf32> to vector<16x16xf32>
    %63 = arith.addf %59, %62 : vector<16x16xf32>
    %c0_10 = arith.constant 0 : index
    %c0_11 = arith.constant 0 : index
    %c0_12 = arith.constant 0 : index
    %64 = vector.load %arg4[%c0_10, %c0_11, %c0_12] : memref<1x16x16xf32, #tpu.memory_space<vmem>>, vector<1x16x16xf32>
    %65 = vector.shape_cast %64 : vector<1x16x16xf32> to vector<16x16xf32>
    %66 = vector.shape_cast %63 : vector<16x16xf32> to vector<1x16x16xf32>
    tpu.vector_store %arg4[%c0_10, %c0_11, %c0_12], %66 {strides = array<i32>} : memref<1x16x16xf32, #tpu.memory_space<vmem>>, vector<1x16x16xf32>,
    return
  }
  func.func @transform_0(%arg0: i32) -> (i32, i32, i32, i32) {
    %c0_i32 = arith.constant 0 : i32
    %c0_i32_0 = arith.constant 0 : i32
    %c0_i32_1 = arith.constant 0 : i32
    %c0_i32_2 = arith.constant 0 : i32
    return %arg0, %c0_i32, %c0_i32_0, %c0_i32_1 : i32, i32, i32, i32
  }
  func.func @transform_1(%arg0: i32) -> (i32, i32, i32) {
    %c0_i32 = arith.constant 0 : i32
    %c0_i32_0 = arith.constant 0 : i32
    %c0_i32_1 = arith.constant 0 : i32
    return %arg0, %c0_i32, %c0_i32_0 : i32, i32, i32
  }
  func.func @transform_2(%arg0: i32) -> (i32, i32, i32) {
    %c0_i32 = arith.constant 0 : i32
    %c0_i32_0 = arith.constant 0 : i32
    %c0_i32_1 = arith.constant 0 : i32
    return %arg0, %c0_i32, %c0_i32_0 : i32, i32, i32
  }
  func.func @transform_3(%arg0: i32) -> (i32, i32, i32) {
    %c0_i32 = arith.constant 0 : i32
    %c0_i32_0 = arith.constant 0 : i32
    %c0_i32_1 = arith.constant 0 : i32
    return %arg0, %c0_i32, %c0_i32_0 : i32, i32, i32
  }
}

</mosaic_0001>

<bundles_post_ra>
// kernel: projector_forward.3
= control target key start
LH: loop header
LB: loop body
LE: loop exit
PB: predicated region body
PF: predicated region fallthrough
CT: control target
= control target key end

     0   :  { %s1914_s12 = smov 0   ;;  %s2376_s0 = inlined_call_operand.vmem [shape: f32[2,10,10,32], index: 0, kind: input, shape index: {}]   ;;  %s2377_s1 = inlined_call_operand.vmem [shape: f32[9,32,32], index: 1, kind: input, shape index: {}]   ;;  %s2378_s2 = inlined_call_operand.vmem [shape: f32[1,32], index: 2, kind: input, shape index: {}]   ;;  %s2379_s3 = inlined_call_operand.vmem [shape: f32[2,8,8,32], index: 3, kind: output, shape index: {}]  }
   0x1 LB: > { %s1465_s13 = sadd.s32 4294967295, %s1892_s12   ;;  %p1469_p0 = scmp.ge.s32.totalorder %s1892_s12, 1  ;;  %s1892_s12 = sphi %s1914_s12, %s13_s12  }
   0x2   : > { %p137_p1 = scmp.lt.s32.totalorder %s1892_s12, 3 }
   0x4   : > { %p138_p2 = pnand %p1469_p0, %p137_p1 }
   0x5   : > { %p161_p3 = scmp.lt.s32.totalorder (!%p138_p2), %s1465_s13, 1 }
   0x6   : > { %141 = sbr.rel (%p138_p2) target bundleno = 297 (0x129), region = 32 }
   0xb   : > { %v1476_v0 = vld [vmem:[%s2377_s1 + $0x38] sm:$0xff]  ;;  %v1475_v1 = vld [vmem:[%s2377_s1 + $0x30] sm:$0xff]  ;;  %v1474_v2 = vld [vmem:[%s2377_s1 + $0x28] sm:$0xff]  ;;  %s2381_s13 = smov (!%p161_p3, %s1465_s13), 1  ;;  %vm211_vm0 = vcmask 1046528   ;;  %vm241_vm1 = vcmask 261120  }
   0xc   : > { %1869 = vmatprep.subr.mxu1 %v1476_v0  ;;  %1689 = vmatprep.subr.mxu0 %v1476_v0  ;;  %v1473_v3 = vld [vmem:[%s2377_s1 + $0x20] sm:$0xff]  ;;  %s1877_s22 = smul.u32 160, %s2381_s13  ;;  %v194_v4 = vld [vmem:[%s2377_s1 + $0x18] sm:$0xff]  ;;  %v1495_v21 = vld [vmem:[%s2377_s1 + $0x50] sm:$0xff]  ;;  %vm484_vm2 = vcmask 1045504   ;;  %s1580_s18 = sshll.u32 %s2381_s13, 6 }
   0xd   : > { %1873 = vmatpush3.msra.mxu1 %v1476_v0  ;;  %1690 = vmatpush3.msra.mxu0 %v1476_v0  ;;  %v1496_v5 = vld [vmem:[%s2377_s1 + $0x58] sm:$0xff]  ;;  %v193_v26 = vld [vmem:[%s2377_s1 + $0x10] sm:$0xff]  ;;  %v192_v46 = vld [vmem:[%s2377_s1 + $0x8] sm:$0xff]  ;;  %s2348_s13 = scalar_lea.vmem %s2379_s3, %s1580_s18 }
   0xe   : > { %1870 = vmatprep.subr.mxu1 %v1475_v1  ;;  %1691 = vmatprep.subr.mxu0 %v1475_v1  ;;  %s1940_s25 = scalar_lea.vmem %s2376_s0, %s1877_s22  ;;  %v1494_v50 = vld [vmem:[%s2377_s1 + $0x48] sm:$0xff]  ;;  %v191_v53 = vld [vmem:[%s2377_s1] sm:$0xff]  ;;  %v1508_v59 = vld [vmem:[%s2377_s1 + $0x78] sm:$0xff] }
   0xf   : > { %1874 = vmatpush3.msra.mxu1 %v1475_v1  ;;  %1692 = vmatpush3.msra.mxu0 %v1475_v1  ;;  %v1949_v6 = vld [vmem:[%s1940_s25] sm:$0xff]  ;;  %v1952_v7 = vld [vmem:[%s1940_s25 + $0x8] sm:$0x3]  ;;  %v1965_v14 = vld [vmem:[%s1940_s25 + $0x10] sm:$0xff] }
  0x10   : > { %1871 = vmatprep.subr.mxu1 %v1474_v2  ;;  %1693 = vmatprep.subr.mxu0 %v1474_v2  ;;  %v1955_v8 = vld [vmem:[%s1940_s25 + $0x40] sm:$0xff]  ;;  %v212_v9 = vrot.slane %v1949_v6, 1  ;;  %v213_v10 = vrot.slane %v1952_v7, 1  ;;  %v1960_v11 = vld [vmem:[%s1940_s25 + $0x48] sm:$0x3]  ;;  %v1971_v16 = vld [vmem:[%s1940_s25 + $0x50] sm:$0xff] }
  0x11   : > { %1875 = vmatpush3.msra.mxu1 %v1474_v2  ;;  %1694 = vmatpush3.msra.mxu0 %v1474_v2  ;;  %v224_v12 = vrot.slane %v1955_v8, 1  ;;  %v225_v13 = vrot.slane %v1960_v11, 1  ;;  %v1968_v15 = vld [vmem:[%s1940_s25 + $0x18] sm:$0x3]  ;;  %v215_v18 = vrot.slane %v1965_v14, 1  ;;  %v1983_v22 = vld [vmem:[%s1940_s25 + $0x20] sm:$0xff] }
  0x12   : > { %1872 = vmatprep.subr.mxu1 %v1473_v3  ;;  %1695 = vmatprep.subr.mxu0 %v1473_v3  ;;  %v214_v17 = vsel %vm211_vm0, %v212_v9, %v213_v10  ;;  %v216_v19 = vrot.slane %v1968_v15, 1  ;;  %v1977_v20 = vld [vmem:[%s1940_s25 + $0x58] sm:$0x3]  ;;  %v227_v24 = vrot.slane %v1971_v16, 1  ;;  %v1995_v27 = vld [vmem:[%s1940_s25 + $0x28] sm:$0x3] }
  0x13   : > { %1876 = vmatpush3.msra.mxu1 %v1473_v3  ;;  %1696 = vmatpush3.msra.mxu0 %v1473_v3  ;;  %v1987_v23 = vsel %vm211_vm0, %v224_v12, %v225_v13  ;;  %v228_v25 = vrot.slane %v1977_v20, 1  ;;  %v218_v28 = vrot.slane %v1983_v22, 1  ;;  %v1999_v29 = vld [vmem:[%s1940_s25 + $0x60] sm:$0xff]  ;;  %v219_v31 = vrot.slane %v1995_v27, 1  ;;  %v2008_v32 = vld [vmem:[%s1940_s25 + $0x68] sm:$0x3] }
  0x14   : > { %1709 = vmatprep.subr.mxu1 %v194_v4  ;;  %1729 = vmatprep.subr.mxu0 %v1496_v5  ;;  %v2004_v30 = vsel %vm211_vm0, %v215_v18, %v216_v19  ;;  %v230_v33 = vrot.slane %v1999_v29, 1  ;;  %v2012_v34 = vld [vmem:[%s1940_s25 + $0x30] sm:$0xff]  ;;  %v231_v37 = vrot.slane %v2008_v32, 1  ;;  %v2024_v38 = vld [vmem:[%s1940_s25 + $0x38] sm:$0x3]  ;;  %v486_v49 = vrot.slane %v1952_v7, 2 }
  0x15   : > { %1697 = vmatprep.mubr.msk.f32.mxu0 %vm241_vm1, %v214_v17  ;;  %1703 = vmatprep.mubr.msk.f32.mxu1 %vm241_vm1, %v1987_v23  ;;  %v2015_v35 = vld [vmem:[%s1940_s25 + $0x70] sm:$0xff]  ;;  %v2020_v36 = vsel %vm211_vm0, %v227_v24, %v228_v25  ;;  %v221_v39 = vrot.slane %v2012_v34, 1  ;;  %v2028_v40 = vld [vmem:[%s1940_s25 + $0x78] sm:$0x3]  ;;  %v2033_v41 = vsel %vm211_vm0, %v218_v28, %v219_v31  ;;  %v222_v42 = vrot.slane %v2024_v38, 1  ;;  %v1493_v55 = vld [vmem:[%s2377_s1 + $0x40] sm:$0xff] }
  0x16   : > { %1698 = vmatmul.mubr.msk.f32.vlgmr.msra.gmra.mxu0 %vm241_vm1, %v2004_v30  ;;  %1704 = vmatmul.mubr.msk.f32.vlgmr.msra.gmra.mxu1 %vm241_vm1, %v2020_v36  ;;  %v233_v43 = vrot.slane %v2015_v35, 1  ;;  %v234_v44 = vrot.slane %v2028_v40, 1  ;;  %v2039_v45 = vsel %vm211_vm0, %v230_v33, %v231_v37  ;;  %v485_v51 = vrot.slane %v1949_v6, 2  ;;  %v2072_v56 = vld [vmem:[%s1940_s25 + $0x90] sm:$0xff]  ;;  %v2075_v57 = vld [vmem:[%s1940_s25 + $0x98] sm:$0x3] }
  0x17   : > { %1730 = vmatpush3.msra.mxu0 %v1496_v5  ;;  %1710 = vmatpush3.msra.mxu1 %v194_v4  ;;  %v2047_v47 = vsel %vm211_vm0, %v221_v39, %v222_v42  ;;  %v489_v52 = vrot.slane %v1968_v15, 2  ;;  %v488_v54 = vrot.slane %v1965_v14, 2  ;;  %v491_v60 = vrot.slane %v1983_v22, 2  ;;  %v1520_v3 = vld [vmem:[%s2377_s1 + $0x98] sm:$0xff]  ;;  %v1519_v15 = vld [vmem:[%s2377_s1 + $0x90] sm:$0xff]  ;;  %v1506_v17 = vld [vmem:[%s2377_s1 + $0x68] sm:$0xff] }
  0x18   : > { %1731 = vmatprep.subr.mxu0 %v1495_v21  ;;  %1711 = vmatprep.subr.mxu1 %v193_v26  ;;  %v2050_v48 = vsel %vm211_vm0, %v233_v43, %v234_v44  ;;  %v487_v58 = vsel %vm484_vm2, %v485_v51, %v486_v49  ;;  %v492_v61 = vrot.slane %v1995_v27, 2  ;;  %v1133_v62 = vrot.slane %v2072_v56, 1  ;;  %v1518_v25 = vld [vmem:[%s2377_s1 + $0x88] sm:$0xff]  ;;  %v1505_v27 = vld [vmem:[%s2377_s1 + $0x60] sm:$0xff]  ;;  %v1544_v33 = vld [vmem:[%s2377_s1 + $0xd8] sm:$0xff] }
  0x19   : > { %1700 = vmatprep.mubr.msk.f32.mxu0 %vm241_vm1, %v2033_v41  ;;  %1712 = vmatpush3.msra.mxu1 %v193_v26  ;;  %v2085_v63 = vsel %vm484_vm2, %v488_v54, %v489_v52  ;;  %v494_v0 = vrot.slane %v2012_v34, 2  ;;  %v495_v1 = vrot.slane %v2024_v38, 2  ;;  %v1134_v2 = vrot.slane %v2075_v57, 1  ;;  %v1517_v31 = vld [vmem:[%s2377_s1 + $0x80] sm:$0xff]  ;;  %v1531_v37 = vld [vmem:[%s2377_s1 + $0xb0] sm:$0xff]  ;;  %v1530_v39 = vld [vmem:[%s2377_s1 + $0xa8] sm:$0xff] }
  0x1a   : > { %1706 = vmatprep.mubr.msk.f32.mxu1 %vm241_vm1, %v2039_v45  ;;  %1713 = vmatprep.subr.mxu1 %v192_v46  ;;  %v2104_v5 = vsel %vm484_vm2, %v491_v60, %v492_v61  ;;  %v497_v7 = vrot.slane %v1955_v8, 2  ;;  %v498_v9 = vrot.slane %v1960_v11, 2  ;;  %v500_v12 = vrot.slane %v1971_v16, 2  ;;  %v2197_v38 = vld [vmem:[%s1940_s25 + $0x88] sm:$0x3]  ;;  %v1529_v44 = vld [vmem:[%s2377_s1 + $0xa0] sm:$0xff] }
  0x1b   : > { %1732 = vmatpush3.msra.mxu0 %v1495_v21  ;;  %1707 = vmatmul.mubr.msk.f32.gmra.mxu1 %vm241_vm1, %v2050_v48  ;;  %v2097_v4 = vsel %vm211_vm0, %v1133_v62, %v1134_v2  ;;  %v2112_v10 = vsel %vm484_vm2, %v494_v0, %v495_v1  ;;  %v501_v13 = vrot.slane %v1977_v20, 2  ;;  %v503_v18 = vrot.slane %v1999_v29, 2  ;;  %v1542_v43 = vld [vmem:[%s2377_s1 + $0xc8] sm:$0xff]  ;;  %v1541_v49 = vld [vmem:[%s2377_s1 + $0xc0] sm:$0xff]  ;;  %v1568_v51 = vld [vmem:[%s2377_s1 + $0x118] sm:$0xff] }
  0x1c   : > { %1701 = vmatmul.mubr.msk.f32.gmra.mxu0 %vm241_vm1, %v2047_v47  ;;  %1714 = vmatpush3.msra.mxu1 %v192_v46  ;;  %v2128_v11 = vsel %vm484_vm2, %v497_v7, %v498_v9  ;;  %v504_v19 = vrot.slane %v2008_v32, 2  ;;  %v506_v21 = vrot.slane %v2015_v35, 2  ;;  %v507_v24 = vrot.slane %v2028_v40, 2  ;;  %v1532_v32 = vld [vmem:[%s2377_s1 + $0xb8] sm:$0xff]  ;;  %v1555_v52 = vld [vmem:[%s2377_s1 + $0xf0] sm:$0xff] }
  0x1d   : > { %1733 = vmatprep.subr.mxu0 %v1494_v50  ;;  %1715 = vmatprep.subr.mxu1 %v191_v53  ;;  %v2136_v20 = vsel %vm484_vm2, %v500_v12, %v501_v13  ;;  %v766_v42 = vrot.slane %v2197_v38, 1  ;;  %v889_v54 = vrot.slane %v2197_v38, 2 }
  0x1e   : > { %1734 = vmatpush3.msra.mxu0 %v1494_v50  ;;  %1716 = vmatpush3.msra.mxu1 %v191_v53  ;;  %v2152_v26 = vsel %vm484_vm2, %v503_v18, %v504_v19  ;;  %v2158_v28 = vsel %vm484_vm2, %v506_v21, %v507_v24  ;;  %v1556_v50 = vld [vmem:[%s2377_s1 + $0xf8] sm:$0xff] }
  0x1f   : > { %1735 = vmatprep.subr.mxu0 %v1493_v55  ;;  %1717 = vmatprep.mubr.msk.f32.mxu1 %vm241_vm1, %v1949_v6  ;;  %v1507_v6 = vld [vmem:[%s2377_s1 + $0x70] sm:$0xff] }
  0x20   : > { %1736 = vmatpush3.msra.mxu0 %v1493_v55  ;;  %1737 = vmatprep.mubr.msk.f32.mxu0 %vm241_vm1, %v487_v58 }
  0x21   : > { %1749 = vmatprep.subr.mxu1 %v1508_v59  ;;  %1718 = vmatmul.mubr.msk.f32.vlgmr.msra.gmra.mxu1 %vm241_vm1, %v1965_v14 }
  0x22   : > { %1738 = vmatmul.mubr.msk.f32.vlgmr.msra.gmra.mxu0 %vm241_vm1, %v2085_v63  ;;  %1750 = vmatpush3.msra.mxu1 %v1508_v59 }
  0x23   : > { %1769 = vmatprep.subr.mxu0 %v1520_v3  ;;  %1720 = vmatprep.mubr.msk.f32.mxu1 %vm241_vm1, %v1983_v22 }
  0x24   : > { %1770 = vmatpush3.msra.mxu0 %v1520_v3  ;;  %1740 = vmatprep.mubr.msk.f32.mxu0 %vm241_vm1, %v2104_v5 }
  0x25   : > { %1751 = vmatprep.subr.mxu1 %v1507_v6  ;;  %1721 = vmatmul.mubr.msk.f32.gmra.mxu1 %vm241_vm1, %v2012_v34 }
  0x26   : > { %1741 = vmatmul.mubr.msk.f32.gmra.mxu0 %vm241_vm1, %v2112_v10  ;;  %1752 = vmatpush3.msra.mxu1 %v1507_v6 }
  0x27   : > { %1771 = vmatprep.subr.mxu0 %v1519_v15  ;;  %1723 = vmatprep.mubr.msk.f32.mxu1 %vm241_vm1, %v1955_v8 }
  0x28   : > { %1772 = vmatpush3.msra.mxu0 %v1519_v15  ;;  %1743 = vmatprep.mubr.msk.f32.mxu0 %vm241_vm1, %v2128_v11 }
  0x29   : > { %1753 = vmatprep.subr.mxu1 %v1506_v17  ;;  %1724 = vmatmul.mubr.msk.f32.gmra.mxu1 %vm241_vm1, %v1971_v16 }
  0x2a   : > { %1744 = vmatmul.mubr.msk.f32.gmra.mxu0 %vm241_vm1, %v2136_v20  ;;  %1754 = vmatpush3.msra.mxu1 %v1506_v17 }
  0x2b   : > { %1773 = vmatprep.subr.mxu0 %v1518_v25  ;;  %1726 = vmatprep.mubr.msk.f32.mxu1 %vm241_vm1, %v1999_v29 }
  0x2c   : > { %1774 = vmatpush3.msra.mxu0 %v1518_v25  ;;  %1746 = vmatprep.mubr.msk.f32.mxu0 %vm241_vm1, %v2152_v26 }
  0x2d   : > { %1755 = vmatprep.subr.mxu1 %v1505_v27  ;;  %1727 = vmatmul.mubr.msk.f32.gmra.mxu1 %vm241_vm1, %v2015_v35 }
  0x2e   : > { %1747 = vmatmul.mubr.msk.f32.gmra.mxu0 %vm241_vm1, %v2158_v28  ;;  %1756 = vmatpush3.msra.mxu1 %v1505_v27 }
  0x2f   : > { %1775 = vmatprep.subr.mxu0 %v1517_v31  ;;  %1757 = vmatprep.mubr.msk.f32.mxu1 %vm241_vm1, %v1965_v14  ;;  %v1543_v14 = vld [vmem:[%s2377_s1 + $0xd0] sm:$0xff] }
  0x30   : > { %1776 = vmatpush3.msra.mxu0 %v1517_v31  ;;  %1777 = vmatprep.mubr.msk.f32.mxu0 %vm241_vm1, %v2004_v30  ;;  %v2194_v30 = vld [vmem:[%s1940_s25 + $0x80] sm:$0xff] }
  0x31   : > { %1789 = vmatprep.subr.mxu1 %v1532_v32  ;;  %1758 = vmatmul.mubr.msk.f32.vlgmr.msra.gmra.mxu1 %vm241_vm1, %v1983_v22  ;;  %v765_v40 = vrot.slane %v2194_v30, 1  ;;  %v888_v53 = vrot.slane %v2194_v30, 2 }
  0x32   : > { %1778 = vmatmul.mubr.msk.f32.vlgmr.msra.gmra.mxu0 %vm241_vm1, %v2033_v41  ;;  %1790 = vmatpush3.msra.mxu1 %v1532_v32 }
  0x33   : > { %1809 = vmatprep.subr.mxu0 %v1544_v33  ;;  %1760 = vmatprep.mubr.msk.f32.mxu1 %vm241_vm1, %v2012_v34  ;;  %v2225_v46 = vsel %vm211_vm0, %v765_v40, %v766_v42  ;;  %v890_v55 = vsel %vm484_vm2, %v888_v53, %v889_v54 }
  0x34   : > { %1810 = vmatpush3.msra.mxu0 %v1544_v33  ;;  %1780 = vmatprep.mubr.msk.f32.mxu0 %vm241_vm1, %v2047_v47 }
  0x35   : > { %1791 = vmatprep.subr.mxu1 %v1531_v37  ;;  %1761 = vmatmul.mubr.msk.f32.gmra.mxu1 %vm241_vm1, %v1955_v8 }
  0x36   : > { %1781 = vmatmul.mubr.msk.f32.gmra.mxu0 %vm241_vm1, %v1987_v23  ;;  %1792 = vmatpush3.msra.mxu1 %v1531_v37 }
  0x37   : > { %1811 = vmatprep.subr.mxu0 %v1543_v14  ;;  %1763 = vmatprep.mubr.msk.f32.mxu1 %vm241_vm1, %v1971_v16 }
  0x38   : > { %1812 = vmatpush3.msra.mxu0 %v1543_v14  ;;  %1783 = vmatprep.mubr.msk.f32.mxu0 %vm241_vm1, %v2020_v36 }
  0x39   : > { %1793 = vmatprep.subr.mxu1 %v1530_v39  ;;  %1764 = vmatmul.mubr.msk.f32.gmra.mxu1 %vm241_vm1, %v1999_v29 }
  0x3a   : > { %1784 = vmatmul.mubr.msk.f32.gmra.mxu0 %vm241_vm1, %v2039_v45  ;;  %1794 = vmatpush3.msra.mxu1 %v1530_v39 }
  0x3b   : > { %1813 = vmatprep.subr.mxu0 %v1542_v43  ;;  %1766 = vmatprep.mubr.msk.f32.mxu1 %vm241_vm1, %v2015_v35 }
  0x3c   : > { %1814 = vmatpush3.msra.mxu0 %v1542_v43  ;;  %1786 = vmatprep.mubr.msk.f32.mxu0 %vm241_vm1, %v2050_v48 }
  0x3d   : > { %1795 = vmatprep.subr.mxu1 %v1529_v44  ;;  %1767 = vmatmul.mubr.msk.f32.gmra.mxu1 %vm241_vm1, %v2194_v30 }
  0x3e   : > { %1787 = vmatmul.mubr.msk.f32.gmra.mxu0 %vm241_vm1, %v2225_v46  ;;  %1796 = vmatpush3.msra.mxu1 %v1529_v44 }
  0x3f   : > { %1815 = vmatprep.subr.mxu0 %v1541_v49  ;;  %1797 = vmatprep.mubr.msk.f32.mxu1 %vm241_vm1, %v2085_v63 }
  0x40   : > { %1816 = vmatpush3.msra.mxu0 %v1541_v49  ;;  %1817 = vmatprep.mubr.msk.f32.mxu0 %vm241_vm1, %v1983_v22  ;;  %v1567_v22 = vld [vmem:[%s2377_s1 + $0x110] sm:$0xff] }
  0x41   : > { %1829 = vmatprep.subr.mxu1 %v1556_v50  ;;  %1798 = vmatmul.mubr.msk.f32.vlgmr.msra.gmra.mxu1 %vm241_vm1, %v2104_v5 }
  0x42   : > { %1818 = vmatmul.mubr.msk.f32.vlgmr.msra.gmra.mxu0 %vm241_vm1, %v2012_v34  ;;  %1830 = vmatpush3.msra.mxu1 %v1556_v50  ;;  %v1554_v34 = vld [vmem:[%s2377_s1 + $0xe8] sm:$0xff] }
  0x43   : > { %1849 = vmatprep.subr.mxu0 %v1568_v51  ;;  %1800 = vmatprep.mubr.msk.f32.mxu1 %vm241_vm1, %v2112_v10 }
  0x44   : > { %1850 = vmatpush3.msra.mxu0 %v1568_v51  ;;  %1820 = vmatprep.mubr.msk.f32.mxu0 %vm241_vm1, %v1955_v8  ;;  %v1566_v8 = vld [vmem:[%s2377_s1 + $0x108] sm:$0xff] }
  0x45   : > { %1831 = vmatprep.subr.mxu1 %v1555_v52  ;;  %1801 = vmatmul.mubr.msk.f32.gmra.mxu1 %vm241_vm1, %v2128_v11 }
  0x46   : > { %1821 = vmatmul.mubr.msk.f32.gmra.mxu0 %vm241_vm1, %v1971_v16  ;;  %1832 = vmatpush3.msra.mxu1 %v1555_v52  ;;  %v1553_v16 = vld [vmem:[%s2377_s1 + $0xe0] sm:$0xff] }
  0x47   : > { %1851 = vmatprep.subr.mxu0 %v1567_v22  ;;  %1803 = vmatprep.mubr.msk.f32.mxu1 %vm241_vm1, %v2136_v20 }
  0x48   : > { %1852 = vmatpush3.msra.mxu0 %v1567_v22  ;;  %1823 = vmatprep.mubr.msk.f32.mxu0 %vm241_vm1, %v1999_v29  ;;  %v1565_v29 = vld [vmem:[%s2377_s1 + $0x100] sm:$0xff] }
  0x49   : > { %1833 = vmatprep.subr.mxu1 %v1554_v34  ;;  %1804 = vmatmul.mubr.msk.f32.gmra.mxu1 %vm241_vm1, %v2152_v26 }
  0x4a   : > { %1824 = vmatmul.mubr.msk.f32.gmra.mxu0 %vm241_vm1, %v2015_v35  ;;  %1834 = vmatpush3.msra.mxu1 %v1554_v34  ;;  %v1256_v35 = vrot.slane %v2072_v56, 2 }
  0x4b   : > { %1853 = vmatprep.subr.mxu0 %v1566_v8  ;;  %1806 = vmatprep.mubr.msk.f32.mxu1 %vm241_vm1, %v2158_v28 }
  0x4c   : > { %1854 = vmatpush3.msra.mxu0 %v1566_v8  ;;  %1826 = vmatprep.mubr.msk.f32.mxu0 %vm241_vm1, %v2194_v30 }
  0x4d   : > { %1835 = vmatprep.subr.mxu1 %v1553_v16  ;;  %1807 = vmatmul.mubr.msk.f32.gmra.mxu1 %vm241_vm1, %v890_v55 }
  0x4e   : > { %1827 = vmatmul.mubr.msk.f32.gmra.mxu0 %vm241_vm1, %v2072_v56  ;;  %1836 = vmatpush3.msra.mxu1 %v1553_v16 }
  0x4f   : > { %1855 = vmatprep.subr.mxu0 %v1565_v29  ;;  %1837 = vmatprep.mubr.msk.f32.mxu1 %vm241_vm1, %v2033_v41  ;;  %v1257_v41 = vrot.slane %v2075_v57, 2 }
  0x50   : > { %1856 = vmatpush3.msra.mxu0 %v1565_v29  ;;  %1857 = vmatprep.mubr.msk.f32.mxu0 %vm241_vm1, %v2104_v5 }
  0x51   : > { %1838 = vmatmul.mubr.msk.f32.vlgmr.msra.gmra.mxu1 %vm241_vm1, %v2047_v47 }
  0x52   : > { %1858 = vmatmul.mubr.msk.f32.vlgmr.msra.gmra.mxu0 %vm241_vm1, %v2112_v10  ;;  %1840 = vmatprep.mubr.msk.f32.mxu1 %vm241_vm1, %v1987_v23  ;;  %v1258_v23 = vsel %vm484_vm2, %v1256_v35, %v1257_v41 }
  0x53   : > { %1860 = vmatprep.mubr.msk.f32.mxu0 %vm241_vm1, %v2128_v11 }
  0x55   : > { %1841 = vmatmul.mubr.msk.f32.gmra.mxu1 %vm241_vm1, %v2020_v36 }
  0x56   : > { %1861 = vmatmul.mubr.msk.f32.gmra.mxu0 %vm241_vm1, %v2136_v20  ;;  %1843 = vmatprep.mubr.msk.f32.mxu1 %vm241_vm1, %v2039_v45 }
  0x57   : > { %1863 = vmatprep.mubr.msk.f32.mxu0 %vm241_vm1, %v2152_v26 }
  0x59   : > { %1844 = vmatmul.mubr.msk.f32.gmra.mxu1 %vm241_vm1, %v2050_v48 }
  0x5a   : > { %1864 = vmatmul.mubr.msk.f32.gmra.mxu0 %vm241_vm1, %v2158_v28  ;;  %1846 = vmatprep.mubr.msk.f32.mxu1 %vm241_vm1, %v2225_v46 }
  0x5b   : > { %1866 = vmatprep.mubr.msk.f32.mxu0 %vm241_vm1, %v890_v55 }
  0x5d   : > { %1847 = vmatmul.mubr.msk.f32.gmra.mxu1 %vm241_vm1, %v2097_v4 }
  0x5e   : > { %1867 = vmatmul.mubr.msk.f32.gmra.mxu0 %vm241_vm1, %v1258_v23 }
  0xd6   : > { %v1699_v36 = vpop.f32.mrf.mxu0  ;;  %v1705_v45 = vpop.f32.mrf.mxu1 }
  0xd8   : > { %v324_v47 = vpop.f32.mrf.mxu0  ;;  %v344_v56 = vpop.f32.mrf.mxu1 }
  0xdb   : > { %v1708_v57 = vpop.f32.mrf.mxu1 }
  0xdc   : > { %v1702_v48 = vpop.f32.mrf.mxu0 }
  0xdd   : > { %v2329_v59 = vpop.f32.mrf.mxu1 }
  0xde   : > { %v334_v58 = vpop.f32.mrf.mxu0 }
  0xe1   : > { %v1719_v60 = vpop.f32.mrf.mxu1 }
  0xe2   : > { %v1739_v61 = vpop.f32.mrf.mxu0  ;;  %v451_v14 = vadd.f32 %v1719_v60, %v1699_v36 }
  0xe3   : > { %v445_v62 = vpop.f32.mrf.mxu1 }
  0xe4   : > { %v596_v63 = vpop.f32.mrf.mxu0  ;;  %v446_v39 = vadd.f32 %v445_v62, %v324_v47  ;;  %v636_v43 = vadd.f32 %v1739_v61, %v451_v14 }
  0xe5   : > { %v1722_v0 = vpop.f32.mrf.mxu1 }
  0xe6   : > { %v1742_v1 = vpop.f32.mrf.mxu0  ;;  %v461_v44 = vadd.f32 %v1722_v0, %v1702_v48  ;;  %v635_v50 = vadd.f32 %v596_v63, %v446_v39 }
  0xe7   : > { %v455_v2 = vpop.f32.mrf.mxu1 }
  0xe8   : > { %v606_v3 = vpop.f32.mrf.mxu0  ;;  %v456_v51 = vadd.f32 %v455_v2, %v334_v58  ;;  %v638_v54 = vadd.f32 %v1742_v1, %v461_v44 }
  0xe9   : > { %v1725_v4 = vpop.f32.mrf.mxu1 }
  0xea   : > { %v1745_v5 = vpop.f32.mrf.mxu0  ;;  %v471_v22 = vadd.f32 %v1725_v4, %v1705_v45  ;;  %v637_v35 = vadd.f32 %v606_v3, %v456_v51 }
  0xeb   : > { %v465_v6 = vpop.f32.mrf.mxu1 }
  0xec   : > { %v616_v7 = vpop.f32.mrf.mxu0  ;;  %v466_v16 = vadd.f32 %v465_v6, %v344_v56  ;;  %v640_v36 = vadd.f32 %v1745_v5, %v471_v22 }
  0xed   : > { %v1728_v9 = vpop.f32.mrf.mxu1 }
  0xee   : > { %v1748_v10 = vpop.f32.mrf.mxu0  ;;  %v481_v47 = vadd.f32 %v1728_v9, %v1708_v57  ;;  %v639_v58 = vadd.f32 %v616_v7, %v466_v16 }
  0xef   : > { %v475_v12 = vpop.f32.mrf.mxu1 }
  0xf0   : > { %v626_v13 = vpop.f32.mrf.mxu0  ;;  %v476_v45 = vadd.f32 %v475_v12, %v2329_v59  ;;  %v642_v6 = vadd.f32 %v1748_v10, %v481_v47  ;;  %v2339_v10 = vld [vmem:[%s2378_s2] ss:$0 sm:$0xff] }
  0xf1   : > { %v1759_v15 = vpop.f32.mrf.mxu1 }
  0xf2   : > { %v1779_v11 = vpop.f32.mrf.mxu0  ;;  %v757_v52 = vadd.f32 %v1759_v15, %v636_v43  ;;  %v641_v9 = vadd.f32 %v626_v13, %v476_v45 }
  0xf3   : > { %v717_v17 = vpop.f32.mrf.mxu1 }
  0xf4   : > { %v841_v18 = vpop.f32.mrf.mxu0  ;;  %v756_v8 = vadd.f32 %v717_v17, %v635_v50  ;;  %v881_v41 = vadd.f32 %v1779_v11, %v757_v52 }
  0xf5   : > { %v1762_v19 = vpop.f32.mrf.mxu1 }
  0xf6   : > { %v1782_v20 = vpop.f32.mrf.mxu0  ;;  %v759_v23 = vadd.f32 %v1762_v19, %v638_v54  ;;  %v880_v61 = vadd.f32 %v841_v18, %v756_v8 }
  0xf7   : > { %v727_v21 = vpop.f32.mrf.mxu1 }
  0xf8   : > { %v851_v24 = vpop.f32.mrf.mxu0  ;;  %v758_v62 = vadd.f32 %v727_v21, %v637_v35  ;;  %v883_v4 = vadd.f32 %v1782_v20, %v759_v23 }
  0xf9   : > { %v1765_v25 = vpop.f32.mrf.mxu1 }
  0xfa   : > { %v1785_v26 = vpop.f32.mrf.mxu0  ;;  %v761_v0 = vadd.f32 %v1765_v25, %v640_v36  ;;  %v882_v17 = vadd.f32 %v851_v24, %v758_v62 }
  0xfb   : > { %v737_v27 = vpop.f32.mrf.mxu1 }
  0xfc   : > { %v861_v28 = vpop.f32.mrf.mxu0  ;;  %v760_v15 = vadd.f32 %v737_v27, %v639_v58  ;;  %v885_v18 = vadd.f32 %v1785_v26, %v761_v0 }
  0xfd   : > { %v1768_v31 = vpop.f32.mrf.mxu1 }
  0xfe   : > { %v2331_v32 = vpop.f32.mrf.mxu0  ;;  %v763_v19 = vadd.f32 %v1768_v31, %v642_v6  ;;  %v884_v25 = vadd.f32 %v861_v28, %v760_v15 }
  0xff   : > { %v747_v33 = vpop.f32.mrf.mxu1 }
 0x100   : > { %v2333_v37 = vpop.f32.mrf.mxu0  ;;  %v887_v31 = vadd.f32 %v2331_v32, %v763_v19 }
 0x101   : > { %v1799_v30 = vpop.f32.mrf.mxu1 }
 0x102   : > { %v1819_v38 = vpop.f32.mrf.mxu0  ;;  %v1004_v63 = vadd.f32 %v1799_v30, %v881_v41  ;;  %v762_v30 = vadd.f32 %v747_v33, %v641_v9 }
 0x103   : > { %v964_v40 = vpop.f32.mrf.mxu1 }
 0x104   : > { %v1085_v42 = vpop.f32.mrf.mxu0  ;;  %v1003_v56 = vadd.f32 %v964_v40, %v880_v61  ;;  %v1125_v5 = vadd.f32 %v1819_v38, %v1004_v63 }
 0x105   : > { %v1802_v46 = vpop.f32.mrf.mxu1 }
 0x106   : > { %v1822_v49 = vpop.f32.mrf.mxu0  ;;  %v1006_v57 = vadd.f32 %v1802_v46, %v883_v4  ;;  %v1124_v14 = vadd.f32 %v1085_v42, %v1003_v56  ;;  %v886_v46 = vadd.f32 %v2333_v37, %v762_v30 }
 0x107   : > { %v974_v34 = vpop.f32.mrf.mxu1 }
 0x108   : > { %v1095_v53 = vpop.f32.mrf.mxu0  ;;  %v1005_v59 = vadd.f32 %v974_v34, %v882_v17  ;;  %v1127_v38 = vadd.f32 %v1822_v49, %v1006_v57 }
 0x109   : > { %v1805_v55 = vpop.f32.mrf.mxu1 }
 0x10a   : > { %v1825_v29 = vpop.f32.mrf.mxu0  ;;  %v1008_v20 = vadd.f32 %v1805_v55, %v885_v18  ;;  %v1126_v43 = vadd.f32 %v1095_v53, %v1005_v59 }
 0x10b   : > { %v984_v60 = vpop.f32.mrf.mxu1 }
 0x10c   : > { %v1105_v48 = vpop.f32.mrf.mxu0  ;;  %v1007_v39 = vadd.f32 %v984_v60, %v884_v25  ;;  %v1129_v50 = vadd.f32 %v1825_v29, %v1008_v20 }
 0x10d   : > { %v1808_v2 = vpop.f32.mrf.mxu1 }
 0x10e   : > { %v1828_v1 = vpop.f32.mrf.mxu0  ;;  %v1010_v51 = vadd.f32 %v1808_v2, %v887_v31  ;;  %v1128_v54 = vadd.f32 %v1105_v48, %v1007_v39 }
 0x10f   : > { %v994_v3 = vpop.f32.mrf.mxu1 }
 0x110   : > { %v1115_v11 = vpop.f32.mrf.mxu0  ;;  %v1009_v8 = vadd.f32 %v994_v3, %v886_v46  ;;  %v1131_v23 = vadd.f32 %v1828_v1, %v1010_v51 }
 0x111   : > { %v1839_v21 = vpop.f32.mrf.mxu1 }
 0x112   : > { %v1859_v7 = vpop.f32.mrf.mxu0  ;;  %v1249_v12 = vadd.f32 %v1839_v21, %v1125_v5  ;;  %v1130_v63 = vadd.f32 %v1115_v11, %v1009_v8 }
 0x113   : > { %v1209_v24 = vpop.f32.mrf.mxu1 }
 0x114   : > { %v1332_v27 = vpop.f32.mrf.mxu0  ;;  %v1372_v13 = vadd.f32 %v1859_v7, %v1249_v12  ;;  %v1248_v26 = vadd.f32 %v1209_v24, %v1124_v14 }
 0x115   : > { %v1842_v40 = vpop.f32.mrf.mxu1 }
 0x116   : > { %v1862_v42 = vpop.f32.mrf.mxu0  ;;  %v1387_v28 = vadd.f32 %v2339_v10, %v1372_v13  ;;  %v1371_v33 = vadd.f32 %v1332_v27, %v1248_v26  ;;  %v1251_v44 = vadd.f32 %v1842_v40, %v1127_v38 }
 0x117   : > { %v1219_v49 = vpop.f32.mrf.mxu1 }
 0x118   : > { %v1342_v32 = vpop.f32.mrf.mxu0  ;;  %v1395_v52 = vmax.f32 %v1387_v28, 0.0  ;;  %v1386_v22 = vadd.f32 %v2339_v10, %v1371_v33  ;;  %v1374_v34 = vadd.f32 %v1862_v42, %v1251_v44  ;;  %v1250_v53 = vadd.f32 %v1219_v49, %v1126_v43 }
 0x119   : > { %v1845_v16 = vpop.f32.mrf.mxu1 }
 0x11a   : > { %v1865_v37 = vpop.f32.mrf.mxu0  ;;  %1403 = vst.msk [vmem:[%s2348_s13 + $0x8] sm:$0xff] %vm241_vm1, %v1395_v52  ;;  %v1394_v55 = vmax.f32 %v1386_v22, 0.0  ;;  %v1389_v29 = vadd.f32 %v2339_v10, %v1374_v34  ;;  %v1373_v35 = vadd.f32 %v1342_v32, %v1250_v53  ;;  %v1253_v41 = vadd.f32 %v1845_v16, %v1129_v50 }
 0x11b   : > { %v1229_v36 = vpop.f32.mrf.mxu1 }
 0x11c   : > { %v1352_v47 = vpop.f32.mrf.mxu0  ;;  %1402 = vst.msk [vmem:[%s2348_s13] sm:$0xff] %vm241_vm1, %v1394_v55  ;;  %v1397_v60 = vmax.f32 %v1389_v29, 0.0  ;;  %v1388_v48 = vadd.f32 %v2339_v10, %v1373_v35  ;;  %v1376_v61 = vadd.f32 %v1865_v37, %v1253_v41  ;;  %v1252_v62 = vadd.f32 %v1229_v36, %v1128_v54 }
 0x11d   : > { %v1848_v58 = vpop.f32.mrf.mxu1 }
 0x11e   : > { %v1868_v45 = vpop.f32.mrf.mxu0  ;;  %1405 = vst.msk [vmem:[%s2348_s13 + $0x18] sm:$0xff] %vm241_vm1, %v1397_v60  ;;  %v1396_v0 = vmax.f32 %v1388_v48, 0.0  ;;  %v1391_v2 = vadd.f32 %v2339_v10, %v1376_v61  ;;  %v1375_v1 = vadd.f32 %v1352_v47, %v1252_v62  ;;  %v1255_v4 = vadd.f32 %v1848_v58, %v1131_v23 }
 0x11f   : > { %v1239_v56 = vpop.f32.mrf.mxu1 }
 0x120   : > { %1404 = vst.msk [vmem:[%s2348_s13 + $0x10] sm:$0xff] %vm241_vm1, %v1396_v0  ;;  %v1399_v6 = vmax.f32 %v1391_v2, 0.0  ;;  %v1390_v15 = vadd.f32 %v2339_v10, %v1375_v1  ;;  %v1378_v3 = vadd.f32 %v1868_v45, %v1255_v4  ;;  %v1254_v11 = vadd.f32 %v1239_v56, %v1130_v63  ;;  %v1362_v17 = vpop.f32.mrf.mxu0 }
 0x122   : > { %1407 = vst.msk [vmem:[%s2348_s13 + $0x28] sm:$0xff] %vm241_vm1, %v1399_v6  ;;  %v1398_v5 = vmax.f32 %v1390_v15, 0.0  ;;  %v1393_v57 = vadd.f32 %v2339_v10, %v1378_v3  ;;  %v1377_v9 = vadd.f32 %v1362_v17, %v1254_v11 }
 0x124   : > { %1406 = vst.msk [vmem:[%s2348_s13 + $0x20] sm:$0xff] %vm241_vm1, %v1398_v5  ;;  %v1401_v18 = vmax.f32 %v1393_v57, 0.0  ;;  %v1392_v19 = vadd.f32 %v2339_v10, %v1377_v9 }
 0x126   : > { %1409 = vst.msk [vmem:[%s2348_s13 + $0x38] sm:$0xff] %vm241_vm1, %v1401_v18  ;;  %v1400_v21 = vmax.f32 %v1392_v19, 0.0 }
 0x128   : > { %1408 = vst.msk [vmem:[%s2348_s13 + $0x30] sm:$0xff] %vm241_vm1, %v1400_v21 }
 0x129 PF: > { %s13_s12 = sadd.s32 1, %s1892_s12  }
 0x12a   : > { %p10_p4 = scmp.ge.s32.totalorder %s13_s12, 4  }
 0x12c   :  { %12 = sbr.rel (!%p10_p4) target bundleno = 1 (0x1), region = 70 }

// kernel: projector_forward.4
= control target key start
LH: loop header
LB: loop body
LE: loop exit
PB: predicated region body
PF: predicated region fallthrough
CT: control target
= control target key end

     0   :  { %s4840_s18 = smov 0   ;;  %s6782_s0 = inlined_call_operand.vmem [shape: f32[2,18,18,32], index: 0, kind: input, shape index: {}]   ;;  %s6783_s1 = inlined_call_operand.vmem [shape: f32[9,32,16], index: 1, kind: input, shape index: {}]   ;;  %s6784_s2 = inlined_call_operand.vmem [shape: f32[1,16], index: 2, kind: input, shape index: {}]   ;;  %s6785_s3 = inlined_call_operand.vmem [shape: f32[16,16], index: 3, kind: input, shape index: {}]   ;;  %s6786_s4 = inlined_call_operand.vmem [shape: f32[1,16], index: 4, kind: input, shape index: {}]   ;;  %s6787_s5 = inlined_call_operand.vmem [shape: f32[2,16,16,16], index: 5, kind: output, shape index: {}]  }
   0x1 LB: > { %s3514_s19 = sadd.s32 4294967295, %s4808_s18   ;;  %p3518_p0 = scmp.ge.s32.totalorder %s4808_s18, 1  ;;  %s4808_s18 = sphi %s4840_s18, %s15_s18  }
   0x2   : > { %p187_p1 = scmp.lt.s32.totalorder %s4808_s18, 3 }
   0x4   : > { %p188_p2 = pnand %p3518_p0, %p187_p1 }
   0x6   : > { %191 = sbr.rel (%p188_p2) target bundleno = 740 (0x2e4), region = 40 }
   0xb   : > { %v3525_v0 = vld [vmem:[%s6783_s1 + $0x38] sm:$0xff]  ;;  %v3524_v2 = vld [vmem:[%s6783_s1 + $0x30] sm:$0xff]  ;;  %p215_p3 = scmp.lt.s32.totalorder %s3514_s19, 1  ;;  %v3523_v4 = vld [vmem:[%s6783_s1 + $0x28] sm:$0xff]  ;;  %vm417_vm0 = vcmask 261120   ;;  %vm331_vm1 = vcmask 1046528  }
   0xc   : > { %v282_v1 = vld [vmem:[%s6783_s1 + $0x18] sm:$0xff]  ;;  %4237 = vmatprep.subr.mxu0 %v3525_v0  ;;  %v281_v3 = vld [vmem:[%s6783_s1 + $0x10] sm:$0xff]  ;;  %v280_v5 = vld [vmem:[%s6783_s1 + $0x8] sm:$0xff]  ;;  %vm996_vm2 = vcmask 1045504   ;;  %vm3105_vm3 = vcmask 130048  }
   0xd   : > { %4293 = vmatprep.subr.mxu1 %v282_v1  ;;  %4238 = vmatpush3.msra.mxu0 %v3525_v0  ;;  %s7100_s19 = smov (!%p215_p3, %s3514_s19), 1  ;;  %v3522_v6 = vld [vmem:[%s6783_s1 + $0x20] sm:$0xff]  ;;  %v3593_v8 = vld [vmem:[%s6783_s1 + $0x58] sm:$0xff]  ;;  %v3592_v32 = vld [vmem:[%s6783_s1 + $0x50] sm:$0xff] }
   0xe   : > { %4294 = vmatpush3.msra.mxu1 %v282_v1  ;;  %4239 = vmatprep.subr.mxu0 %v3524_v2  ;;  %v279_v7 = vld [vmem:[%s6783_s1] sm:$0xff]  ;;  %s4793_s11 = smul.u32 432, %s7100_s19  ;;  %v3629_v9 = vld [vmem:[%s6783_s1 + $0x78] sm:$0xff]  ;;  %v3591_v35 = vld [vmem:[%s6783_s1 + $0x48] sm:$0xff]  ;;  %s3878_s9 = sshll.u32 %s7100_s19, 8 }
   0xf   : > { %4295 = vmatprep.subr.mxu1 %v281_v3  ;;  %4240 = vmatpush3.msra.mxu0 %v3524_v2  ;;  %v3590_v42 = vld [vmem:[%s6783_s1 + $0x40] sm:$0xff]  ;;  %v3628_v45 = vld [vmem:[%s6783_s1 + $0x70] sm:$0xff]  ;;  %v3627_v52 = vld [vmem:[%s6783_s1 + $0x68] sm:$0xff]  ;;  %s6681_s15 = scalar_lea.vmem %s6787_s5, %s3878_s9 }
  0x10   : > { %4296 = vmatpush3.msra.mxu1 %v281_v3  ;;  %4241 = vmatprep.subr.mxu0 %v3523_v4  ;;  %s4878_s14 = scalar_lea.vmem %s6782_s0, %s4793_s11  ;;  %v5016_v55 = vld [vmem:[%s6783_s1 + $0x98] sm:$0xff]  ;;  %v3626_v60 = vld [vmem:[%s6783_s1 + $0x60] sm:$0xff] }
  0x11   : > { %4297 = vmatprep.subr.mxu1 %v280_v5  ;;  %4242 = vmatpush3.msra.mxu0 %v3523_v4  ;;  %v4887_v10 = vld [vmem:[%s4878_s14] sm:$0xff]  ;;  %v4890_v11 = vld [vmem:[%s4878_s14 + $0x8] sm:$0xff]  ;;  %v4893_v12 = vld [vmem:[%s4878_s14 + $0x10] sm:$0x3] }
  0x12   : > { %4298 = vmatpush3.msra.mxu1 %v280_v5  ;;  %4243 = vmatprep.subr.mxu0 %v3522_v6  ;;  %v332_v13 = vrot.slane %v4887_v10, 1  ;;  %v333_v14 = vrot.slane %v4890_v11, 1  ;;  %v335_v15 = vrot.slane %v4893_v12, 1  ;;  %v4899_v16 = vld [vmem:[%s4878_s14 + $0x18] sm:$0xff]  ;;  %v4902_v17 = vld [vmem:[%s4878_s14 + $0x20] sm:$0xff]  ;;  %v4912_v21 = vld [vmem:[%s4878_s14 + $0x30] sm:$0xff] }
  0x13   : > { %4299 = vmatprep.subr.mxu1 %v279_v7  ;;  %4244 = vmatpush3.msra.mxu0 %v3522_v6  ;;  %v337_v18 = vrot.slane %v4899_v16, 1  ;;  %v338_v19 = vrot.slane %v4902_v17, 1  ;;  %v4909_v20 = vld [vmem:[%s4878_s14 + $0x28] sm:$0x3]  ;;  %v4915_v22 = vld [vmem:[%s4878_s14 + $0x38] sm:$0xff]  ;;  %v342_v26 = vrot.slane %v4912_v21, 1 }
  0x14   : > { %4300 = vmatpush3.msra.mxu1 %v279_v7  ;;  %4301 = vmatprep.mubr.msk.f32.mxu1 %vm417_vm0, %v4887_v10  ;;  %v334_v23 = vsel %vm331_vm1, %v332_v13, %v333_v14  ;;  %v336_v24 = vsel %vm331_vm1, %v333_v14, %v335_v15  ;;  %v340_v25 = vrot.slane %v4909_v20, 1  ;;  %v4924_v27 = vld [vmem:[%s4878_s14 + $0x40] sm:$0x3]  ;;  %v343_v29 = vrot.slane %v4915_v22, 1  ;;  %v4934_v30 = vld [vmem:[%s4878_s14 + $0x48] sm:$0xff]  ;;  %v4937_v31 = vld [vmem:[%s4878_s14 + $0x50] sm:$0xff] }
  0x15   : > { %4349 = vmatprep.subr.mxu0 %v3593_v8  ;;  %4302 = vmatmul.mubr.msk.f32.vlgmr.msra.gmra.mxu1 %vm417_vm0, %v4890_v11  ;;  %v4928_v28 = vsel %vm331_vm1, %v337_v18, %v338_v19  ;;  %v345_v34 = vrot.slane %v4924_v27, 1  ;;  %v347_v37 = vrot.slane %v4934_v30, 1  ;;  %v348_v38 = vrot.slane %v4937_v31, 1  ;;  %v4960_v39 = vld [vmem:[%s4878_s14 + $0x58] sm:$0x3]  ;;  %v4965_v40 = vld [vmem:[%s4878_s14 + $0x60] sm:$0xff] }
  0x16   : > { %4405 = vmatprep.subr.mxu1 %v3629_v9  ;;  %4245 = vmatprep.mubr.msk.f32.mxu0 %vm417_vm0, %v334_v23  ;;  %v4946_v33 = vsel %vm331_vm1, %v338_v19, %v340_v25  ;;  %v4955_v36 = vsel %vm331_vm1, %v342_v26, %v343_v29  ;;  %v4968_v41 = vld [vmem:[%s4878_s14 + $0x68] sm:$0xff]  ;;  %v350_v44 = vrot.slane %v4960_v39, 1  ;;  %v352_v47 = vrot.slane %v4965_v40, 1  ;;  %v4992_v49 = vld [vmem:[%s4878_s14 + $0x70] sm:$0x3]  ;;  %v4997_v50 = vld [vmem:[%s4878_s14 + $0x78] sm:$0xff] }
  0x17   : > { %4304 = vmatprep.mubr.msk.f32.mxu1 %vm417_vm0, %v4899_v16  ;;  %4246 = vmatmul.mubr.msk.f32.vlgmr.msra.gmra.mxu0 %vm417_vm0, %v336_v24  ;;  %6867 = vst [vmem:[#allocation2_spill] sm:$0xff] %v4955_v36  ;;  %v4978_v43 = vsel %vm331_vm1, %v343_v29, %v345_v34  ;;  %v4987_v46 = vsel %vm331_vm1, %v347_v37, %v348_v38  ;;  %v353_v48 = vrot.slane %v4968_v41, 1  ;;  %6870 = vst [vmem:[#allocation5_spill] sm:$0xff] %v4997_v50  ;;  %v5000_v51 = vld [vmem:[%s4878_s14 + $0x80] sm:$0xff]  ;;  %v5026_v59 = vld [vmem:[%s4878_s14 + $0x88] sm:$0x3] }
  0x18   : > { %4406 = vmatpush3.msra.mxu1 %v3629_v9  ;;  %4350 = vmatpush3.msra.mxu0 %v3593_v8  ;;  %6868 = vst [vmem:[#allocation3_spill] sm:$0xff] %v4978_v43  ;;  %6869 = vst [vmem:[#allocation4_spill] sm:$0xff] %v4987_v46  ;;  %v5010_v53 = vsel %vm331_vm1, %v348_v38, %v350_v44  ;;  %v355_v54 = vrot.slane %v4992_v49, 1  ;;  %v357_v57 = vrot.slane %v4997_v50, 1  ;;  %v358_v58 = vrot.slane %v5000_v51, 1  ;;  %v5034_v61 = vld [vmem:[%s4878_s14 + $0x90] sm:$0xff] }
  0x19   : > { %4248 = vmatprep.mubr.msk.f32.mxu0 %vm417_vm0, %v4928_v28  ;;  %4305 = vmatmul.mubr.msk.f32.gmra.mxu1 %vm417_vm0, %v4902_v17  ;;  %6871 = vst [vmem:[#allocation6_spill] sm:$0xff] %v5010_v53  ;;  %v5021_v56 = vsel %vm331_vm1, %v352_v47, %v353_v48  ;;  %v5037_v62 = vld [vmem:[%s4878_s14 + $0x98] sm:$0xff]  ;;  %v360_v0 = vrot.slane %v5026_v59, 1  ;;  %v362_v3 = vrot.slane %v5034_v61, 1  ;;  %v5061_v5 = vld [vmem:[%s4878_s14 + $0xa0] sm:$0x3] }
  0x1a   : > { %4351 = vmatprep.subr.mxu0 %v3592_v32  ;;  %4307 = vmatprep.mubr.msk.f32.mxu1 %vm417_vm0, %v4912_v21  ;;  %6872 = vst [vmem:[#allocation7_spill] sm:$0xff] %v5021_v56  ;;  %v5045_v63 = vsel %vm331_vm1, %v353_v48, %v355_v54  ;;  %v5051_v1 = vld [vmem:[%s6783_s1 + $0xb8] sm:$0xff]  ;;  %v5056_v2 = vsel %vm331_vm1, %v357_v57, %v358_v58  ;;  %v363_v4 = vrot.slane %v5037_v62, 1  ;;  %v5066_v6 = vld [vmem:[%s4878_s14 + $0xa8] sm:$0xff]  ;;  %v5069_v7 = vld [vmem:[%s4878_s14 + $0xb0] sm:$0xff]  ;;  %v1002_v8 = vrot.slane %v4899_v16, 2 }
  0x1b   : > { %4352 = vmatpush3.msra.mxu0 %v3592_v32  ;;  %4407 = vmatprep.subr.mxu1 %v3628_v45  ;;  %6873 = vst [vmem:[#allocation8_spill] sm:$0xff] %v5045_v63  ;;  %6874 = vst [vmem:[#allocation9_spill] sm:$0xff] %v5056_v2  ;;  %v5078_v9 = vsel %vm331_vm1, %v358_v58, %v360_v0  ;;  %v365_v13 = vrot.slane %v5061_v5, 1  ;;  %v1003_v14 = vrot.slane %v4902_v17, 2  ;;  %v1005_v15 = vrot.slane %v4909_v20, 2  ;;  %v5096_v20 = vld [vmem:[%s4878_s14 + $0xc0] sm:$0xff] }
  0x1c   : > { %4249 = vmatmul.mubr.msk.f32.gmra.mxu0 %vm417_vm0, %v4946_v33  ;;  %4353 = vmatprep.subr.mxu0 %v3591_v35  ;;  %6875 = vst [vmem:[#allocation10_spill] sm:$0xff] %v5066_v6  ;;  %6876 = vst [vmem:[#allocation11_spill] sm:$0xff] %v5078_v9  ;;  %v5086_v18 = vsel %vm331_vm1, %v362_v3, %v363_v4  ;;  %v367_v19 = vrot.slane %v5066_v6, 1  ;;  %v368_v23 = vrot.slane %v5069_v7, 1  ;;  %v5091_v24 = vld [vmem:[%s4878_s14 + $0xb8] sm:$0x3] }
  0x1d   : > { %4251 = vmatprep.mubr.msk.f32.mxu0 %vm417_vm0, %v4955_v36  ;;  %4354 = vmatpush3.msra.mxu0 %v3591_v35  ;;  %6877 = vst [vmem:[#allocation12_spill] sm:$0xff] %v5086_v18  ;;  %6878 = vst [vmem:[#allocation13_spill] sm:$0xff] %v5096_v20  ;;  %v5099_v25 = vld [vmem:[%s4878_s14 + $0xc8] sm:$0xff]  ;;  %v5102_v26 = vsel %vm996_vm2, %v1002_v8, %v1003_v14  ;;  %v5105_v29 = vsel %vm996_vm2, %v1003_v14, %v1005_v15  ;;  %v370_v34 = vrot.slane %v5091_v24, 1  ;;  %v5128_v44 = vld [vmem:[%s4878_s14 + $0xd8] sm:$0xff] }
  0x1e   : > { %4308 = vmatmul.mubr.msk.f32.gmra.mxu1 %vm417_vm0, %v4915_v22  ;;  %4355 = vmatprep.subr.mxu0 %v3590_v42  ;;  %v5112_v32 = vsel %vm331_vm1, %v363_v4, %v365_v13  ;;  %v5118_v35 = vsel %vm331_vm1, %v367_v19, %v368_v23  ;;  %v372_v37 = vrot.slane %v5096_v20, 1  ;;  %v373_v38 = vrot.slane %v5099_v25, 1  ;;  %6881 = vst [vmem:[#allocation16_spill] sm:$0xff] %v5128_v44  ;;  %v5149_v58 = vld [vmem:[%s4878_s14 + $0xe8] sm:$0x3]  ;;  %v5157_v0 = vld [vmem:[%s4878_s14 + $0xf8] sm:$0xff] }
  0x1f   : > { %4310 = vmatprep.mubr.msk.f32.mxu1 %vm417_vm0, %v4934_v30  ;;  %4356 = vmatpush3.msra.mxu0 %v3590_v42  ;;  %6879 = vst [vmem:[#allocation14_spill] sm:$0xff] %v5112_v32  ;;  %6880 = vst [vmem:[#allocation15_spill] sm:$0xff] %v5118_v35  ;;  %v5123_v42 = vld [vmem:[%s4878_s14 + $0xd0] sm:$0x3]  ;;  %v5138_v47 = vsel %vm331_vm1, %v368_v23, %v370_v34  ;;  %v377_v54 = vrot.slane %v5128_v44, 1  ;;  %v380_v4 = vrot.slane %v5149_v58, 1 }
  0x20   : > { %4252 = vmatmul.mubr.msk.f32.gmra.mxu0 %vm417_vm0, %v4978_v43  ;;  %4408 = vmatpush3.msra.mxu1 %v3628_v45  ;;  %v5131_v45 = vld [vmem:[%s4878_s14 + $0xe0] sm:$0xff]  ;;  %6882 = vst [vmem:[#allocation17_spill] sm:$0xff] %v5138_v47  ;;  %v375_v48 = vrot.slane %v5123_v42, 1  ;;  %v383_v14 = vrot.slane %v5157_v0, 1  ;;  %v5180_v19 = vld [vmem:[%s4878_s14 + $0x108] sm:$0xff]  ;;  %v5183_v23 = vld [vmem:[%s4878_s14 + $0x110] sm:$0xff] }
  0x21   : > { %4254 = vmatprep.mubr.msk.f32.mxu0 %vm417_vm0, %v4987_v46  ;;  %4409 = vmatprep.subr.mxu1 %v3627_v52  ;;  %v378_v57 = vrot.slane %v5131_v45, 1  ;;  %v5175_v15 = vld [vmem:[%s4878_s14 + $0x100] sm:$0x3]  ;;  %6887 = vst [vmem:[#allocation22_spill] sm:$0xff] %v5180_v19  ;;  %v5305_v36 = vld [vmem:[%s4878_s14 + $0x178] sm:$0x3] }
  0x22   : > { %4311 = vmatmul.mubr.msk.f32.gmra.mxu1 %vm417_vm0, %v4937_v31  ;;  %4461 = vmatprep.subr.mxu0 %v5016_v55  ;;  %v5164_v3 = vsel %vm331_vm1, %v373_v38, %v375_v48  ;;  %v387_v48 = vrot.slane %v5180_v19, 1 }
  0x23   : > { %4313 = vmatprep.mubr.msk.f32.mxu1 %vm417_vm0, %v4965_v40  ;;  %4410 = vmatpush3.msra.mxu1 %v3627_v52  ;;  %v5144_v52 = vsel %vm331_vm1, %v372_v37, %v373_v38  ;;  %6885 = vst [vmem:[#allocation20_spill] sm:$0xff] %v5164_v3  ;;  %v5170_v8 = vsel %vm331_vm1, %v377_v54, %v378_v57  ;;  %v385_v37 = vrot.slane %v5175_v15, 1  ;;  %v388_v54 = vrot.slane %v5183_v23, 1 }
  0x24   : > { %4255 = vmatmul.mubr.msk.f32.gmra.mxu0 %vm417_vm0, %v5010_v53  ;;  %4411 = vmatprep.subr.mxu1 %v3626_v60  ;;  %6883 = vst [vmem:[#allocation18_spill] sm:$0xff] %v5144_v52  ;;  %6886 = vst [vmem:[#allocation21_spill] sm:$0xff] %v5170_v8  ;;  %v5190_v34 = vsel %vm331_vm1, %v378_v57, %v380_v4  ;;  %v5206_v57 = vld [vmem:[%s4878_s14 + $0x120] sm:$0xff]  ;;  %v5209_v4 = vld [vmem:[%s4878_s14 + $0x128] sm:$0xff] }
  0x25   : > { %4257 = vmatprep.mubr.msk.f32.mxu0 %vm417_vm0, %v5021_v56  ;;  %4412 = vmatpush3.msra.mxu1 %v3626_v60  ;;  %v5154_v60 = vld [vmem:[%s4878_s14 + $0xf0] sm:$0xff]  ;;  %6888 = vst [vmem:[#allocation23_spill] sm:$0xff] %v5190_v34  ;;  %6890 = vst [vmem:[#allocation25_spill] sm:$0xff] %v5206_v57 }
  0x26   : > { %4314 = vmatmul.mubr.msk.f32.gmra.mxu1 %vm417_vm0, %v4968_v41  ;;  %4517 = vmatprep.subr.mxu1 %v5051_v1  ;;  %6884 = vst [vmem:[#allocation19_spill] sm:$0xff] %v5154_v60  ;;  %v382_v13 = vrot.slane %v5154_v60, 1 }
  0x27   : > { %4316 = vmatprep.mubr.msk.f32.mxu1 %vm417_vm0, %v4997_v50 }
  0x28   : > { %4258 = vmatmul.mubr.msk.f32.gmra.mxu0 %vm417_vm0, %v5045_v63  ;;  %v5196_v38 = vsel %vm331_vm1, %v382_v13, %v383_v14  ;;  %v5216_v13 = vsel %vm331_vm1, %v383_v14, %v385_v37  ;;  %v5232_v14 = vld [vmem:[%s4878_s14 + $0x138] sm:$0xff]  ;;  %v5235_v37 = vld [vmem:[%s4878_s14 + $0x140] sm:$0xff] }
  0x29   : > { %4260 = vmatprep.mubr.msk.f32.mxu0 %vm417_vm0, %v5056_v2  ;;  %6889 = vst [vmem:[#allocation24_spill] sm:$0xff] %v5196_v38  ;;  %6891 = vst [vmem:[#allocation26_spill] sm:$0xff] %v5216_v13 }
  0x2a   : > { %4317 = vmatmul.mubr.msk.f32.gmra.mxu1 %vm417_vm0, %v5000_v51  ;;  %6893 = vst [vmem:[#allocation28_spill] sm:$0xff] %v5232_v14 }
  0x2b   : > { %4319 = vmatprep.mubr.msk.f32.mxu1 %vm417_vm0, %v5034_v61 }
  0x2c   : > { %4261 = vmatmul.mubr.msk.f32.gmra.mxu0 %vm417_vm0, %v5078_v9  ;;  %v5253_v9 = vld [vmem:[%s4878_s14 + $0x148] sm:$0x3] }
  0x2d   : > { %4263 = vmatprep.mubr.msk.f32.mxu0 %vm417_vm0, %v5086_v18  ;;  %v397_v18 = vrot.slane %v5232_v14, 1 }
  0x2e   : > { %4320 = vmatmul.mubr.msk.f32.gmra.mxu1 %vm417_vm0, %v5037_v62 }
  0x2f   : > { %4322 = vmatprep.mubr.msk.f32.mxu1 %vm417_vm0, %v5066_v6 }
  0x30   : > { %4264 = vmatmul.mubr.msk.f32.gmra.mxu0 %vm417_vm0, %v5112_v32 }
  0x31   : > { %4266 = vmatprep.mubr.msk.f32.mxu0 %vm417_vm0, %v5118_v35  ;;  %v5227_v35 = vld [vmem:[%s4878_s14 + $0x130] sm:$0x3] }
  0x32   : > { %4323 = vmatmul.mubr.msk.f32.gmra.mxu1 %vm417_vm0, %v5069_v7 }
  0x33   : > { %4325 = vmatprep.mubr.msk.f32.mxu1 %vm417_vm0, %v5096_v20 }
  0x34   : > { %4267 = vmatmul.mubr.msk.f32.gmra.mxu0 %vm417_vm0, %v5138_v47  ;;  %v392_v47 = vrot.slane %v5206_v57, 1 }
  0x35   : > { %4269 = vmatprep.mubr.msk.f32.mxu0 %vm417_vm0, %v5144_v52  ;;  %v5222_v52 = vsel %vm331_vm1, %v387_v48, %v388_v54 }
  0x36   : > { %4326 = vmatmul.mubr.msk.f32.gmra.mxu1 %vm417_vm0, %v5099_v25  ;;  %6892 = vst [vmem:[#allocation27_spill] sm:$0xff] %v5222_v52 }
  0x37   : > { %4328 = vmatprep.mubr.msk.f32.mxu1 %vm417_vm0, %v5128_v44 }
  0x38   : > { %4270 = vmatmul.mubr.msk.f32.gmra.mxu0 %vm417_vm0, %v5164_v3  ;;  %v5201_v3 = vld [vmem:[%s4878_s14 + $0x118] sm:$0x3] }
  0x39   : > { %4272 = vmatprep.mubr.msk.f32.mxu0 %vm417_vm0, %v5170_v8  ;;  %v390_v8 = vrot.slane %v5201_v3, 1 }
  0x3a   : > { %4329 = vmatmul.mubr.msk.f32.gmra.mxu1 %vm417_vm0, %v5131_v45 }
  0x3b   : > { %4331 = vmatprep.mubr.msk.f32.mxu1 %vm417_vm0, %v5154_v60  ;;  %v5242_v48 = vsel %vm331_vm1, %v388_v54, %v390_v8  ;;  %v5258_v8 = vld [vmem:[%s4878_s14 + $0x150] sm:$0xff]  ;;  %v5261_v54 = vld [vmem:[%s4878_s14 + $0x158] sm:$0xff] }
  0x3c   : > { %4273 = vmatmul.mubr.msk.f32.gmra.mxu0 %vm417_vm0, %v5190_v34  ;;  %v393_v34 = vrot.slane %v5209_v4, 1  ;;  %6894 = vst [vmem:[#allocation29_spill] sm:$0xff] %v5242_v48  ;;  %6896 = vst [vmem:[#allocation31_spill] sm:$0xff] %v5258_v8  ;;  %v402_v63 = vrot.slane %v5258_v8, 1  ;;  %v403_v56 = vrot.slane %v5261_v54, 1 }
  0x3d   : > { %4275 = vmatprep.mubr.msk.f32.mxu0 %vm417_vm0, %v5196_v38  ;;  %v395_v38 = vrot.slane %v5227_v35, 1 }
  0x3e   : > { %4332 = vmatmul.mubr.msk.f32.gmra.mxu1 %vm417_vm0, %v5157_v0  ;;  %v5248_v32 = vsel %vm331_vm1, %v392_v47, %v393_v34  ;;  %v5300_v53 = vsel %vm331_vm1, %v402_v63, %v403_v56  ;;  %v410_v63 = vrot.slane %v5305_v36, 1 }
  0x3f   : > { %4334 = vmatprep.mubr.msk.f32.mxu1 %vm417_vm0, %v5180_v19  ;;  %6895 = vst [vmem:[#allocation30_spill] sm:$0xff] %v5248_v32  ;;  %v5268_v47 = vsel %vm331_vm1, %v393_v34, %v395_v38  ;;  %v5284_v34 = vld [vmem:[%s4878_s14 + $0x168] sm:$0xff]  ;;  %v5287_v38 = vld [vmem:[%s4878_s14 + $0x170] sm:$0xff] }
  0x40   : > { %4276 = vmatmul.mubr.msk.f32.gmra.mxu0 %vm417_vm0, %v5216_v13  ;;  %v398_v13 = vrot.slane %v5235_v37, 1  ;;  %6897 = vst [vmem:[#allocation32_spill] sm:$0xff] %v5268_v47  ;;  %6899 = vst [vmem:[#allocation34_spill] sm:$0xff] %v5284_v34  ;;  %v407_v46 = vrot.slane %v5284_v34, 1  ;;  %v408_v43 = vrot.slane %v5287_v38, 1 }
  0x41   : > { %4278 = vmatprep.mubr.msk.f32.mxu0 %vm417_vm0, %v5222_v52  ;;  %v400_v52 = vrot.slane %v5253_v9, 1 }
  0x42   : > { %4335 = vmatmul.mubr.msk.f32.gmra.mxu1 %vm417_vm0, %v5183_v23  ;;  %v5274_v2 = vsel %vm331_vm1, %v397_v18, %v398_v13 }
  0x43   : > { %4337 = vmatprep.mubr.msk.f32.mxu1 %vm417_vm0, %v5206_v57  ;;  %6898 = vst [vmem:[#allocation33_spill] sm:$0xff] %v5274_v2  ;;  %v5294_v18 = vsel %vm331_vm1, %v398_v13, %v400_v52  ;;  %v5320_v13 = vsel %vm331_vm1, %v407_v46, %v408_v43  ;;  %v1008_v46 = vrot.slane %v4915_v22, 2 }
  0x44   : > { %4279 = vmatmul.mubr.msk.f32.gmra.mxu0 %vm417_vm0, %v5242_v48  ;;  %v5279_v48 = vld [vmem:[%s4878_s14 + $0x160] sm:$0x3] }
  0x45   : > { %4281 = vmatprep.mubr.msk.f32.mxu0 %vm417_vm0, %v5248_v32  ;;  %v405_v32 = vrot.slane %v5279_v48, 1 }
  0x46   : > { %4338 = vmatmul.mubr.msk.f32.gmra.mxu1 %vm417_vm0, %v5209_v4 }
  0x47   : > { %4340 = vmatprep.mubr.msk.f32.mxu1 %vm417_vm0, %v5232_v14  ;;  %v5314_v52 = vsel %vm331_vm1, %v403_v56, %v405_v32  ;;  %v1000_v56 = vrot.slane %v4893_v12, 2  ;;  %v5332_v32 = vsel %vm331_vm1, %v408_v43, %v410_v63  ;;  %v3700_v12 = vld [vmem:[%s6783_s1 + $0xb0] sm:$0xff]  ;;  %v1007_v43 = vrot.slane %v4912_v21, 2 }
  0x48   : > { %4282 = vmatmul.mubr.msk.f32.gmra.mxu0 %vm417_vm0, %v5268_v47  ;;  %v998_v47 = vrot.slane %v4890_v11, 2  ;;  %v1013_v63 = vrot.slane %v4937_v31, 2 }
  0x49   : > { %4284 = vmatprep.mubr.msk.f32.mxu0 %vm417_vm0, %v5274_v2  ;;  %v997_v2 = vrot.slane %v4887_v10, 2 }
  0x4a   : > { %4341 = vmatmul.mubr.msk.f32.gmra.mxu1 %vm417_vm0, %v5235_v37  ;;  %v1001_v11 = vsel %vm996_vm2, %v998_v47, %v1000_v56  ;;  %v1015_v56 = vrot.slane %v4960_v39, 2  ;;  %v5399_v39 = vld [vmem:[%s6783_s1 + $0xd8] sm:$0xff] }
  0x4b   : > { %4343 = vmatprep.mubr.msk.f32.mxu1 %vm417_vm0, %v5258_v8  ;;  %v999_v10 = vsel %vm996_vm2, %v997_v2, %v998_v47  ;;  %v3663_v2 = vld [vmem:[%s6783_s1 + $0x88] sm:$0xff]  ;;  %v5367_v47 = vsel %vm996_vm2, %v1007_v43, %v1008_v46  ;;  %v1018_v43 = vrot.slane %v4968_v41, 2 }
  0x4c   : > { %4285 = vmatmul.mubr.msk.f32.gmra.mxu0 %vm417_vm0, %v5294_v18 }
  0x4d   : > { %4287 = vmatprep.mubr.msk.f32.mxu0 %vm417_vm0, %v5300_v53 }
  0x4e   : > { %4344 = vmatmul.mubr.msk.f32.gmra.mxu1 %vm417_vm0, %v5261_v54 }
  0x4f   : > { %4346 = vmatprep.mubr.msk.f32.mxu1 %vm417_vm0, %v5284_v34 }
  0x50   : > { %4288 = vmatmul.mubr.msk.f32.gmra.mxu0 %vm417_vm0, %v5314_v52 }
  0x51   : > { %4290 = vmatprep.mubr.msk.f32.mxu0 %vm417_vm0, %v5320_v13 }
  0x52   : > { %4347 = vmatmul.mubr.msk.f32.gmra.mxu1 %vm417_vm0, %v5287_v38 }
  0x53   : > { %4413 = vmatprep.mubr.msk.f32.mxu1 %vm417_vm0, %v4899_v16  ;;  %v3664_v16 = vld [vmem:[%s6783_s1 + $0x90] sm:$0xff] }
  0x54   : > { %4291 = vmatmul.mubr.msk.f32.gmra.mxu0 %vm417_vm0, %v5332_v32 }
  0x55   : > { %4357 = vmatprep.mubr.msk.f32.mxu0 %vm417_vm0, %v999_v10 }
  0x56   : > { %4414 = vmatmul.mubr.msk.f32.vlgmr.msra.gmra.mxu1 %vm417_vm0, %v4902_v17  ;;  %v1010_v17 = vrot.slane %v4924_v27, 2  ;;  %v3662_v27 = vld [vmem:[%s6783_s1 + $0x80] sm:$0xff] }
  0x57   : > { %4416 = vmatprep.mubr.msk.f32.mxu1 %vm417_vm0, %v4912_v21  ;;  %4518 = vmatpush3.msra.mxu1 %v5051_v1  ;;  %v1012_v1 = vrot.slane %v4934_v30, 2 }
  0x58   : > { %4358 = vmatmul.mubr.msk.f32.vlgmr.msra.gmra.mxu0 %vm417_vm0, %v1001_v11  ;;  %4519 = vmatprep.subr.mxu1 %v3700_v12  ;;  %v1017_v11 = vrot.slane %v4965_v40, 2 }
  0x59   : > { %4462 = vmatpush3.msra.mxu0 %v5016_v55  ;;  %4360 = vmatprep.mubr.msk.f32.mxu0 %vm417_vm0, %v5102_v26  ;;  %v5381_v55 = vsel %vm996_vm2, %v1008_v46, %v1010_v17  ;;  %v5387_v10 = vsel %vm996_vm2, %v1012_v1, %v1013_v63  ;;  %v5406_v46 = vsel %vm996_vm2, %v1013_v63, %v1015_v56  ;;  %v1020_v17 = vrot.slane %v4992_v49, 2  ;;  %v5425_v49 = vld [vmem:[%s6783_s1 + $0xf8] sm:$0xff] }
  0x5a   : > { %4417 = vmatmul.mubr.msk.f32.gmra.mxu1 %vm417_vm0, %v4915_v22  ;;  %4463 = vmatprep.subr.mxu0 %v3664_v16  ;;  %v5415_v1 = vsel %vm996_vm2, %v1017_v11, %v1018_v43  ;;  %v1025_v56 = vrot.slane %v5026_v59, 2 }
  0x5b   : > { %4419 = vmatprep.mubr.msk.f32.mxu1 %vm417_vm0, %v4934_v30  ;;  %4464 = vmatpush3.msra.mxu0 %v3664_v16  ;;  %v3699_v16 = vld [vmem:[%s6783_s1 + $0xa8] sm:$0xff]  ;;  %6900 = vst [vmem:[#allocation35_spill] sm:$0xff] %v5415_v1  ;;  %v5432_v63 = vsel %vm996_vm2, %v1018_v43, %v1020_v17  ;;  %v1030_v43 = vrot.slane %v5061_v5, 2 }
  0x5c   : > { %4361 = vmatmul.mubr.msk.f32.gmra.mxu0 %vm417_vm0, %v5105_v29  ;;  %4465 = vmatprep.subr.mxu0 %v3663_v2  ;;  %6901 = vst [vmem:[#allocation36_spill] sm:$0xff] %v5432_v63 }
  0x5d   : > { %4363 = vmatprep.mubr.msk.f32.mxu0 %vm417_vm0, %v5367_v47  ;;  %4466 = vmatpush3.msra.mxu0 %v3663_v2  ;;  %v3698_v2 = vld [vmem:[%s6783_s1 + $0xa0] sm:$0xff] }
  0x5e   : > { %4420 = vmatmul.mubr.msk.f32.gmra.mxu1 %vm417_vm0, %v4937_v31  ;;  %4467 = vmatprep.subr.mxu0 %v3662_v27 }
  0x5f   : > { %4422 = vmatprep.mubr.msk.f32.mxu1 %vm417_vm0, %v4965_v40  ;;  %4468 = vmatpush3.msra.mxu0 %v3662_v27  ;;  %v1023_v27 = vrot.slane %v5000_v51, 2 }
  0x60   : > { %4364 = vmatmul.mubr.msk.f32.gmra.mxu0 %vm417_vm0, %v5381_v55  ;;  %4520 = vmatpush3.msra.mxu1 %v3700_v12  ;;  %v1022_v12 = vrot.slane %v4997_v50, 2 }
  0x61   : > { %4366 = vmatprep.mubr.msk.f32.mxu0 %vm417_vm0, %v5387_v10  ;;  %4521 = vmatprep.subr.mxu1 %v3699_v16  ;;  %v5450_v59 = vsel %vm996_vm2, %v1023_v27, %v1025_v56 }
  0x62   : > { %4423 = vmatmul.mubr.msk.f32.gmra.mxu1 %vm417_vm0, %v4968_v41  ;;  %4573 = vmatprep.subr.mxu0 %v5399_v39  ;;  %v5438_v11 = vsel %vm996_vm2, %v1022_v12, %v1023_v27  ;;  %6903 = vst [vmem:[#allocation38_spill] sm:$0xff] %v5450_v59  ;;  %v1033_v12 = vrot.slane %v5069_v7, 2  ;;  %v1035_v27 = vrot.slane %v5091_v24, 2  ;;  %v1040_v24 = vrot.slane %v5123_v42, 2 }
  0x63   : > { %4425 = vmatprep.mubr.msk.f32.mxu1 %vm417_vm0, %v4997_v50  ;;  %4522 = vmatpush3.msra.mxu1 %v3699_v16  ;;  %6902 = vst [vmem:[#allocation37_spill] sm:$0xff] %v5438_v11  ;;  %v1027_v16 = vrot.slane %v5034_v61, 2  ;;  %v1028_v50 = vrot.slane %v5037_v62, 2 }
  0x64   : > { %4367 = vmatmul.mubr.msk.f32.gmra.mxu0 %vm417_vm0, %v5406_v46  ;;  %4523 = vmatprep.subr.mxu1 %v3698_v2 }
  0x65   : > { %4369 = vmatprep.mubr.msk.f32.mxu0 %vm417_vm0, %v5415_v1  ;;  %4524 = vmatpush3.msra.mxu1 %v3698_v2  ;;  %v5456_v17 = vsel %vm996_vm2, %v1027_v16, %v1028_v50  ;;  %v1032_v2 = vrot.slane %v5066_v6, 2  ;;  %v5467_v5 = vsel %vm996_vm2, %v1028_v50, %v1030_v43  ;;  %v1037_v16 = vrot.slane %v5096_v20, 2 }
  0x66   : > { %4426 = vmatmul.mubr.msk.f32.gmra.mxu1 %vm417_vm0, %v5000_v51  ;;  %4629 = vmatprep.subr.mxu1 %v5425_v49  ;;  %6904 = vst [vmem:[#allocation39_spill] sm:$0xff] %v5456_v17  ;;  %6905 = vst [vmem:[#allocation40_spill] sm:$0xff] %v5467_v5  ;;  %v5484_v50 = vsel %vm996_vm2, %v1033_v12, %v1035_v27 }
  0x67   : > { %4428 = vmatprep.mubr.msk.f32.mxu1 %vm417_vm0, %v5034_v61  ;;  %v5473_v56 = vsel %vm996_vm2, %v1032_v2, %v1033_v12  ;;  %6907 = vst [vmem:[#allocation42_spill] sm:$0xff] %v5484_v50  ;;  %v1042_v2 = vrot.slane %v5128_v44, 2  ;;  %v1045_v12 = vrot.slane %v5149_v58, 2  ;;  %v1050_v58 = vrot.slane %v5175_v15, 2 }
  0x68   : > { %4370 = vmatmul.mubr.msk.f32.gmra.mxu0 %vm417_vm0, %v5432_v63  ;;  %6906 = vst [vmem:[#allocation41_spill] sm:$0xff] %v5473_v56  ;;  %v1055_v15 = vrot.slane %v5201_v3, 2  ;;  %v1060_v3 = vrot.slane %v5227_v35, 2 }
  0x69   : > { %4372 = vmatprep.mubr.msk.f32.mxu0 %vm417_vm0, %v5438_v11 }
  0x6a   : > { %4429 = vmatmul.mubr.msk.f32.gmra.mxu1 %vm417_vm0, %v5037_v62 }
  0x6b   : > { %4431 = vmatprep.mubr.msk.f32.mxu1 %vm417_vm0, %v5066_v6  ;;  %v1038_v6 = vrot.slane %v5099_v25, 2 }
  0x6c   : > { %4373 = vmatmul.mubr.msk.f32.gmra.mxu0 %vm417_vm0, %v5450_v59 }
  0x6d   : > { %4375 = vmatprep.mubr.msk.f32.mxu0 %vm417_vm0, %v5456_v17  ;;  %v5490_v43 = vsel %vm996_vm2, %v1037_v16, %v1038_v6  ;;  %v5501_v42 = vsel %vm996_vm2, %v1038_v6, %v1040_v24  ;;  %v1047_v16 = vrot.slane %v5154_v60, 2 }
  0x6e   : > { %4432 = vmatmul.mubr.msk.f32.gmra.mxu1 %vm417_vm0, %v5069_v7  ;;  %6908 = vst [vmem:[#allocation43_spill] sm:$0xff] %v5490_v43  ;;  %6909 = vst [vmem:[#allocation44_spill] sm:$0xff] %v5501_v42 }
  0x6f   : > { %4434 = vmatprep.mubr.msk.f32.mxu1 %vm417_vm0, %v5096_v20  ;;  %v1043_v20 = vrot.slane %v5131_v45, 2 }
  0x70   : > { %4376 = vmatmul.mubr.msk.f32.gmra.mxu0 %vm417_vm0, %v5467_v5 }
  0x71   : > { %4378 = vmatprep.mubr.msk.f32.mxu0 %vm417_vm0, %v5473_v56  ;;  %v5507_v27 = vsel %vm996_vm2, %v1042_v2, %v1043_v20  ;;  %v5518_v6 = vsel %vm996_vm2, %v1043_v20, %v1045_v12  ;;  %v1052_v2 = vrot.slane %v5180_v19, 2 }
  0x72   : > { %4435 = vmatmul.mubr.msk.f32.gmra.mxu1 %vm417_vm0, %v5099_v25  ;;  %6910 = vst [vmem:[#allocation45_spill] sm:$0xff] %v5507_v27  ;;  %6911 = vst [vmem:[#allocation46_spill] sm:$0xff] %v5518_v6 }
  0x73   : > { %4437 = vmatprep.mubr.msk.f32.mxu1 %vm417_vm0, %v5128_v44  ;;  %v1048_v44 = vrot.slane %v5157_v0, 2 }
  0x74   : > { %4379 = vmatmul.mubr.msk.f32.gmra.mxu0 %vm417_vm0, %v5484_v50 }
  0x75   : > { %4381 = vmatprep.mubr.msk.f32.mxu0 %vm417_vm0, %v5490_v43  ;;  %v5524_v24 = vsel %vm996_vm2, %v1047_v16, %v1048_v44  ;;  %v5535_v20 = vsel %vm996_vm2, %v1048_v44, %v1050_v58  ;;  %v1057_v16 = vrot.slane %v5206_v57, 2 }
  0x76   : > { %4438 = vmatmul.mubr.msk.f32.gmra.mxu1 %vm417_vm0, %v5131_v45  ;;  %6912 = vst [vmem:[#allocation47_spill] sm:$0xff] %v5524_v24  ;;  %6913 = vst [vmem:[#allocation48_spill] sm:$0xff] %v5535_v20 }
  0x77   : > { %4440 = vmatprep.mubr.msk.f32.mxu1 %vm417_vm0, %v5154_v60  ;;  %v1053_v60 = vrot.slane %v5183_v23, 2 }
  0x78   : > { %4382 = vmatmul.mubr.msk.f32.gmra.mxu0 %vm417_vm0, %v5501_v42 }
  0x79   : > { %4384 = vmatprep.mubr.msk.f32.mxu0 %vm417_vm0, %v5507_v27  ;;  %v5541_v12 = vsel %vm996_vm2, %v1052_v2, %v1053_v60  ;;  %v5552_v44 = vsel %vm996_vm2, %v1053_v60, %v1055_v15  ;;  %v1062_v2 = vrot.slane %v5232_v14, 2  ;;  %v1065_v60 = vrot.slane %v5253_v9, 2 }
  0x7a   : > { %4441 = vmatmul.mubr.msk.f32.gmra.mxu1 %vm417_vm0, %v5157_v0  ;;  %6914 = vst [vmem:[#allocation49_spill] sm:$0xff] %v5541_v12  ;;  %6915 = vst [vmem:[#allocation50_spill] sm:$0xff] %v5552_v44 }
  0x7b   : > { %4443 = vmatprep.mubr.msk.f32.mxu1 %vm417_vm0, %v5180_v19  ;;  %v1058_v19 = vrot.slane %v5209_v4, 2 }
  0x7c   : > { %4385 = vmatmul.mubr.msk.f32.gmra.mxu0 %vm417_vm0, %v5518_v6 }
  0x7d   : > { %4387 = vmatprep.mubr.msk.f32.mxu0 %vm417_vm0, %v5524_v24  ;;  %v5558_v58 = vsel %vm996_vm2, %v1057_v16, %v1058_v19  ;;  %v5569_v35 = vsel %vm996_vm2, %v1058_v19, %v1060_v3  ;;  %v1067_v16 = vrot.slane %v5258_v8, 2  ;;  %v1070_v19 = vrot.slane %v5279_v48, 2 }
  0x7e   : > { %4444 = vmatmul.mubr.msk.f32.gmra.mxu1 %vm417_vm0, %v5183_v23  ;;  %6916 = vst [vmem:[#allocation51_spill] sm:$0xff] %v5558_v58  ;;  %6917 = vst [vmem:[#allocation52_spill] sm:$0xff] %v5569_v35 }
  0x7f   : > { %4446 = vmatprep.mubr.msk.f32.mxu1 %vm417_vm0, %v5206_v57  ;;  %v1063_v57 = vrot.slane %v5235_v37, 2 }
  0x80   : > { %4388 = vmatmul.mubr.msk.f32.gmra.mxu0 %vm417_vm0, %v5535_v20 }
  0x81   : > { %4390 = vmatprep.mubr.msk.f32.mxu0 %vm417_vm0, %v5541_v12  ;;  %v5575_v15 = vsel %vm996_vm2, %v1062_v2, %v1063_v57  ;;  %v5586_v9 = vsel %vm996_vm2, %v1063_v57, %v1065_v60  ;;  %v1072_v2 = vrot.slane %v5284_v34, 2  ;;  %v5601_v57 = vld [vmem:[%s4878_s14 + $0x180] sm:$0xff]  ;;  %v1075_v60 = vrot.slane %v5305_v36, 2  ;;  %v3772_v36 = vld [vmem:[%s6783_s1 + $0xf0] sm:$0xff] }
  0x82   : > { %4447 = vmatmul.mubr.msk.f32.gmra.mxu1 %vm417_vm0, %v5209_v4  ;;  %6918 = vst [vmem:[#allocation53_spill] sm:$0xff] %v5575_v15  ;;  %6919 = vst [vmem:[#allocation54_spill] sm:$0xff] %v5586_v9 }
  0x83   : > { %4449 = vmatprep.mubr.msk.f32.mxu1 %vm417_vm0, %v5232_v14  ;;  %v1068_v14 = vrot.slane %v5261_v54, 2 }
  0x84   : > { %4391 = vmatmul.mubr.msk.f32.gmra.mxu0 %vm417_vm0, %v5552_v44 }
  0x85   : > { %4393 = vmatprep.mubr.msk.f32.mxu0 %vm417_vm0, %v5558_v58  ;;  %v5592_v3 = vsel %vm996_vm2, %v1067_v16, %v1068_v14  ;;  %v5606_v48 = vsel %vm996_vm2, %v1068_v14, %v1070_v19  ;;  %v5674_v19 = vld [vmem:[%s6783_s1 + $0x118] sm:$0xff] }
  0x86   : > { %4450 = vmatmul.mubr.msk.f32.gmra.mxu1 %vm417_vm0, %v5235_v37  ;;  %6920 = vst [vmem:[#allocation55_spill] sm:$0xff] %v5592_v3  ;;  %6921 = vst [vmem:[#allocation56_spill] sm:$0xff] %v5606_v48 }
  0x87   : > { %4452 = vmatprep.mubr.msk.f32.mxu1 %vm417_vm0, %v5258_v8  ;;  %v1073_v8 = vrot.slane %v5287_v38, 2 }
  0x88   : > { %4394 = vmatmul.mubr.msk.f32.gmra.mxu0 %vm417_vm0, %v5569_v35 }
  0x89   : > { %4396 = vmatprep.mubr.msk.f32.mxu0 %vm417_vm0, %v5575_v15  ;;  %v5612_v16 = vsel %vm996_vm2, %v1072_v2, %v1073_v8  ;;  %v5624_v14 = vsel %vm996_vm2, %v1073_v8, %v1075_v60  ;;  %v6924_v8 = vld [vmem:[#allocation3_spill] sm:$0xff]  ;;  %v6926_v2 = vld [vmem:[#allocation6_spill] sm:$0xff] }
  0x8a   : > { %4453 = vmatmul.mubr.msk.f32.gmra.mxu1 %vm417_vm0, %v5261_v54  ;;  %6922 = vst [vmem:[#allocation57_spill] sm:$0xff] %v5612_v16  ;;  %v6927_v60 = vld [vmem:[#allocation7_spill] sm:$0xff] }
  0x8b   : > { %4455 = vmatprep.mubr.msk.f32.mxu1 %vm417_vm0, %v5284_v34  ;;  %v5617_v34 = vld [vmem:[%s4878_s14 + $0x188] sm:$0xff] }
  0x8c   : > { %4397 = vmatmul.mubr.msk.f32.gmra.mxu0 %vm417_vm0, %v5586_v9 }
  0x8d   : > { %4399 = vmatprep.mubr.msk.f32.mxu0 %vm417_vm0, %v5592_v3 }
  0x8e   : > { %4456 = vmatmul.mubr.msk.f32.gmra.mxu1 %vm417_vm0, %v5287_v38 }
  0x8f   : > { %4458 = vmatprep.mubr.msk.f32.mxu1 %vm417_vm0, %v5601_v57 }
  0x90   : > { %4400 = vmatmul.mubr.msk.f32.gmra.mxu0 %vm417_vm0, %v5606_v48 }
  0x91   : > { %4402 = vmatprep.mubr.msk.f32.mxu0 %vm417_vm0, %v5612_v16 }
  0x92   : > { %4459 = vmatmul.mubr.msk.f32.gmra.mxu1 %vm417_vm0, %v5617_v34 }
  0x93   : > { %4525 = vmatprep.mubr.msk.f32.mxu1 %vm417_vm0, %v5102_v26  ;;  %v3736_v26 = vld [vmem:[%s6783_s1 + $0xd0] sm:$0xff] }
  0x94   : > { %4403 = vmatmul.mubr.msk.f32.gmra.mxu0 %vm417_vm0, %v5624_v14 }
  0x95   : > { %4469 = vmatprep.mubr.msk.f32.mxu0 %vm417_vm0, %v4928_v28  ;;  %v6923_v28 = vld [vmem:[#allocation2_spill] sm:$0xff] }
  0x96   : > { %4526 = vmatmul.mubr.msk.f32.vlgmr.msra.gmra.mxu1 %vm417_vm0, %v5105_v29  ;;  %v3735_v29 = vld [vmem:[%s6783_s1 + $0xc8] sm:$0xff] }
  0x97   : > { %4528 = vmatprep.mubr.msk.f32.mxu1 %vm417_vm0, %v5367_v47  ;;  %4630 = vmatpush3.msra.mxu1 %v5425_v49  ;;  %v3771_v49 = vld [vmem:[%s6783_s1 + $0xe8] sm:$0xff] }
  0x98   : > { %4470 = vmatmul.mubr.msk.f32.vlgmr.msra.gmra.mxu0 %vm417_vm0, %v4946_v33  ;;  %4631 = vmatprep.subr.mxu1 %v3772_v36  ;;  %v3734_v33 = vld [vmem:[%s6783_s1 + $0xc0] sm:$0xff] }
  0x99   : > { %4574 = vmatpush3.msra.mxu0 %v5399_v39  ;;  %4472 = vmatprep.mubr.msk.f32.mxu0 %vm417_vm0, %v6923_v28  ;;  %v6925_v39 = vld [vmem:[#allocation4_spill] sm:$0xff] }
  0x9a   : > { %4529 = vmatmul.mubr.msk.f32.gmra.mxu1 %vm417_vm0, %v5381_v55  ;;  %4575 = vmatprep.subr.mxu0 %v3736_v26 }
  0x9b   : > { %4531 = vmatprep.mubr.msk.f32.mxu1 %vm417_vm0, %v5387_v10  ;;  %4576 = vmatpush3.msra.mxu0 %v3736_v26  ;;  %v3770_v26 = vld [vmem:[%s6783_s1 + $0xe0] sm:$0xff] }
  0x9c   : > { %4473 = vmatmul.mubr.msk.f32.gmra.mxu0 %vm417_vm0, %v6924_v8  ;;  %4577 = vmatprep.subr.mxu0 %v3735_v29 }
  0x9d   : > { %4475 = vmatprep.mubr.msk.f32.mxu0 %vm417_vm0, %v6925_v39  ;;  %4578 = vmatpush3.msra.mxu0 %v3735_v29  ;;  %v6928_v29 = vld [vmem:[#allocation8_spill] sm:$0xff] }
  0x9e   : > { %4532 = vmatmul.mubr.msk.f32.gmra.mxu1 %vm417_vm0, %v5406_v46  ;;  %4579 = vmatprep.subr.mxu0 %v3734_v33 }
  0x9f   : > { %4534 = vmatprep.mubr.msk.f32.mxu1 %vm417_vm0, %v5415_v1  ;;  %4580 = vmatpush3.msra.mxu0 %v3734_v33  ;;  %v6930_v33 = vld [vmem:[#allocation11_spill] sm:$0xff] }
  0xa0   : > { %4476 = vmatmul.mubr.msk.f32.gmra.mxu0 %vm417_vm0, %v6926_v2  ;;  %4632 = vmatpush3.msra.mxu1 %v3772_v36  ;;  %v6929_v36 = vld [vmem:[#allocation9_spill] sm:$0xff] }
  0xa1   : > { %4478 = vmatprep.mubr.msk.f32.mxu0 %vm417_vm0, %v6927_v60  ;;  %4633 = vmatprep.subr.mxu1 %v3771_v49 }
  0xa2   : > { %4535 = vmatmul.mubr.msk.f32.gmra.mxu1 %vm417_vm0, %v5432_v63  ;;  %4685 = vmatprep.subr.mxu0 %v5674_v19  ;;  %v6931_v63 = vld [vmem:[#allocation12_spill] sm:$0xff] }
  0xa3   : > { %4537 = vmatprep.mubr.msk.f32.mxu1 %vm417_vm0, %v5438_v11  ;;  %4634 = vmatpush3.msra.mxu1 %v3771_v49  ;;  %v6932_v49 = vld [vmem:[#allocation14_spill] sm:$0xff] }
  0xa4   : > { %4479 = vmatmul.mubr.msk.f32.gmra.mxu0 %vm417_vm0, %v6928_v29  ;;  %4635 = vmatprep.subr.mxu1 %v3770_v26 }
  0xa5   : > { %4481 = vmatprep.mubr.msk.f32.mxu0 %vm417_vm0, %v6929_v36  ;;  %4636 = vmatpush3.msra.mxu1 %v3770_v26  ;;  %v6933_v26 = vld [vmem:[#allocation15_spill] sm:$0xff] }
  0xa6   : > { %4538 = vmatmul.mubr.msk.f32.gmra.mxu1 %vm417_vm0, %v5450_v59  ;;  %v6935_v59 = vld [vmem:[#allocation18_spill] sm:$0xff] }
  0xa7   : > { %4540 = vmatprep.mubr.msk.f32.mxu1 %vm417_vm0, %v5456_v17  ;;  %v6934_v17 = vld [vmem:[#allocation17_spill] sm:$0xff] }
  0xa8   : > { %4482 = vmatmul.mubr.msk.f32.gmra.mxu0 %vm417_vm0, %v6930_v33 }
  0xa9   : > { %4484 = vmatprep.mubr.msk.f32.mxu0 %vm417_vm0, %v6931_v63 }
  0xaa   : > { %4541 = vmatmul.mubr.msk.f32.gmra.mxu1 %vm417_vm0, %v5467_v5  ;;  %v6937_v5 = vld [vmem:[#allocation21_spill] sm:$0xff] }
  0xab   : > { %4543 = vmatprep.mubr.msk.f32.mxu1 %vm417_vm0, %v5473_v56  ;;  %v6936_v56 = vld [vmem:[#allocation20_spill] sm:$0xff] }
  0xac   : > { %4485 = vmatmul.mubr.msk.f32.gmra.mxu0 %vm417_vm0, %v6932_v49 }
  0xad   : > { %4487 = vmatprep.mubr.msk.f32.mxu0 %vm417_vm0, %v6933_v26 }
  0xae   : > { %4544 = vmatmul.mubr.msk.f32.gmra.mxu1 %vm417_vm0, %v5484_v50  ;;  %v6939_v50 = vld [vmem:[#allocation24_spill] sm:$0xff] }
  0xaf   : > { %4546 = vmatprep.mubr.msk.f32.mxu1 %vm417_vm0, %v5490_v43  ;;  %v6938_v43 = vld [vmem:[#allocation23_spill] sm:$0xff] }
  0xb0   : > { %4488 = vmatmul.mubr.msk.f32.gmra.mxu0 %vm417_vm0, %v6934_v17 }
  0xb1   : > { %4490 = vmatprep.mubr.msk.f32.mxu0 %vm417_vm0, %v6935_v59 }
  0xb2   : > { %4547 = vmatmul.mubr.msk.f32.gmra.mxu1 %vm417_vm0, %v5501_v42  ;;  %v6941_v42 = vld [vmem:[#allocation27_spill] sm:$0xff] }
  0xb3   : > { %4549 = vmatprep.mubr.msk.f32.mxu1 %vm417_vm0, %v5507_v27  ;;  %v6940_v27 = vld [vmem:[#allocation26_spill] sm:$0xff] }
  0xb4   : > { %4491 = vmatmul.mubr.msk.f32.gmra.mxu0 %vm417_vm0, %v6936_v56 }
  0xb5   : > { %4493 = vmatprep.mubr.msk.f32.mxu0 %vm417_vm0, %v6937_v5 }
  0xb6   : > { %4550 = vmatmul.mubr.msk.f32.gmra.mxu1 %vm417_vm0, %v5518_v6  ;;  %v1944_v6 = vrot.slane %v5617_v34, 2 }
  0xb7   : > { %4552 = vmatprep.mubr.msk.f32.mxu1 %vm417_vm0, %v5524_v24  ;;  %v6942_v24 = vld [vmem:[#allocation29_spill] sm:$0xff] }
  0xb8   : > { %4494 = vmatmul.mubr.msk.f32.gmra.mxu0 %vm417_vm0, %v6938_v43 }
  0xb9   : > { %4496 = vmatprep.mubr.msk.f32.mxu0 %vm417_vm0, %v6939_v50 }
  0xba   : > { %4553 = vmatmul.mubr.msk.f32.gmra.mxu1 %vm417_vm0, %v5535_v20  ;;  %v6943_v20 = vld [vmem:[#allocation30_spill] sm:$0xff] }
  0xbb   : > { %4555 = vmatprep.mubr.msk.f32.mxu1 %vm417_vm0, %v5541_v12  ;;  %v6944_v12 = vld [vmem:[#allocation32_spill] sm:$0xff] }
  0xbc   : > { %4497 = vmatmul.mubr.msk.f32.gmra.mxu0 %vm417_vm0, %v6940_v27 }
  0xbd   : > { %4499 = vmatprep.mubr.msk.f32.mxu0 %vm417_vm0, %v6941_v42 }
  0xbe   : > { %4556 = vmatmul.mubr.msk.f32.gmra.mxu1 %vm417_vm0, %v5552_v44  ;;  %v6945_v44 = vld [vmem:[#allocation33_spill] sm:$0xff] }
  0xbf   : > { %4558 = vmatprep.mubr.msk.f32.mxu1 %vm417_vm0, %v5558_v58  ;;  %v1943_v58 = vrot.slane %v5601_v57, 2 }
  0xc0   : > { %4500 = vmatmul.mubr.msk.f32.gmra.mxu0 %vm417_vm0, %v6942_v24 }
  0xc1   : > { %4502 = vmatprep.mubr.msk.f32.mxu0 %vm417_vm0, %v6943_v20  ;;  %v5776_v11 = vsel %vm996_vm2, %v1943_v58, %v1944_v6 }
  0xc2   : > { %4559 = vmatmul.mubr.msk.f32.gmra.mxu1 %vm417_vm0, %v5569_v35  ;;  %v1673_v35 = vrot.slane %v5617_v34, 1 }
  0xc3   : > { %4561 = vmatprep.mubr.msk.f32.mxu1 %vm417_vm0, %v5575_v15  ;;  %v1672_v15 = vrot.slane %v5601_v57, 1 }
  0xc4   : > { %4503 = vmatmul.mubr.msk.f32.gmra.mxu0 %vm417_vm0, %v6944_v12 }
  0xc5   : > { %4505 = vmatprep.mubr.msk.f32.mxu0 %vm417_vm0, %v6945_v44 }
  0xc6   : > { %4562 = vmatmul.mubr.msk.f32.gmra.mxu1 %vm417_vm0, %v5586_v9  ;;  %v275_v9 = vld [vmem:[%s4878_s14 + $0x190] sm:$0x3] }
  0xc7   : > { %4564 = vmatprep.mubr.msk.f32.mxu1 %vm417_vm0, %v5592_v3  ;;  %v1946_v3 = vrot.slane %v275_v9, 2  ;;  %v1675_v1 = vrot.slane %v275_v9, 1 }
  0xc8   : > { %4506 = vmatmul.mubr.msk.f32.gmra.mxu0 %vm417_vm0, %v5294_v18 }
  0xc9   : > { %4508 = vmatprep.mubr.msk.f32.mxu0 %vm417_vm0, %v5300_v53  ;;  %v5795_v58 = vsel %vm331_vm1, %v1673_v35, %v1675_v1  ;;  %v3808_v1 = vld [vmem:[%s6783_s1 + $0x110] sm:$0xff] }
  0xca   : > { %4565 = vmatmul.mubr.msk.f32.gmra.mxu1 %vm417_vm0, %v5606_v48  ;;  %v5783_v48 = vsel %vm331_vm1, %v1672_v15, %v1673_v35 }
  0xcb   : > { %4567 = vmatprep.mubr.msk.f32.mxu1 %vm417_vm0, %v5612_v16  ;;  %v5788_v16 = vsel %vm996_vm2, %v1944_v6, %v1946_v3 }
  0xcc   : > { %4509 = vmatmul.mubr.msk.f32.gmra.mxu0 %vm417_vm0, %v5314_v52 }
  0xcd   : > { %4511 = vmatprep.mubr.msk.f32.mxu0 %vm417_vm0, %v5320_v13 }
  0xce   : > { %4568 = vmatmul.mubr.msk.f32.gmra.mxu1 %vm417_vm0, %v5624_v14 }
  0xcf   : > { %4570 = vmatprep.mubr.msk.f32.mxu1 %vm417_vm0, %v5776_v11 }
  0xd0   : > { %4512 = vmatmul.mubr.msk.f32.gmra.mxu0 %vm417_vm0, %v5332_v32 }
  0xd1   : > { %4514 = vmatprep.mubr.msk.f32.mxu0 %vm417_vm0, %v5783_v48 }
  0xd2   : > { %4571 = vmatmul.mubr.msk.f32.gmra.mxu1 %vm417_vm0, %v5788_v16 }
  0xd3   : > { %4637 = vmatprep.mubr.msk.f32.mxu1 %vm417_vm0, %v6923_v28 }
  0xd4   : > { %4515 = vmatmul.mubr.msk.f32.gmra.mxu0 %vm417_vm0, %v5795_v58 }
  0xd5   : > { %4581 = vmatprep.mubr.msk.f32.mxu0 %vm417_vm0, %v4912_v21  ;;  %v4303_v6 = vpop.f32.mrf.mxu1  ;;  %v3807_v21 = vld [vmem:[%s6783_s1 + $0x108] sm:$0xff] }
  0xd6   : > { %4638 = vmatmul.mubr.msk.f32.vlgmr.msra.gmra.mxu1 %vm417_vm0, %v6924_v8 }
  0xd7   : > { %4640 = vmatprep.mubr.msk.f32.mxu1 %vm417_vm0, %v6925_v39  ;;  %v4247_v35 = vpop.f32.mrf.mxu0  ;;  %v837_v15 = vpop.f32.mrf.mxu1 }
  0xd8   : > { %4582 = vmatmul.mubr.msk.f32.vlgmr.msra.gmra.mxu0 %vm417_vm0, %v4915_v22  ;;  %v5814_v9 = vadd.f32 %v4303_v6, %v4247_v35  ;;  %v3806_v22 = vld [vmem:[%s6783_s1 + $0x100] sm:$0xff] }
  0xd9   : > { %4686 = vmatpush3.msra.mxu0 %v5674_v19  ;;  %4584 = vmatprep.mubr.msk.f32.mxu0 %vm417_vm0, %v4934_v30  ;;  %v548_v3 = vpop.f32.mrf.mxu0  ;;  %v4306_v28 = vpop.f32.mrf.mxu1 }
  0xda   : > { %4641 = vmatmul.mubr.msk.f32.gmra.mxu1 %vm417_vm0, %v6926_v2  ;;  %4687 = vmatprep.subr.mxu0 %v3808_v1  ;;  %v5824_v8 = vadd.f32 %v837_v15, %v548_v3 }
  0xdb   : > { %4643 = vmatprep.mubr.msk.f32.mxu1 %vm417_vm0, %v6927_v60  ;;  %4688 = vmatpush3.msra.mxu0 %v3808_v1  ;;  %v847_v39 = vpop.f32.mrf.mxu1 }
  0xdc   : > { %v4250_v30 = vpop.f32.mrf.mxu0  ;;  %4585 = vmatmul.mubr.msk.f32.gmra.mxu0 %vm417_vm0, %v4937_v31  ;;  %4689 = vmatprep.subr.mxu0 %v3807_v21 }
  0xdd   : > { %v5833_v19 = vadd.f32 %v4306_v28, %v4250_v30  ;;  %4587 = vmatprep.mubr.msk.f32.mxu0 %vm417_vm0, %v4965_v40  ;;  %4690 = vmatpush3.msra.mxu0 %v3807_v21  ;;  %v6946_v40 = vld [vmem:[#allocation5_spill] sm:$0xff] }
  0xde   : > { %v558_v2 = vpop.f32.mrf.mxu0  ;;  %v4309_v6 = vpop.f32.mrf.mxu1  ;;  %4644 = vmatmul.mubr.msk.f32.gmra.mxu1 %vm417_vm0, %v6928_v29  ;;  %4691 = vmatprep.subr.mxu0 %v3806_v22 }
  0xdf   : > { %v5839_v60 = vadd.f32 %v847_v39, %v558_v2  ;;  %4646 = vmatprep.mubr.msk.f32.mxu1 %vm417_vm0, %v6929_v36  ;;  %4692 = vmatpush3.msra.mxu0 %v3806_v22  ;;  %v6947_v39 = vld [vmem:[#allocation10_spill] sm:$0xff] }
  0xe0   : > { %v4253_v31 = vpop.f32.mrf.mxu0  ;;  %4588 = vmatmul.mubr.msk.f32.gmra.mxu0 %vm417_vm0, %v4968_v41  ;;  %v857_v1 = vpop.f32.mrf.mxu1 }
  0xe1   : > { %v5845_v35 = vadd.f32 %v4309_v6, %v4253_v31  ;;  %4590 = vmatprep.mubr.msk.f32.mxu0 %vm417_vm0, %v6946_v40  ;;  %v6948_v31 = vld [vmem:[#allocation13_spill] sm:$0xff] }
  0xe2   : > { %v568_v15 = vpop.f32.mrf.mxu0  ;;  %v4312_v21 = vpop.f32.mrf.mxu1  ;;  %4647 = vmatmul.mubr.msk.f32.gmra.mxu1 %vm417_vm0, %v6930_v33 }
  0xe3   : > { %v5851_v29 = vadd.f32 %v857_v1, %v568_v15  ;;  %4649 = vmatprep.mubr.msk.f32.mxu1 %vm417_vm0, %v6931_v63 }
  0xe4   : > { %v4256_v36 = vpop.f32.mrf.mxu0  ;;  %4591 = vmatmul.mubr.msk.f32.gmra.mxu0 %vm417_vm0, %v5000_v51  ;;  %v867_v41 = vpop.f32.mrf.mxu1 }
  0xe5   : > { %v5857_v3 = vadd.f32 %v4312_v21, %v4256_v36  ;;  %4593 = vmatprep.mubr.msk.f32.mxu0 %vm417_vm0, %v5034_v61  ;;  %v6949_v21 = vld [vmem:[#allocation16_spill] sm:$0xff] }
  0xe6   : > { %v578_v28 = vpop.f32.mrf.mxu0  ;;  %v4315_v22 = vpop.f32.mrf.mxu1  ;;  %4650 = vmatmul.mubr.msk.f32.gmra.mxu1 %vm417_vm0, %v6932_v49 }
  0xe7   : > { %v5863_v33 = vadd.f32 %v867_v41, %v578_v28  ;;  %4652 = vmatprep.mubr.msk.f32.mxu1 %vm417_vm0, %v6933_v26 }
  0xe8   : > { %v4259_v63 = vpop.f32.mrf.mxu0  ;;  %4594 = vmatmul.mubr.msk.f32.gmra.mxu0 %vm417_vm0, %v5037_v62  ;;  %v877_v51 = vpop.f32.mrf.mxu1 }
  0xe9   : > { %v5869_v30 = vadd.f32 %v4315_v22, %v4259_v63  ;;  %4596 = vmatprep.mubr.msk.f32.mxu0 %vm417_vm0, %v6947_v39  ;;  %v6950_v22 = vld [vmem:[#allocation19_spill] sm:$0xff] }
  0xea   : > { %v588_v61 = vpop.f32.mrf.mxu0  ;;  %v4318_v2 = vpop.f32.mrf.mxu1  ;;  %4653 = vmatmul.mubr.msk.f32.gmra.mxu1 %vm417_vm0, %v6934_v17 }
  0xeb   : > { %v5875_v49 = vadd.f32 %v877_v51, %v588_v61  ;;  %4655 = vmatprep.mubr.msk.f32.mxu1 %vm417_vm0, %v6935_v59  ;;  %v6951_v61 = vld [vmem:[#allocation22_spill] sm:$0xff] }
  0xec   : > { %v4262_v26 = vpop.f32.mrf.mxu0  ;;  %4597 = vmatmul.mubr.msk.f32.gmra.mxu0 %vm417_vm0, %v5069_v7  ;;  %v887_v62 = vpop.f32.mrf.mxu1 }
  0xed   : > { %v5881_v6 = vadd.f32 %v4318_v2, %v4262_v26  ;;  %4599 = vmatprep.mubr.msk.f32.mxu0 %vm417_vm0, %v6948_v31 }
  0xee   : > { %v598_v1 = vpop.f32.mrf.mxu0  ;;  %v4321_v40 = vpop.f32.mrf.mxu1  ;;  %4656 = vmatmul.mubr.msk.f32.gmra.mxu1 %vm417_vm0, %v6936_v56 }
  0xef   : > { %v5887_v17 = vadd.f32 %v887_v62, %v598_v1  ;;  %4658 = vmatprep.mubr.msk.f32.mxu1 %vm417_vm0, %v6937_v5  ;;  %v6952_v62 = vld [vmem:[#allocation25_spill] sm:$0xff] }
  0xf0   : > { %v4265_v59 = vpop.f32.mrf.mxu0  ;;  %4600 = vmatmul.mubr.msk.f32.gmra.mxu0 %vm417_vm0, %v5099_v25  ;;  %v897_v7 = vpop.f32.mrf.mxu1 }
  0xf1   : > { %v5893_v15 = vadd.f32 %v4321_v40, %v4265_v59  ;;  %4602 = vmatprep.mubr.msk.f32.mxu0 %vm417_vm0, %v6949_v21  ;;  %v6953_v40 = vld [vmem:[#allocation28_spill] sm:$0xff]  ;;  %v6954_v21 = vld [vmem:[#allocation31_spill] sm:$0xff] }
  0xf2   : > { %v608_v36 = vpop.f32.mrf.mxu0  ;;  %v4324_v41 = vpop.f32.mrf.mxu1  ;;  %4659 = vmatmul.mubr.msk.f32.gmra.mxu1 %vm417_vm0, %v6938_v43 }
  0xf3   : > { %v5899_v56 = vadd.f32 %v897_v7, %v608_v36  ;;  %4661 = vmatprep.mubr.msk.f32.mxu1 %vm417_vm0, %v6939_v50  ;;  %v5966_v36 = vld [vmem:[%s4878_s14 + $0x198] sm:$0xff] }
  0xf4   : > { %v4268_v5 = vpop.f32.mrf.mxu0  ;;  %4603 = vmatmul.mubr.msk.f32.gmra.mxu0 %vm417_vm0, %v5131_v45  ;;  %v907_v25 = vpop.f32.mrf.mxu1 }
  0xf5   : > { %v5905_v28 = vadd.f32 %v4324_v41, %v4268_v5  ;;  %4605 = vmatprep.mubr.msk.f32.mxu0 %vm417_vm0, %v6950_v22  ;;  %v5969_v41 = vld [vmem:[%s4878_s14 + $0x1a0] sm:$0xff] }
  0xf6   : > { %v618_v63 = vpop.f32.mrf.mxu0  ;;  %v4327_v51 = vpop.f32.mrf.mxu1  ;;  %4662 = vmatmul.mubr.msk.f32.gmra.mxu1 %vm417_vm0, %v6940_v27  ;;  %v2484_v22 = vrot.slane %v5969_v41, 1 }
  0xf7   : > { %v5911_v43 = vadd.f32 %v907_v25, %v618_v63  ;;  %4664 = vmatprep.mubr.msk.f32.mxu1 %vm417_vm0, %v6941_v42  ;;  %v2483_v25 = vrot.slane %v5966_v36, 1  ;;  %v5984_v63 = vld [vmem:[%s4878_s14 + $0x1a8] sm:$0x3] }
  0xf8   : > { %v4271_v50 = vpop.f32.mrf.mxu0  ;;  %4606 = vmatmul.mubr.msk.f32.gmra.mxu0 %vm417_vm0, %v5157_v0  ;;  %v5917_v45 = vpop.f32.mrf.mxu1 }
  0xf9   : > { %v5919_v39 = vadd.f32 %v4327_v51, %v4271_v50  ;;  %4608 = vmatprep.mubr.msk.f32.mxu0 %vm417_vm0, %v6951_v61  ;;  %v6955_v50 = vld [vmem:[#allocation34_spill] sm:$0xff] }
  0xfa   : > { %v5923_v2 = vpop.f32.mrf.mxu0  ;;  %v4330_v26 = vpop.f32.mrf.mxu1  ;;  %4665 = vmatmul.mubr.msk.f32.gmra.mxu1 %vm417_vm0, %v6942_v24 }
  0xfb   : > { %4667 = vmatprep.mubr.msk.f32.mxu1 %vm417_vm0, %v6943_v20 }
  0xfc   : > { %v4274_v42 = vpop.f32.mrf.mxu0  ;;  %4609 = vmatmul.mubr.msk.f32.gmra.mxu0 %vm417_vm0, %v5183_v23  ;;  %v5931_v0 = vpop.f32.mrf.mxu1 }
  0xfd   : > { %v5933_v27 = vadd.f32 %v4330_v26, %v4274_v42  ;;  %4611 = vmatprep.mubr.msk.f32.mxu0 %vm417_vm0, %v6952_v62  ;;  %v2485_v42 = vsel %vm331_vm1, %v2483_v25, %v2484_v22 }
  0xfe   : > { %v5937_v31 = vpop.f32.mrf.mxu0  ;;  %v4333_v1 = vpop.f32.mrf.mxu1  ;;  %4668 = vmatmul.mubr.msk.f32.gmra.mxu1 %vm417_vm0, %v6944_v12 }
  0xff   : > { %4670 = vmatprep.mubr.msk.f32.mxu1 %vm417_vm0, %v6945_v44 }
 0x100   : > { %v4277_v24 = vpop.f32.mrf.mxu0  ;;  %4612 = vmatmul.mubr.msk.f32.gmra.mxu0 %vm417_vm0, %v5209_v4  ;;  %v5945_v23 = vpop.f32.mrf.mxu1 }
 0x101   : > { %v5947_v20 = vadd.f32 %v4333_v1, %v4277_v24  ;;  %4614 = vmatprep.mubr.msk.f32.mxu0 %vm417_vm0, %v6953_v40 }
 0x102   : > { %v5951_v59 = vpop.f32.mrf.mxu0  ;;  %v4336_v7 = vpop.f32.mrf.mxu1  ;;  %4671 = vmatmul.mubr.msk.f32.gmra.mxu1 %vm417_vm0, %v5294_v18 }
 0x103   : > { %4673 = vmatprep.mubr.msk.f32.mxu1 %vm417_vm0, %v5300_v53 }
 0x104   : > { %v4280_v12 = vpop.f32.mrf.mxu0  ;;  %4615 = vmatmul.mubr.msk.f32.gmra.mxu0 %vm417_vm0, %v5235_v37  ;;  %v5959_v4 = vpop.f32.mrf.mxu1 }
 0x105   : > { %v5961_v44 = vadd.f32 %v4336_v7, %v4280_v12  ;;  %4617 = vmatprep.mubr.msk.f32.mxu0 %vm417_vm0, %v6954_v21 }
 0x106   : > { %v5971_v18 = vpop.f32.mrf.mxu0  ;;  %v4339_v5 = vpop.f32.mrf.mxu1  ;;  %4674 = vmatmul.mubr.msk.f32.gmra.mxu1 %vm417_vm0, %v5314_v52 }
 0x107   : > { %4676 = vmatprep.mubr.msk.f32.mxu1 %vm417_vm0, %v5320_v13 }
 0x108   : > { %v4283_v53 = vpop.f32.mrf.mxu0  ;;  %4618 = vmatmul.mubr.msk.f32.gmra.mxu0 %vm417_vm0, %v5261_v54  ;;  %v5979_v37 = vpop.f32.mrf.mxu1  ;;  %v2486_v54 = vrot.slane %v5984_v63, 1 }
 0x109   : > { %v5986_v51 = vadd.f32 %v4339_v5, %v4283_v53  ;;  %4620 = vmatprep.mubr.msk.f32.mxu0 %vm417_vm0, %v6955_v50 }
 0x10a   : > { %v5990_v52 = vpop.f32.mrf.mxu0  ;;  %v4342_v13 = vpop.f32.mrf.mxu1  ;;  %4677 = vmatmul.mubr.msk.f32.gmra.mxu1 %vm417_vm0, %v5332_v32 }
 0x10b   : > { %4679 = vmatprep.mubr.msk.f32.mxu1 %vm417_vm0, %v5783_v48  ;;  %v2487_v48 = vsel %vm331_vm1, %v2484_v22, %v2486_v54 }
 0x10c   : > { %v4286_v61 = vpop.f32.mrf.mxu0  ;;  %4621 = vmatmul.mubr.msk.f32.gmra.mxu0 %vm417_vm0, %v5287_v38  ;;  %v5999_v26 = vpop.f32.mrf.mxu1 }
 0x10d   : > { %v6002_v62 = vadd.f32 %v4342_v13, %v4286_v61  ;;  %4623 = vmatprep.mubr.msk.f32.mxu0 %vm417_vm0, %v5601_v57 }
 0x10e   : > { %v6006_v1 = vpop.f32.mrf.mxu0  ;;  %v4345_v32 = vpop.f32.mrf.mxu1  ;;  %4680 = vmatmul.mubr.msk.f32.gmra.mxu1 %vm417_vm0, %v5795_v58 }
 0x10f   : > { %4682 = vmatprep.mubr.msk.f32.mxu1 %vm417_vm0, %v2485_v42 }
 0x110   : > { %v4289_v38 = vpop.f32.mrf.mxu0  ;;  %4624 = vmatmul.mubr.msk.f32.gmra.mxu0 %vm417_vm0, %v5617_v34  ;;  %v6014_v24 = vpop.f32.mrf.mxu1 }
 0x111   : > { %v6016_v40 = vadd.f32 %v4345_v32, %v4289_v38  ;;  %4626 = vmatprep.mubr.msk.f32.mxu0 %vm417_vm0, %v5966_v36  ;;  %v6956_v32 = vld [vmem:[#allocation35_spill] sm:$0xff] }
 0x112   : > { %v6020_v57 = vpop.f32.mrf.mxu0  ;;  %v4348_v7 = vpop.f32.mrf.mxu1  ;;  %4683 = vmatmul.mubr.msk.f32.gmra.mxu1 %vm417_vm0, %v2487_v48 }
 0x114   : > { %v4292_v58 = vpop.f32.mrf.mxu0  ;;  %4627 = vmatmul.mubr.msk.f32.gmra.mxu0 %vm417_vm0, %v5969_v41  ;;  %v6025_v12 = vpop.f32.mrf.mxu1 }
 0x115   : > { %v6027_v21 = vadd.f32 %v4348_v7, %v4292_v58  ;;  %4693 = vmatprep.mubr.msk.f32.mxu0 %vm417_vm0, %v5367_v47  ;;  %v6957_v7 = vld [vmem:[#allocation36_spill] sm:$0xff] }
 0x116   : > { %v6031_v34 = vpop.f32.mrf.mxu0  ;;  %v4415_v5 = vpop.f32.mrf.mxu1 }
 0x118   : > { %v4359_v53 = vpop.f32.mrf.mxu0  ;;  %4694 = vmatmul.mubr.msk.f32.vlgmr.msra.gmra.mxu0 %vm417_vm0, %v5381_v55  ;;  %v6035_v25 = vpop.f32.mrf.mxu1 }
 0x119   : > { %v1372_v22 = vadd.f32 %v4359_v53, %v5814_v9  ;;  %4696 = vmatprep.mubr.msk.f32.mxu0 %vm417_vm0, %v5387_v10 }
 0x11a   : > { %v1212_v50 = vpop.f32.mrf.mxu0  ;;  %v4418_v13 = vpop.f32.mrf.mxu1 }
 0x11b   : > { %v6041_v54 = vadd.f32 %v1212_v50, %v5824_v8  ;;  %v6043_v47 = vadd.f32 %v4415_v5, %v1372_v22  ;;  %v6958_v5 = vld [vmem:[#allocation37_spill] sm:$0xff] }
 0x11c   : > { %v4362_v61 = vpop.f32.mrf.mxu0  ;;  %4697 = vmatmul.mubr.msk.f32.gmra.mxu0 %vm417_vm0, %v5406_v46  ;;  %v6047_v42 = vpop.f32.mrf.mxu1 }
 0x11d   : > { %v1374_v55 = vadd.f32 %v4362_v61, %v5833_v19  ;;  %4699 = vmatprep.mubr.msk.f32.mxu0 %vm417_vm0, %v6956_v32  ;;  %v3097_v19 = vld [vmem:[%s6785_s3 + $0x8] sm:$0xff]  ;;  %v6959_v61 = vld [vmem:[#allocation38_spill] sm:$0xff] }
 0x11e   : > { %v1222_v9 = vpop.f32.mrf.mxu0  ;;  %v4421_v10 = vpop.f32.mrf.mxu1  ;;  %4741 = vmatprep.subr.mxu1 %v3097_v19  ;;  %v6960_v32 = vld [vmem:[#allocation39_spill] sm:$0xff] }
 0x11f   : > { %v6053_v48 = vadd.f32 %v1222_v9, %v5839_v60  ;;  %v6055_v8 = vadd.f32 %v4418_v13, %v1374_v55  ;;  %4742 = vmatpush3.msra.mxu1 %v3097_v19 }
 0x120   : > { %v4365_v38 = vpop.f32.mrf.mxu0  ;;  %4700 = vmatmul.mubr.msk.f32.gmra.mxu0 %vm417_vm0, %v6957_v7  ;;  %v6059_v58 = vpop.f32.mrf.mxu1 }
 0x121   : > { %v1376_v46 = vadd.f32 %v4365_v38, %v5845_v35  ;;  %4702 = vmatprep.mubr.msk.f32.mxu0 %vm417_vm0, %v6958_v5 }
 0x122   : > { %v1232_v53 = vpop.f32.mrf.mxu0  ;;  %v4424_v60 = vpop.f32.mrf.mxu1 }
 0x123   : > { %v6068_v22 = vadd.f32 %v1232_v53, %v5851_v29  ;;  %v6070_v50 = vadd.f32 %v4421_v10, %v1376_v46  ;;  %v6961_v46 = vld [vmem:[#allocation40_spill] sm:$0xff]  ;;  %v6962_v53 = vld [vmem:[#allocation41_spill] sm:$0xff] }
 0x124   : > { %v4368_v13 = vpop.f32.mrf.mxu0  ;;  %4703 = vmatmul.mubr.msk.f32.gmra.mxu0 %vm417_vm0, %v6959_v61  ;;  %v6074_v35 = vpop.f32.mrf.mxu1 }
 0x125   : > { %v1378_v55 = vadd.f32 %v4368_v13, %v5857_v3  ;;  %4705 = vmatprep.mubr.msk.f32.mxu0 %vm417_vm0, %v6960_v32 }
 0x126   : > { %v1242_v9 = vpop.f32.mrf.mxu0  ;;  %v4427_v38 = vpop.f32.mrf.mxu1 }
 0x127   : > { %v6080_v7 = vadd.f32 %v1242_v9, %v5863_v33  ;;  %v6082_v29 = vadd.f32 %v4424_v60, %v1378_v55  ;;  %v6963_v55 = vld [vmem:[#allocation42_spill] sm:$0xff] }
 0x128   : > { %v4371_v10 = vpop.f32.mrf.mxu0  ;;  %4706 = vmatmul.mubr.msk.f32.gmra.mxu0 %vm417_vm0, %v6961_v46  ;;  %v6086_v5 = vpop.f32.mrf.mxu1  ;;  %v6965_v46 = vld [vmem:[#allocation43_spill] sm:$0xff] }
 0x129   : > { %v1380_v19 = vadd.f32 %v4371_v10, %v5869_v30  ;;  %4708 = vmatprep.mubr.msk.f32.mxu0 %vm417_vm0, %v6962_v53 }
 0x12a   : > { %v1252_v3 = vpop.f32.mrf.mxu0  ;;  %v4430_v13 = vpop.f32.mrf.mxu1 }
 0x12b   : > { %v6092_v61 = vadd.f32 %v1252_v3, %v5875_v49  ;;  %v6094_v33 = vadd.f32 %v4427_v38, %v1380_v19  ;;  %v6966_v19 = vld [vmem:[#allocation44_spill] sm:$0xff] }
 0x12c   : > { %v4374_v60 = vpop.f32.mrf.mxu0  ;;  %4709 = vmatmul.mubr.msk.f32.gmra.mxu0 %vm417_vm0, %v6963_v55  ;;  %v6098_v32 = vpop.f32.mrf.mxu1 }
 0x12d   : > { %6964 = vst [vmem:[#allocation2_spill] sm:$0xff] %v6098_v32  ;;  %v1382_v9 = vadd.f32 %v4374_v60, %v5881_v6  ;;  %4711 = vmatprep.mubr.msk.f32.mxu0 %vm417_vm0, %v6965_v46  ;;  %v6968_v32 = vld [vmem:[#allocation45_spill] sm:$0xff] }
 0x12e   : > { %v1262_v30 = vpop.f32.mrf.mxu0  ;;  %v4433_v10 = vpop.f32.mrf.mxu1 }
 0x12f   : > { %v6104_v53 = vadd.f32 %v1262_v30, %v5887_v17  ;;  %v6106_v49 = vadd.f32 %v4430_v13, %v1382_v9  ;;  %v6970_v9 = vld [vmem:[#allocation46_spill] sm:$0xff] }
 0x130   : > { %v4377_v38 = vpop.f32.mrf.mxu0  ;;  %4712 = vmatmul.mubr.msk.f32.gmra.mxu0 %vm417_vm0, %v6966_v19  ;;  %v6110_v3 = vpop.f32.mrf.mxu1 }
 0x131   : > { %6967 = vst [vmem:[#allocation3_spill] sm:$0xff] %v6110_v3  ;;  %v1384_v55 = vadd.f32 %v4377_v38, %v5893_v15  ;;  %4714 = vmatprep.mubr.msk.f32.mxu0 %vm417_vm0, %v6968_v32  ;;  %v6972_v3 = vld [vmem:[#allocation47_spill] sm:$0xff] }
 0x132   : > { %v1272_v6 = vpop.f32.mrf.mxu0  ;;  %v4436_v60 = vpop.f32.mrf.mxu1 }
 0x133   : > { %v6116_v46 = vadd.f32 %v1272_v6, %v5899_v56  ;;  %v6118_v17 = vadd.f32 %v4433_v10, %v1384_v55  ;;  %v6973_v55 = vld [vmem:[#allocation48_spill] sm:$0xff] }
 0x134   : > { %v4380_v13 = vpop.f32.mrf.mxu0  ;;  %4715 = vmatmul.mubr.msk.f32.gmra.mxu0 %vm417_vm0, %v6970_v9  ;;  %v6122_v30 = vpop.f32.mrf.mxu1  ;;  %v918_v9 = vadd.f32 %v5917_v45, %v5923_v2 }
 0x135   : > { %6969 = vst [vmem:[#allocation4_spill] sm:$0xff] %v6118_v17  ;;  %6971 = vst [vmem:[#allocation6_spill] sm:$0xff] %v6122_v30  ;;  %v1386_v19 = vadd.f32 %v4380_v13, %v5905_v28  ;;  %4717 = vmatprep.mubr.msk.f32.mxu0 %vm417_vm0, %v6972_v3  ;;  %v6974_v13 = vld [vmem:[#allocation49_spill] sm:$0xff] }
 0x136   : > { %v1282_v15 = vpop.f32.mrf.mxu0  ;;  %v4439_v32 = vpop.f32.mrf.mxu1 }
 0x137   : > { %v6128_v38 = vadd.f32 %v1282_v15, %v5911_v43  ;;  %v6130_v56 = vadd.f32 %v4436_v60, %v1386_v19  ;;  %v6975_v19 = vld [vmem:[#allocation50_spill] sm:$0xff] }
 0x138   : > { %v4383_v10 = vpop.f32.mrf.mxu0  ;;  %4718 = vmatmul.mubr.msk.f32.gmra.mxu0 %vm417_vm0, %v6973_v55  ;;  %v1560_v6 = vpop.f32.mrf.mxu1  ;;  %v928_v55 = vadd.f32 %v5931_v0, %v5937_v31  ;;  %v938_v0 = vadd.f32 %v5945_v23, %v5951_v59  ;;  %v6979_v23 = vld [vmem:[#allocation54_spill] sm:$0xff]  ;;  %v948_v59 = vadd.f32 %v5959_v4, %v5971_v18  ;;  %v958_v4 = vadd.f32 %v5979_v37, %v5990_v52 }
 0x139   : > { %v1388_v28 = vadd.f32 %v4383_v10, %v5919_v39  ;;  %4720 = vmatprep.mubr.msk.f32.mxu0 %vm417_vm0, %v6974_v13  ;;  %v6976_v39 = vld [vmem:[#allocation51_spill] sm:$0xff] }
 0x13a   : > { %v1292_v3 = vpop.f32.mrf.mxu0  ;;  %v4442_v30 = vpop.f32.mrf.mxu1 }
 0x13b   : > { %v1387_v17 = vadd.f32 %v1292_v3, %v918_v9  ;;  %v6139_v43 = vadd.f32 %v4439_v32, %v1388_v28  ;;  %v6977_v3 = vld [vmem:[#allocation52_spill] sm:$0xff] }
 0x13c   : > { %v4386_v60 = vpop.f32.mrf.mxu0  ;;  %4721 = vmatmul.mubr.msk.f32.gmra.mxu0 %vm417_vm0, %v6975_v19  ;;  %v1570_v15 = vpop.f32.mrf.mxu1 }
 0x13d   : > { %v1390_v45 = vadd.f32 %v4386_v60, %v5933_v27  ;;  %v6146_v2 = vadd.f32 %v1560_v6, %v1387_v17  ;;  %4723 = vmatprep.mubr.msk.f32.mxu0 %vm417_vm0, %v6976_v39  ;;  %v6978_v17 = vld [vmem:[#allocation53_spill] sm:$0xff] }
 0x13e   : > { %v1302_v10 = vpop.f32.mrf.mxu0  ;;  %v4445_v13 = vpop.f32.mrf.mxu1 }
 0x13f   : > { %v1389_v9 = vadd.f32 %v1302_v10, %v928_v55  ;;  %v6150_v32 = vadd.f32 %v4442_v30, %v1390_v45  ;;  %v3096_v30 = vld [vmem:[%s6785_s3] sm:$0xff] }
 0x140   : > { %v4389_v28 = vpop.f32.mrf.mxu0  ;;  %4724 = vmatmul.mubr.msk.f32.gmra.mxu0 %vm417_vm0, %v6977_v3  ;;  %v1580_v19 = vpop.f32.mrf.mxu1  ;;  %4743 = vmatprep.subr.mxu1 %v3096_v30 }
 0x141   : > { %v1392_v27 = vadd.f32 %v4389_v28, %v5947_v20  ;;  %v6157_v31 = vadd.f32 %v1570_v15, %v1389_v9  ;;  %4726 = vmatprep.mubr.msk.f32.mxu0 %vm417_vm0, %v6978_v17  ;;  %4744 = vmatpush3.msra.mxu1 %v3096_v30  ;;  %v6980_v9 = vld [vmem:[#allocation55_spill] sm:$0xff]  ;;  %v6981_v17 = vld [vmem:[#allocation56_spill] sm:$0xff] }
 0x142   : > { %v1312_v6 = vpop.f32.mrf.mxu0  ;;  %v4448_v60 = vpop.f32.mrf.mxu1 }
 0x143   : > { %v1391_v55 = vadd.f32 %v1312_v6, %v938_v0  ;;  %v6164_v45 = vadd.f32 %v4445_v13, %v1392_v27  ;;  %v2754_v6 = vrot.slane %v5966_v36, 2  ;;  %v2757_v36 = vrot.slane %v5984_v63, 2 }
 0x144   : > { %v4392_v39 = vpop.f32.mrf.mxu0  ;;  %4727 = vmatmul.mubr.msk.f32.gmra.mxu0 %vm417_vm0, %v6979_v23  ;;  %v1590_v20 = vpop.f32.mrf.mxu1 }
 0x145   : > { %v1394_v15 = vadd.f32 %v4392_v39, %v5961_v44  ;;  %v6171_v10 = vadd.f32 %v1580_v19, %v1391_v55  ;;  %4729 = vmatprep.mubr.msk.f32.mxu0 %vm417_vm0, %v6980_v9  ;;  %v6982_v19 = vld [vmem:[#allocation57_spill] sm:$0xff]  ;;  %v2755_v39 = vrot.slane %v5969_v41, 2 }
 0x146   : > { %v1322_v28 = vpop.f32.mrf.mxu0  ;;  %v4451_v3 = vpop.f32.mrf.mxu1 }
 0x147   : > { %v1393_v13 = vadd.f32 %v1322_v28, %v948_v59  ;;  %v6175_v0 = vadd.f32 %v4448_v60, %v1394_v15  ;;  %v2756_v28 = vsel %vm996_vm2, %v2754_v6, %v2755_v39  ;;  %v2758_v63 = vsel %vm996_vm2, %v2755_v39, %v2757_v36 }
 0x148   : > { %v4395_v27 = vpop.f32.mrf.mxu0  ;;  %4730 = vmatmul.mubr.msk.f32.gmra.mxu0 %vm417_vm0, %v6981_v17  ;;  %v1600_v30 = vpop.f32.mrf.mxu1 }
 0x149   : > { %v1396_v44 = vadd.f32 %v4395_v27, %v5986_v51  ;;  %v6182_v18 = vadd.f32 %v1590_v20, %v1393_v13  ;;  %4732 = vmatprep.mubr.msk.f32.mxu0 %vm417_vm0, %v6982_v19  ;;  %v968_v51 = vadd.f32 %v5999_v26, %v6006_v1 }
 0x14a   : > { %v1332_v55 = vpop.f32.mrf.mxu0  ;;  %v4454_v60 = vpop.f32.mrf.mxu1 }
 0x14b   : > { %v1395_v23 = vadd.f32 %v1332_v55, %v958_v4  ;;  %v6188_v59 = vadd.f32 %v4451_v3, %v1396_v44 }
 0x14c   : > { %v4398_v15 = vpop.f32.mrf.mxu0  ;;  %4733 = vmatmul.mubr.msk.f32.gmra.mxu0 %vm417_vm0, %v5624_v14  ;;  %v1610_v37 = vpop.f32.mrf.mxu1 }
 0x14d   : > { %v1398_v52 = vadd.f32 %v4398_v15, %v6002_v62  ;;  %v6195_v20 = vadd.f32 %v1600_v30, %v1395_v23  ;;  %4735 = vmatprep.mubr.msk.f32.mxu0 %vm417_vm0, %v5776_v11  ;;  %v978_v62 = vadd.f32 %v6014_v24, %v6020_v57  ;;  %v988_v24 = vadd.f32 %v6025_v12, %v6031_v34 }
 0x14e   : > { %v1342_v41 = vpop.f32.mrf.mxu0  ;;  %v4457_v9 = vpop.f32.mrf.mxu1  ;;  %v1639_v15 = vadd.f32 %v6035_v25, %v6041_v54 }
 0x14f   : > { %v1397_v3 = vadd.f32 %v1342_v41, %v968_v51  ;;  %v6201_v13 = vadd.f32 %v4454_v60, %v1398_v52  ;;  %v1641_v41 = vadd.f32 %v6047_v42, %v6053_v48 }
 0x150   : > { %v4401_v14 = vpop.f32.mrf.mxu0  ;;  %4736 = vmatmul.mubr.msk.f32.gmra.mxu0 %vm417_vm0, %v5788_v16  ;;  %v1620_v26 = vpop.f32.mrf.mxu1 }
 0x151   : > { %v1400_v1 = vadd.f32 %v4401_v14, %v6016_v40  ;;  %v6208_v11 = vadd.f32 %v1610_v37, %v1397_v3  ;;  %4738 = vmatprep.mubr.msk.f32.mxu0 %vm417_vm0, %v2756_v28  ;;  %v1643_v14 = vadd.f32 %v6059_v58, %v6068_v22 }
 0x152   : > { %v1352_v27 = vpop.f32.mrf.mxu0  ;;  %v4460_v17 = vpop.f32.mrf.mxu1 }
 0x153   : > { %v1399_v30 = vadd.f32 %v1352_v27, %v978_v62  ;;  %v6212_v4 = vadd.f32 %v4457_v9, %v1400_v1 }
 0x154   : > { %v4404_v44 = vpop.f32.mrf.mxu0  ;;  %4739 = vmatmul.mubr.msk.f32.gmra.mxu0 %vm417_vm0, %v2758_v63  ;;  %v1630_v16 = vpop.f32.mrf.mxu1  ;;  %v1645_v63 = vadd.f32 %v6074_v35, %v6080_v7 }
 0x155   : > { %v1402_v40 = vadd.f32 %v4404_v44, %v6027_v21  ;;  %v6218_v57 = vadd.f32 %v1620_v26, %v1399_v30  ;;  %v1647_v44 = vadd.f32 %v6086_v5, %v6092_v61 }
 0x156   : > { %v1362_v19 = vpop.f32.mrf.mxu0  ;;  %v6220_v6 = vpop.f32.mrf.mxu1 }
 0x157   : > { %v1401_v55 = vadd.f32 %v1362_v19, %v988_v24  ;;  %v6222_v60 = vadd.f32 %v4460_v17, %v1402_v40  ;;  %v6983_v19 = vld [vmem:[#allocation2_spill] sm:$0xff] }
 0x158   : > { %v4471_v39 = vpop.f32.mrf.mxu0  ;;  %v6224_v23 = vpop.f32.mrf.mxu1 }
 0x159   : > { %v6228_v37 = vadd.f32 %v1630_v16, %v1401_v55  ;;  %v6231_v12 = vadd.f32 %v4471_v39, %v6043_v47  ;;  %v1649_v55 = vadd.f32 %v6983_v19, %v6104_v53 }
 0x15a   : > { %v1752_v21 = vpop.f32.mrf.mxu0  ;;  %v6233_v34 = vpop.f32.mrf.mxu1 }
 0x15b   : > { %v6235_v51 = vadd.f32 %v1752_v21, %v1639_v15 }
 0x15c   : > { %v4474_v52 = vpop.f32.mrf.mxu0  ;;  %v6237_v36 = vpop.f32.mrf.mxu1 }
 0x15d   : > { %v6242_v9 = vadd.f32 %v4474_v52, %v6055_v8  ;;  %v6984_v52 = vld [vmem:[#allocation3_spill] sm:$0xff] }
 0x15e   : > { %v1762_v25 = vpop.f32.mrf.mxu0  ;;  %v6244_v54 = vpop.f32.mrf.mxu1 }
 0x15f   : > { %v6246_v28 = vadd.f32 %v1762_v25, %v1641_v41  ;;  %v1651_v41 = vadd.f32 %v6984_v52, %v6116_v46  ;;  %v6985_v25 = vld [vmem:[#allocation4_spill] sm:$0xff] }
 0x160   : > { %v4477_v47 = vpop.f32.mrf.mxu0  ;;  %v6248_v3 = vpop.f32.mrf.mxu1 }
 0x161   : > { %v6253_v26 = vadd.f32 %v4477_v47, %v6070_v50 }
 0x162   : > { %v1772_v62 = vpop.f32.mrf.mxu0  ;;  %v6255_v1 = vpop.f32.mrf.mxu1 }
 0x163   : > { %v6257_v42 = vadd.f32 %v1772_v62, %v1643_v14 }
 0x164   : > { %v4480_v48 = vpop.f32.mrf.mxu0  ;;  %v6259_v8 = vpop.f32.mrf.mxu1 }
 0x165   : > { %v6264_v27 = vadd.f32 %v4480_v48, %v6082_v29 }
 0x166   : > { %v1782_v17 = vpop.f32.mrf.mxu0  ;;  %v6266_v30 = vpop.f32.mrf.mxu1 }
 0x167   : > { %v6268_v58 = vadd.f32 %v1782_v17, %v1645_v63  ;;  %v6988_v63 = vld [vmem:[#allocation6_spill] sm:$0xff] }
 0x168   : > { %v4483_v22 = vpop.f32.mrf.mxu0  ;;  %v6270_v50 = vpop.f32.mrf.mxu1  ;;  %v1653_v17 = vadd.f32 %v6988_v63, %v6128_v38 }
 0x169   : > { %v6275_v16 = vadd.f32 %v4483_v22, %v6094_v33 }
 0x16a   : > { %v1792_v24 = vpop.f32.mrf.mxu0  ;;  %v6277_v40 = vpop.f32.mrf.mxu1 }
 0x16b   : > { %v6279_v35 = vadd.f32 %v1792_v24, %v1647_v44 }
 0x16c   : > { %v4486_v7 = vpop.f32.mrf.mxu0  ;;  %v6281_v29 = vpop.f32.mrf.mxu1 }
 0x16d   : > { %v6286_v39 = vadd.f32 %v4486_v7, %v6106_v49 }
 0x16e   : > { %v1802_v15 = vpop.f32.mrf.mxu0  ;;  %v6288_v21 = vpop.f32.mrf.mxu1 }
 0x16f   : > { %v6290_v5 = vadd.f32 %v1802_v15, %v1649_v55 }
 0x170   : > { %v4489_v61 = vpop.f32.mrf.mxu0  ;;  %v6292_v33 = vpop.f32.mrf.mxu1 }
 0x171   : > { %v6297_v47 = vadd.f32 %v4489_v61, %v6985_v25 }
 0x172   : > { %v1812_v14 = vpop.f32.mrf.mxu0  ;;  %v6299_v62 = vpop.f32.mrf.mxu1 }
 0x173   : > { %6986 = vst [vmem:[#allocation7_spill] sm:$0xff] %v6299_v62  ;;  %v6301_v53 = vadd.f32 %v1812_v14, %v1651_v41 }
 0x174   : > { %v4492_v49 = vpop.f32.mrf.mxu0  ;;  %v6303_v48 = vpop.f32.mrf.mxu1 }
 0x175   : > { %6987 = vst [vmem:[#allocation8_spill] sm:$0xff] %v6303_v48  ;;  %v6308_v22 = vadd.f32 %v4492_v49, %v6130_v56 }
 0x176   : > { %v1822_v44 = vpop.f32.mrf.mxu0  ;;  %v6310_v24 = vpop.f32.mrf.mxu1 }
 0x177   : > { %6989 = vst [vmem:[#allocation9_spill] sm:$0xff] %v6310_v24  ;;  %v6312_v46 = vadd.f32 %v1822_v44, %v1653_v17 }
 0x178   : > { %v4495_v7 = vpop.f32.mrf.mxu0  ;;  %v6314_v19 = vpop.f32.mrf.mxu1 }
 0x179   : > { %6990 = vst [vmem:[#allocation11_spill] sm:$0xff] %v6312_v46  ;;  %6991 = vst [vmem:[#allocation12_spill] sm:$0xff] %v6314_v19  ;;  %v6317_v55 = vadd.f32 %v4495_v7, %v6139_v43 }
 0x17a   : > { %v1832_v15 = vpop.f32.mrf.mxu0  ;;  %v6319_v61 = vpop.f32.mrf.mxu1 }
 0x17b   : > { %6992 = vst [vmem:[#allocation14_spill] sm:$0xff] %v6317_v55  ;;  %6993 = vst [vmem:[#allocation15_spill] sm:$0xff] %v6319_v61  ;;  %v6322_v52 = vadd.f32 %v1832_v15, %v6146_v2 }
 0x17c   : > { %v4498_v38 = vpop.f32.mrf.mxu0  ;;  %v6324_v56 = vpop.f32.mrf.mxu1 }
 0x17d   : > { %6994 = vst [vmem:[#allocation17_spill] sm:$0xff] %v6322_v52  ;;  %6995 = vst [vmem:[#allocation18_spill] sm:$0xff] %v6324_v56  ;;  %v6327_v41 = vadd.f32 %v4498_v38, %v6150_v32 }
 0x17e   : > { %v1842_v25 = vpop.f32.mrf.mxu0  ;;  %v6329_v14 = vpop.f32.mrf.mxu1 }
 0x17f   : > { %6996 = vst [vmem:[#allocation20_spill] sm:$0xff] %v6327_v41  ;;  %6997 = vst [vmem:[#allocation21_spill] sm:$0xff] %v6329_v14  ;;  %v6332_v49 = vadd.f32 %v1842_v25, %v6157_v31 }
 0x180   : > { %v4501_v43 = vpop.f32.mrf.mxu0  ;;  %v6334_v63 = vpop.f32.mrf.mxu1 }
 0x181   : > { %6998 = vst [vmem:[#allocation23_spill] sm:$0xff] %v6332_v49  ;;  %6999 = vst [vmem:[#allocation24_spill] sm:$0xff] %v6334_v63  ;;  %v6337_v17 = vadd.f32 %v4501_v43, %v6164_v45 }
 0x182   : > { %v1852_v2 = vpop.f32.mrf.mxu0  ;;  %v6339_v44 = vpop.f32.mrf.mxu1 }
 0x183   : > { %7000 = vst [vmem:[#allocation26_spill] sm:$0xff] %v6337_v17  ;;  %7001 = vst [vmem:[#allocation27_spill] sm:$0xff] %v6339_v44  ;;  %v6342_v7 = vadd.f32 %v1852_v2, %v6171_v10 }
 0x184   : > { %v4504_v32 = vpop.f32.mrf.mxu0  ;;  %v6344_v15 = vpop.f32.mrf.mxu1 }
 0x185   : > { %7002 = vst [vmem:[#allocation29_spill] sm:$0xff] %v6342_v7  ;;  %7003 = vst [vmem:[#allocation30_spill] sm:$0xff] %v6344_v15  ;;  %v6347_v38 = vadd.f32 %v4504_v32, %v6175_v0 }
 0x186   : > { %v1862_v31 = vpop.f32.mrf.mxu0  ;;  %v6349_v25 = vpop.f32.mrf.mxu1 }
 0x187   : > { %7004 = vst [vmem:[#allocation32_spill] sm:$0xff] %v6347_v38  ;;  %7005 = vst [vmem:[#allocation33_spill] sm:$0xff] %v6349_v25  ;;  %v6352_v63 = vadd.f32 %v1862_v31, %v6182_v18 }
 0x188   : > { %v4507_v45 = vpop.f32.mrf.mxu0  ;;  %v6354_v43 = vpop.f32.mrf.mxu1 }
 0x189   : > { %7006 = vst [vmem:[#allocation5_spill] sm:$0xff] %v6352_v63  ;;  %7007 = vst [vmem:[#allocation10_spill] sm:$0xff] %v6354_v43  ;;  %v6357_v44 = vadd.f32 %v4507_v45, %v6188_v59 }
 0x18a   : > { %v1872_v10 = vpop.f32.mrf.mxu0  ;;  %v6359_v2 = vpop.f32.mrf.mxu1 }
 0x18b   : > { %7008 = vst [vmem:[#allocation13_spill] sm:$0xff] %v6357_v44  ;;  %7009 = vst [vmem:[#allocation16_spill] sm:$0xff] %v6359_v2  ;;  %v6362_v15 = vadd.f32 %v1872_v10, %v6195_v20 }
 0x18c   : > { %v4510_v0 = vpop.f32.mrf.mxu0  ;;  %v6364_v32 = vpop.f32.mrf.mxu1 }
 0x18d   : > { %7010 = vst [vmem:[#allocation19_spill] sm:$0xff] %v6362_v15  ;;  %7011 = vst [vmem:[#allocation22_spill] sm:$0xff] %v6364_v32  ;;  %v6367_v25 = vadd.f32 %v4510_v0, %v6201_v13 }
 0x18e   : > { %v1882_v18 = vpop.f32.mrf.mxu0  ;;  %v6369_v31 = vpop.f32.mrf.mxu1 }
 0x18f   : > { %7012 = vst [vmem:[#allocation25_spill] sm:$0xff] %v6367_v25  ;;  %7013 = vst [vmem:[#allocation28_spill] sm:$0xff] %v6369_v31  ;;  %v6372_v43 = vadd.f32 %v1882_v18, %v6208_v11 }
 0x190   : > { %v4513_v59 = vpop.f32.mrf.mxu0  ;;  %v6374_v45 = vpop.f32.mrf.mxu1 }
 0x191   : > { %7014 = vst [vmem:[#allocation31_spill] sm:$0xff] %v6372_v43  ;;  %7015 = vst [vmem:[#allocation34_spill] sm:$0xff] %v6374_v45  ;;  %v6377_v2 = vadd.f32 %v4513_v59, %v6212_v4 }
 0x192   : > { %v1892_v20 = vpop.f32.mrf.mxu0  ;;  %v6379_v10 = vpop.f32.mrf.mxu1 }
 0x193   : > { %7016 = vst [vmem:[#allocation35_spill] sm:$0xff] %v6377_v2  ;;  %7017 = vst [vmem:[#allocation36_spill] sm:$0xff] %v6379_v10  ;;  %v6382_v32 = vadd.f32 %v1892_v20, %v6218_v57 }
 0x194   : > { %v4516_v13 = vpop.f32.mrf.mxu0  ;;  %v6384_v0 = vpop.f32.mrf.mxu1 }
 0x195   : > { %7018 = vst [vmem:[#allocation37_spill] sm:$0xff] %v6382_v32  ;;  %7019 = vst [vmem:[#allocation38_spill] sm:$0xff] %v6384_v0  ;;  %v6387_v31 = vadd.f32 %v4516_v13, %v6222_v60 }
 0x196   : > { %v1902_v11 = vpop.f32.mrf.mxu0  ;;  %v4639_v18 = vpop.f32.mrf.mxu1 }
 0x197   : > { %7020 = vst [vmem:[#allocation39_spill] sm:$0xff] %v6387_v31  ;;  %v6390_v43 = vadd.f32 %v1902_v11, %v6228_v37 }
 0x198   : > { %v4583_v45 = vpop.f32.mrf.mxu0  ;;  %v2563_v59 = vpop.f32.mrf.mxu1 }
 0x199   : > { %7021 = vst [vmem:[#allocation40_spill] sm:$0xff] %v6390_v43 }
 0x19a   : > { %v2291_v4 = vpop.f32.mrf.mxu0  ;;  %v4642_v10 = vpop.f32.mrf.mxu1 }
 0x19c   : > { %v4586_v2 = vpop.f32.mrf.mxu0  ;;  %v6392_v57 = vpop.f32.mrf.mxu1 }
 0x19e   : > { %v2301_v25 = vpop.f32.mrf.mxu0  ;;  %v6398_v60 = vpop.f32.mrf.mxu1 }
 0x1a0   : > { %v4589_v15 = vpop.f32.mrf.mxu0  ;;  %v6404_v37 = vpop.f32.mrf.mxu1 }
 0x1a2   : > { %v6394_v20 = vpop.f32.mrf.mxu0  ;;  %v6410_v32 = vpop.f32.mrf.mxu1 }
 0x1a4   : > { %v6396_v0 = vpop.f32.mrf.mxu0  ;;  %v6416_v38 = vpop.f32.mrf.mxu1 }
 0x1a6   : > { %v6400_v13 = vpop.f32.mrf.mxu0  ;;  %v6422_v17 = vpop.f32.mrf.mxu1 }
 0x1a8   : > { %v6402_v31 = vpop.f32.mrf.mxu0  ;;  %v6428_v61 = vpop.f32.mrf.mxu1 }
 0x1aa   : > { %v6406_v11 = vpop.f32.mrf.mxu0  ;;  %v6434_v52 = vpop.f32.mrf.mxu1 }
 0x1ac   : > { %v6408_v43 = vpop.f32.mrf.mxu0  ;;  %v6440_v48 = vpop.f32.mrf.mxu1 }
 0x1ad   : > { %7030 = vst [vmem:[#allocation49_spill] sm:$0xff] %v6440_v48 }
 0x1ae   : > { %v6412_v44 = vpop.f32.mrf.mxu0 }
 0x1b0   : > { %v6414_v63 = vpop.f32.mrf.mxu0 }
 0x1b2   : > { %v6418_v7 = vpop.f32.mrf.mxu0 }
 0x1b3   : > { %7022 = vst [vmem:[#allocation41_spill] sm:$0xff] %v6418_v7 }
 0x1b4   : > { %v6420_v14 = vpop.f32.mrf.mxu0 }
 0x1b5   : > { %7023 = vst [vmem:[#allocation42_spill] sm:$0xff] %v6420_v14 }
 0x1b6   : > { %v6424_v56 = vpop.f32.mrf.mxu0 }
 0x1b7   : > { %7024 = vst [vmem:[#allocation43_spill] sm:$0xff] %v6424_v56  ;;  %v6446_v56 = vpop.f32.mrf.mxu1 }
 0x1b8   : > { %v6426_v49 = vpop.f32.mrf.mxu0 }
 0x1b9   : > { %7025 = vst [vmem:[#allocation44_spill] sm:$0xff] %v6426_v49 }
 0x1ba   : > { %v6430_v41 = vpop.f32.mrf.mxu0 }
 0x1bb   : > { %7026 = vst [vmem:[#allocation45_spill] sm:$0xff] %v6430_v41  ;;  %v6452_v41 = vpop.f32.mrf.mxu1 }
 0x1bc   : > { %v6432_v19 = vpop.f32.mrf.mxu0  ;;  %7035 = vst [vmem:[#allocation54_spill] sm:$0xff] %v6452_v41 }
 0x1bd   : > { %7027 = vst [vmem:[#allocation46_spill] sm:$0xff] %v6432_v19 }
 0x1be   : > { %v6436_v24 = vpop.f32.mrf.mxu0 }
 0x1bf   : > { %7028 = vst [vmem:[#allocation47_spill] sm:$0xff] %v6436_v24  ;;  %v6458_v24 = vpop.f32.mrf.mxu1 }
 0x1c0   : > { %v6438_v55 = vpop.f32.mrf.mxu0  ;;  %7038 = vst [vmem:[#allocation57_spill] sm:$0xff] %v6458_v24 }
 0x1c1   : > { %7029 = vst [vmem:[#allocation48_spill] sm:$0xff] %v6438_v55 }
 0x1c2   : > { %v6442_v14 = vpop.f32.mrf.mxu0 }
 0x1c3   : > { %7031 = vst [vmem:[#allocation50_spill] sm:$0xff] %v6442_v14  ;;  %v6466_v14 = vpop.f32.mrf.mxu1 }
 0x1c4   : > { %v6444_v46 = vpop.f32.mrf.mxu0  ;;  %7041 = vst [vmem:[#allocation4_spill] sm:$0xff] %v6466_v14 }
 0x1c5   : > { %7032 = vst [vmem:[#allocation51_spill] sm:$0xff] %v6444_v46  ;;  %v2183_v46 = vadd.f32 %v6220_v6, %v6231_v12  ;;  %v2184_v6 = vadd.f32 %v6237_v36, %v6246_v28  ;;  %v2186_v36 = vadd.f32 %v6248_v3, %v6257_v42 }
 0x1c6   : > { %v6448_v49 = vpop.f32.mrf.mxu0 }
 0x1c7   : > { %7033 = vst [vmem:[#allocation52_spill] sm:$0xff] %v6448_v49  ;;  %v2451_v41 = vadd.f32 %v4583_v45, %v2183_v46  ;;  %v2452_v46 = vadd.f32 %v2301_v25, %v2184_v6  ;;  %v2454_v25 = vadd.f32 %v6394_v20, %v2186_v36 }
 0x1c8   : > { %v6450_v7 = vpop.f32.mrf.mxu0 }
 0x1c9   : > { %7034 = vst [vmem:[#allocation53_spill] sm:$0xff] %v6450_v7  ;;  %v2182_v7 = vadd.f32 %v6224_v23, %v6235_v51  ;;  %v2723_v12 = vadd.f32 %v4639_v18, %v2451_v41  ;;  %v2187_v23 = vadd.f32 %v6244_v54, %v6253_v26  ;;  %v2189_v54 = vadd.f32 %v6255_v1, %v6264_v27 }
 0x1ca   : > { %v6454_v19 = vpop.f32.mrf.mxu0  ;;  %v2726_v6 = vadd.f32 %v6404_v37, %v2454_v25 }
 0x1cb   : > { %7036 = vst [vmem:[#allocation55_spill] sm:$0xff] %v6454_v19  ;;  %v2450_v24 = vadd.f32 %v2291_v4, %v2182_v7  ;;  %v2188_v4 = vadd.f32 %v6259_v8, %v6268_v58  ;;  %v2457_v1 = vadd.f32 %v6396_v0, %v2189_v54  ;;  %v2190_v0 = vadd.f32 %v6270_v50, %v6279_v35 }
 0x1cc   : > { %v6456_v62 = vpop.f32.mrf.mxu0 }
 0x1cd   : > { %7037 = vst [vmem:[#allocation56_spill] sm:$0xff] %v6456_v62  ;;  %v2185_v62 = vadd.f32 %v6233_v34, %v6242_v9  ;;  %v2722_v51 = vadd.f32 %v2563_v59, %v2450_v24  ;;  %v6487_v34 = vld [vmem:[%s6784_s2] ss:$0 sm:$0xff]  ;;  %v2456_v8 = vadd.f32 %v6400_v13, %v2188_v4  ;;  %v2193_v13 = vadd.f32 %v6277_v40, %v6286_v39 }
 0x1ce   : > { %v6460_v55 = vpop.f32.mrf.mxu0  ;;  %v2458_v35 = vadd.f32 %v6406_v11, %v2190_v0  ;;  %v2195_v11 = vadd.f32 %v6288_v21, %v6297_v47 }
 0x1cf   : > { %7039 = vst [vmem:[#allocation2_spill] sm:$0xff] %v6460_v55  ;;  %v6476_v55 = vpop.f32.mrf.mxu1  ;;  %v2453_v14 = vadd.f32 %v4586_v2, %v2185_v62  ;;  %v2455_v62 = vadd.f32 %v4589_v15, %v2187_v23  ;;  %v2728_v50 = vadd.f32 %v6416_v38, %v2456_v8  ;;  %v2461_v39 = vadd.f32 %v6408_v43, %v2193_v13  ;;  %v7048_v8 = vld [vmem:[#allocation42_spill] sm:$0xff] }
 0x1d0   : > { %v6462_v48 = vpop.f32.mrf.mxu0  ;;  %v2463_v47 = vadd.f32 %v6414_v63, %v2195_v11  ;;  %v7047_v63 = vld [vmem:[#allocation8_spill] sm:$0xff] }
 0x1d1   : > { %7040 = vst [vmem:[#allocation3_spill] sm:$0xff] %v6462_v48  ;;  %v6489_v9 = vpop.f32.mrf.mxu1  ;;  %v2725_v28 = vadd.f32 %v4642_v10, %v2453_v14  ;;  %v2727_v14 = vadd.f32 %v6398_v60, %v2455_v62  ;;  %v2191_v10 = vadd.f32 %v6266_v30, %v6275_v16  ;;  %v2729_v30 = vadd.f32 %v6410_v32, %v2457_v1 }
 0x1d2   : > { %v6468_v49 = vpop.f32.mrf.mxu0  ;;  %v2192_v32 = vadd.f32 %v6281_v29, %v6290_v5  ;;  %v2730_v29 = vadd.f32 %v6428_v61, %v2458_v35  ;;  %v2733_v21 = vadd.f32 %v6434_v52, %v2461_v39  ;;  %v7046_v52 = vld [vmem:[#allocation11_spill] sm:$0xff]  ;;  %v7055_v39 = vld [vmem:[#allocation57_spill] sm:$0xff] }
 0x1d3   : > { %7042 = vst [vmem:[#allocation6_spill] sm:$0xff] %v6468_v49  ;;  %v6501_v3 = vpop.f32.mrf.mxu1  ;;  %v2459_v16 = vadd.f32 %v6402_v31, %v2191_v10 }
 0x1d4   : > { %v6472_v19 = vpop.f32.mrf.mxu0  ;;  %v2460_v5 = vadd.f32 %v6412_v44, %v2192_v32  ;;  %v7043_v44 = vld [vmem:[#allocation7_spill] sm:$0xff] }
 0x1d5   : > { %v6514_v60 = vpop.f32.mrf.mxu1  ;;  %v2731_v40 = vadd.f32 %v6422_v17, %v2459_v16  ;;  %v2194_v17 = vadd.f32 %v6292_v33, %v6301_v53  ;;  %v2197_v4 = vadd.f32 %v7043_v44, %v6308_v22  ;;  %v7045_v53 = vld [vmem:[#allocation41_spill] sm:$0xff]  ;;  %v2735_v22 = vadd.f32 %v6446_v56, %v2463_v47 }
 0x1d6   : > { %v6478_v48 = vpop.f32.mrf.mxu0  ;;  %v7053_v56 = vld [vmem:[#allocation17_spill] sm:$0xff] }
 0x1d7   : > { %v6528_v31 = vpop.f32.mrf.mxu1  ;;  %v7060_v47 = vld [vmem:[#allocation45_spill] sm:$0xff] }
 0x1d8   : > { %v4695_v49 = vpop.f32.mrf.mxu0 }
 0x1d9   : > { %v2994_v45 = vadd.f32 %v4695_v49, %v2723_v12  ;;  %v2724_v49 = vadd.f32 %v6392_v57, %v2452_v46  ;;  %v6542_v43 = vpop.f32.mrf.mxu1 }
 0x1da   : > { %v2834_v7 = vpop.f32.mrf.mxu0 }
 0x1db   : > { %v2993_v41 = vadd.f32 %v2834_v7, %v2722_v51  ;;  %v3033_v26 = vadd.f32 %v6487_v34, %v2994_v45 }
 0x1dc   : > { %v4698_v24 = vpop.f32.mrf.mxu0 }
 0x1dd   : > { %v3032_v2 = vadd.f32 %v6487_v34, %v2993_v41  ;;  %v2996_v18 = vadd.f32 %v4698_v24, %v2725_v28  ;;  %v3065_v59 = vmax.f32 %v3033_v26, 0.0 }
 0x1de   : > { %v2844_v42 = vpop.f32.mrf.mxu0 }
 0x1df   : > { %v3064_v27 = vmax.f32 %v3032_v2, 0.0  ;;  %v2995_v15 = vadd.f32 %v2844_v42, %v2724_v49  ;;  %v3035_v57 = vadd.f32 %v6487_v34, %v2996_v18 }
 0x1e0   : > { %v4701_v20 = vpop.f32.mrf.mxu0 }
 0x1e1   : > { %v3034_v58 = vadd.f32 %v6487_v34, %v2995_v15  ;;  %v2998_v12 = vadd.f32 %v4701_v20, %v2727_v14  ;;  %4745 = vmatprep.mubr.msk.f32.mxu1 %vm3105_vm3, %v3064_v27  ;;  %v3067_v46 = vmax.f32 %v3035_v57, 0.0  ;;  %v7044_v27 = vld [vmem:[#allocation49_spill] sm:$0xff]  ;;  %v2462_v15 = vadd.f32 %v7045_v53, %v2194_v17  ;;  %v6556_v20 = vpop.f32.mrf.mxu1  ;;  %v7063_v53 = vld [vmem:[#allocation46_spill] sm:$0xff] }
 0x1e2   : > { %v2854_v23 = vpop.f32.mrf.mxu0  ;;  %4746 = vmatmul.mubr.msk.f32.vlgmr.msra.gmra.mxu1 %vm3105_vm3, %v3065_v59  ;;  %v2732_v33 = vadd.f32 %v7044_v27, %v2460_v5  ;;  %v2196_v57 = vadd.f32 %v7047_v63, %v7046_v52  ;;  %v7064_v52 = vld [vmem:[#allocation26_spill] sm:$0xff]  ;;  %v7065_v63 = vld [vmem:[#allocation21_spill] sm:$0xff] }
 0x1e3   : > { %v3066_v37 = vmax.f32 %v3034_v58, 0.0  ;;  %v2997_v51 = vadd.f32 %v2854_v23, %v2726_v6  ;;  %v3037_v45 = vadd.f32 %v6487_v34, %v2998_v12  ;;  %v2465_v58 = vadd.f32 %v7048_v8, %v2197_v4  ;;  %v7049_v23 = vld [vmem:[#allocation14_spill] sm:$0xff]  ;;  %v7061_v4 = vld [vmem:[#allocation23_spill] sm:$0xff] }
 0x1e4   : > { %v4704_v7 = vpop.f32.mrf.mxu0 }
 0x1e5   : > { %v3036_v36 = vadd.f32 %v6487_v34, %v2997_v51  ;;  %v3000_v28 = vadd.f32 %v4704_v7, %v2729_v30  ;;  %4748 = vmatprep.mubr.msk.f32.mxu1 %vm3105_vm3, %v3066_v37  ;;  %v3069_v54 = vmax.f32 %v3037_v45, 0.0  ;;  %v7050_v30 = vld [vmem:[#allocation9_spill] sm:$0xff]  ;;  %v7052_v7 = vld [vmem:[#allocation43_spill] sm:$0xff] }
 0x1e6   : > { %v2864_v62 = vpop.f32.mrf.mxu0  ;;  %4749 = vmatmul.mubr.msk.f32.gmra.mxu1 %vm3105_vm3, %v3067_v46  ;;  %v2199_v16 = vadd.f32 %v7050_v30, %v7049_v23  ;;  %v7051_v46 = vld [vmem:[#allocation54_spill] sm:$0xff] }
 0x1e7   : > { %v3068_v38 = vmax.f32 %v3036_v36, 0.0  ;;  %v2999_v41 = vadd.f32 %v2864_v62, %v2728_v50  ;;  %v3039_v26 = vadd.f32 %v6487_v34, %v3000_v28  ;;  %v2734_v45 = vadd.f32 %v7051_v46, %v2462_v15  ;;  %v7054_v28 = vld [vmem:[#allocation12_spill] sm:$0xff]  ;;  %v6570_v62 = vpop.f32.mrf.mxu1 }
 0x1e8   : > { %v4707_v24 = vpop.f32.mrf.mxu0  ;;  %v2464_v50 = vadd.f32 %v7052_v7, %v2196_v57  ;;  %v2198_v32 = vadd.f32 %v7054_v28, %v7053_v56  ;;  %v2203_v57 = vadd.f32 %v7065_v63, %v7064_v52 }
 0x1e9   : > { %v3038_v49 = vadd.f32 %v6487_v34, %v2999_v41  ;;  %v3002_v25 = vadd.f32 %v4707_v24, %v2731_v40  ;;  %4751 = vmatprep.mubr.msk.f32.mxu1 %vm3105_vm3, %v3068_v38  ;;  %v3071_v42 = vmax.f32 %v3039_v26, 0.0  ;;  %v2737_v38 = vadd.f32 %v7055_v39, %v2465_v58  ;;  %v7056_v41 = vld [vmem:[#allocation44_spill] sm:$0xff] }
 0x1ea   : > { %v2874_v2 = vpop.f32.mrf.mxu0  ;;  %4752 = vmatmul.mubr.msk.f32.gmra.mxu1 %vm3105_vm3, %v3069_v54  ;;  %v2467_v11 = vadd.f32 %v7056_v41, %v2199_v16  ;;  %v7057_v24 = vld [vmem:[#allocation20_spill] sm:$0xff] }
 0x1eb   : > { %v3070_v61 = vmax.f32 %v3038_v49, 0.0  ;;  %v3001_v18 = vadd.f32 %v2874_v2, %v2730_v29  ;;  %v3041_v14 = vadd.f32 %v6487_v34, %v3002_v25  ;;  %v7058_v29 = vld [vmem:[#allocation15_spill] sm:$0xff]  ;;  %v7059_v2 = vld [vmem:[#allocation4_spill] sm:$0xff] }
 0x1ec   : > { %v4710_v1 = vpop.f32.mrf.mxu0  ;;  %v2201_v5 = vadd.f32 %v7058_v29, %v7057_v24  ;;  %v7068_v16 = vld [vmem:[#allocation24_spill] sm:$0xff] }
 0x1ed   : > { %v3040_v10 = vadd.f32 %v6487_v34, %v3001_v18  ;;  %v3004_v59 = vadd.f32 %v4710_v1, %v2733_v21  ;;  %4754 = vmatprep.mubr.msk.f32.mxu1 %vm3105_vm3, %v3070_v61  ;;  %v3073_v37 = vmax.f32 %v3041_v14, 0.0  ;;  %v2736_v21 = vadd.f32 %v7059_v2, %v2464_v50  ;;  %v6584_v1 = vpop.f32.mrf.mxu1 }
 0x1ee   : > { %v2884_v6 = vpop.f32.mrf.mxu0  ;;  %4755 = vmatmul.mubr.msk.f32.gmra.mxu1 %vm3105_vm3, %v3071_v42  ;;  %v2466_v61 = vadd.f32 %v7060_v47, %v2198_v32  ;;  %v7062_v42 = vld [vmem:[#allocation18_spill] sm:$0xff]  ;;  %v2469_v15 = vadd.f32 %v7063_v53, %v2201_v5  ;;  %v7077_v47 = vld [vmem:[#allocation33_spill] sm:$0xff] }
 0x1ef   : > { %v3072_v12 = vmax.f32 %v3040_v10, 0.0  ;;  %v3003_v0 = vadd.f32 %v2884_v6, %v2732_v33  ;;  %v3043_v51 = vadd.f32 %v6487_v34, %v3004_v59  ;;  %v2200_v14 = vadd.f32 %v7062_v42, %v7061_v4 }
 0x1f0   : > { %v4713_v13 = vpop.f32.mrf.mxu0  ;;  %v2739_v33 = vadd.f32 %v6476_v55, %v2467_v11  ;;  %v2738_v58 = vadd.f32 %v6489_v9, %v2466_v61  ;;  %v7067_v55 = vld [vmem:[#allocation29_spill] sm:$0xff]  ;;  %v2741_v46 = vadd.f32 %v6501_v3, %v2469_v15  ;;  %v7080_v15 = vld [vmem:[#allocation10_spill] sm:$0xff] }
 0x1f1   : > { %v3042_v35 = vadd.f32 %v6487_v34, %v3003_v0  ;;  %v3006_v36 = vadd.f32 %v4713_v13, %v2735_v22  ;;  %4757 = vmatprep.mubr.msk.f32.mxu1 %vm3105_vm3, %v3072_v12  ;;  %v3075_v49 = vmax.f32 %v3043_v51, 0.0  ;;  %v7066_v12 = vld [vmem:[#allocation47_spill] sm:$0xff]  ;;  %v2683_v51 = vpop.f32.mrf.mxu1  ;;  %v7073_v3 = vld [vmem:[#allocation5_spill] sm:$0xff] }
 0x1f2   : > { %v2894_v40 = vpop.f32.mrf.mxu0  ;;  %4758 = vmatmul.mubr.msk.f32.gmra.mxu1 %vm3105_vm3, %v3073_v37  ;;  %v2468_v0 = vadd.f32 %v7066_v12, %v2200_v14  ;;  %v2202_v37 = vadd.f32 %v7068_v16, %v7067_v55  ;;  %v7078_v14 = vld [vmem:[#allocation52_spill] sm:$0xff]  ;;  %v7084_v16 = vld [vmem:[#allocation55_spill] sm:$0xff] }
 0x1f3   : > { %v3074_v54 = vmax.f32 %v3042_v35, 0.0  ;;  %v3005_v26 = vadd.f32 %v2894_v40, %v2734_v45  ;;  %v3045_v25 = vadd.f32 %v6487_v34, %v3006_v36  ;;  %v7069_v45 = vld [vmem:[#allocation48_spill] sm:$0xff]  ;;  %v7071_v36 = vld [vmem:[#allocation27_spill] sm:$0xff]  ;;  %v4678_v29 = vpop.f32.mrf.mxu1 }
 0x1f4   : > { %v4716_v17 = vpop.f32.mrf.mxu0  ;;  %v2471_v7 = vadd.f32 %v7069_v45, %v2203_v57  ;;  %v7070_v35 = vld [vmem:[#allocation32_spill] sm:$0xff]  ;;  %v2740_v39 = vadd.f32 %v6514_v60, %v2468_v0  ;;  %v7081_v57 = vld [vmem:[#allocation53_spill] sm:$0xff]  ;;  %v7086_v45 = vld [vmem:[#allocation22_spill] sm:$0xff] }
 0x1f5   : > { %v3044_v18 = vadd.f32 %v6487_v34, %v3005_v26  ;;  %v3008_v44 = vadd.f32 %v4716_v17, %v2737_v38  ;;  %4760 = vmatprep.mubr.msk.f32.mxu1 %vm3105_vm3, %v3074_v54  ;;  %v3077_v6 = vmax.f32 %v3045_v25, 0.0  ;;  %v2205_v56 = vadd.f32 %v7071_v36, %v7070_v35  ;;  %v7072_v38 = vld [vmem:[#allocation50_spill] sm:$0xff]  ;;  %v7075_v25 = vld [vmem:[#allocation51_spill] sm:$0xff]  ;;  %v7087_v36 = vld [vmem:[#allocation56_spill] sm:$0xff] }
 0x1f6   : > { %v2904_v27 = vpop.f32.mrf.mxu0  ;;  %4761 = vmatmul.mubr.msk.f32.gmra.mxu1 %vm3105_vm3, %v3075_v49  ;;  %v2470_v41 = vadd.f32 %v7072_v38, %v2202_v37  ;;  %v7074_v26 = vld [vmem:[#allocation30_spill] sm:$0xff]  ;;  %v2743_v49 = vadd.f32 %v6528_v31, %v2471_v7  ;;  %v7079_v31 = vld [vmem:[#allocation19_spill] sm:$0xff] }
 0x1f7   : > { %v3076_v10 = vmax.f32 %v3044_v18, 0.0  ;;  %v3007_v59 = vadd.f32 %v2904_v27, %v2736_v21  ;;  %v3047_v22 = vadd.f32 %v6487_v34, %v3008_v44  ;;  %v2204_v24 = vadd.f32 %v7074_v26, %v7073_v3  ;;  %v7076_v21 = vld [vmem:[#allocation13_spill] sm:$0xff]  ;;  %v7090_v3 = vld [vmem:[#allocation2_spill] sm:$0xff] }
 0x1f8   : > { %v4719_v8 = vpop.f32.mrf.mxu0  ;;  %v2473_v17 = vadd.f32 %v7075_v25, %v2205_v56  ;;  %v2207_v61 = vadd.f32 %v7077_v47, %v7076_v21  ;;  %v2742_v42 = vadd.f32 %v6542_v43, %v2470_v41  ;;  %v7093_v21 = vld [vmem:[#allocation3_spill] sm:$0xff] }
 0x1f9   : > { %v3046_v23 = vadd.f32 %v6487_v34, %v3007_v59  ;;  %v3010_v30 = vadd.f32 %v4719_v8, %v2739_v33  ;;  %4763 = vmatprep.mubr.msk.f32.mxu1 %vm3105_vm3, %v3076_v10  ;;  %v3079_v28 = vmax.f32 %v3047_v22, 0.0  ;;  %v2472_v27 = vadd.f32 %v7078_v14, %v2204_v24  ;;  %v2693_v59 = vpop.f32.mrf.mxu1  ;;  %v7082_v8 = vld [vmem:[#allocation25_spill] sm:$0xff] }
 0x1fa   : > { %v2914_v13 = vpop.f32.mrf.mxu0  ;;  %4764 = vmatmul.mubr.msk.f32.gmra.mxu1 %vm3105_vm3, %v3077_v6  ;;  %v2206_v10 = vadd.f32 %v7080_v15, %v7079_v31  ;;  %v2745_v63 = vadd.f32 %v6556_v20, %v2473_v17  ;;  %v2475_v6 = vadd.f32 %v7081_v57, %v2207_v61  ;;  %v7085_v20 = vld [vmem:[#allocation31_spill] sm:$0xff] }
 0x1fb   : > { %v3078_v50 = vmax.f32 %v3046_v23, 0.0  ;;  %v3009_v9 = vadd.f32 %v2914_v13, %v2738_v58  ;;  %v3049_v32 = vadd.f32 %v6487_v34, %v3010_v30  ;;  %v7083_v58 = vld [vmem:[#allocation16_spill] sm:$0xff]  ;;  %v2744_v55 = vadd.f32 %v6570_v62, %v2472_v27 }
 0x1fc   : > { %v4722_v40 = vpop.f32.mrf.mxu0  ;;  %v2209_v12 = vadd.f32 %v7083_v58, %v7082_v8  ;;  %v2474_v37 = vadd.f32 %v7084_v16, %v2206_v10  ;;  %v2208_v7 = vadd.f32 %v7086_v45, %v7085_v20  ;;  %v2747_v35 = vadd.f32 %v6584_v1, %v2475_v6  ;;  %v7091_v1 = vld [vmem:[#allocation37_spill] sm:$0xff] }
 0x1fd   : > { %v3048_v11 = vadd.f32 %v6487_v34, %v3009_v9  ;;  %v3012_v54 = vadd.f32 %v4722_v40, %v2741_v46  ;;  %4766 = vmatprep.mubr.msk.f32.mxu1 %vm3105_vm3, %v3078_v50  ;;  %v3081_v18 = vmax.f32 %v3049_v32, 0.0  ;;  %v4681_v50 = vpop.f32.mrf.mxu1  ;;  %v7088_v32 = vld [vmem:[#allocation35_spill] sm:$0xff]  ;;  %v7089_v40 = vld [vmem:[#allocation28_spill] sm:$0xff] }
 0x1fe   : > { %v2924_v5 = vpop.f32.mrf.mxu0  ;;  %4767 = vmatmul.mubr.msk.f32.gmra.mxu1 %vm3105_vm3, %v3079_v28  ;;  %v2477_v56 = vadd.f32 %v7087_v36, %v2209_v12  ;;  %v2476_v26 = vadd.f32 %v7090_v3, %v2208_v7 }
 0x1ff   : > { %v3080_v2 = vmax.f32 %v3048_v11, 0.0  ;;  %v3011_v60 = vadd.f32 %v2924_v5, %v2740_v39  ;;  %v3051_v44 = vadd.f32 %v6487_v34, %v3012_v54  ;;  %v2211_v39 = vadd.f32 %v7089_v40, %v7088_v32  ;;  %v2703_v17 = vpop.f32.mrf.mxu1 }
 0x200   : > { %v4725_v4 = vpop.f32.mrf.mxu0  ;;  %v2746_v54 = vadd.f32 %v2683_v51, %v2474_v37  ;;  %v7094_v51 = vld [vmem:[#allocation39_spill] sm:$0xff] }
 0x201   : > { %v3050_v33 = vadd.f32 %v6487_v34, %v3011_v60  ;;  %v3014_v53 = vadd.f32 %v4725_v4, %v2743_v49  ;;  %4769 = vmatprep.mubr.msk.f32.mxu1 %vm3105_vm3, %v3080_v2  ;;  %v3083_v0 = vmax.f32 %v3051_v44, 0.0  ;;  %v7092_v49 = vld [vmem:[#allocation34_spill] sm:$0xff]  ;;  %v2749_v60 = vadd.f32 %v4678_v29, %v2477_v56  ;;  %v7095_v44 = vld [vmem:[#allocation36_spill] sm:$0xff]  ;;  %v4684_v57 = vpop.f32.mrf.mxu1 }
 0x202   : > { %v2934_v52 = vpop.f32.mrf.mxu0  ;;  %4770 = vmatmul.mubr.msk.f32.gmra.mxu1 %vm3105_vm3, %v3081_v18  ;;  %v2210_v25 = vadd.f32 %v7092_v49, %v7091_v1  ;;  %v2479_v47 = vadd.f32 %v7093_v21, %v2211_v39  ;;  %v2213_v4 = vadd.f32 %v7095_v44, %v7094_v51  ;;  %v7097_v29 = vld [vmem:[#allocation40_spill] sm:$0xff] }
 0x203   : > { %v3082_v22 = vmax.f32 %v3050_v33, 0.0  ;;  %v3013_v43 = vadd.f32 %v2934_v52, %v2742_v42  ;;  %v3053_v23 = vadd.f32 %v6487_v34, %v3014_v53  ;;  %v2748_v33 = vadd.f32 %v2693_v59, %v2476_v26  ;;  %v7096_v53 = vld [vmem:[#allocation6_spill] sm:$0xff]  ;;  %v2713_v37 = vpop.f32.mrf.mxu1 }
 0x204   : > { %v4728_v30 = vpop.f32.mrf.mxu0  ;;  %v2478_v31 = vadd.f32 %v7096_v53, %v2210_v25  ;;  %v7098_v52 = vld [vmem:[#allocation38_spill] sm:$0xff] }
 0x205   : > { %v3052_v13 = vadd.f32 %v6487_v34, %v3013_v43  ;;  %v3016_v46 = vadd.f32 %v4728_v30, %v2745_v63  ;;  %4772 = vmatprep.mubr.msk.f32.mxu1 %vm3105_vm3, %v3082_v22  ;;  %v3085_v38 = vmax.f32 %v3053_v23, 0.0  ;;  %v2212_v63 = vadd.f32 %v7098_v52, %v7097_v29 }
 0x206   : > { %v2944_v9 = vpop.f32.mrf.mxu0  ;;  %4773 = vmatmul.mubr.msk.f32.gmra.mxu1 %vm3105_vm3, %v3083_v0  ;;  %v2751_v22 = vadd.f32 %v4681_v50, %v2479_v47  ;;  %v2481_v43 = vadd.f32 %v6472_v19, %v2213_v4  ;;  %v2750_v23 = vadd.f32 %v2703_v17, %v2478_v31 }
 0x207   : > { %v3084_v28 = vmax.f32 %v3052_v13, 0.0  ;;  %v3015_v62 = vadd.f32 %v2944_v9, %v2744_v55  ;;  %v3055_v41 = vadd.f32 %v6487_v34, %v3016_v46  ;;  %v2480_v30 = vadd.f32 %v6478_v48, %v2212_v63 }
 0x208   : > { %v4731_v11 = vpop.f32.mrf.mxu0  ;;  %v2753_v46 = vadd.f32 %v4684_v57, %v2481_v43 }
 0x209   : > { %v3054_v24 = vadd.f32 %v6487_v34, %v3015_v62  ;;  %v3018_v5 = vadd.f32 %v4731_v11, %v2747_v35  ;;  %4775 = vmatprep.mubr.msk.f32.mxu1 %vm3105_vm3, %v3084_v28  ;;  %v3087_v42 = vmax.f32 %v3055_v41, 0.0  ;;  %v2752_v9 = vadd.f32 %v2713_v37, %v2480_v30  ;;  %v6676_v41 = vld [vmem:[%s6786_s4] ss:$0 sm:$0xff] }
 0x20a   : > { %v2954_v2 = vpop.f32.mrf.mxu0  ;;  %4776 = vmatmul.mubr.msk.f32.gmra.mxu1 %vm3105_vm3, %v3085_v38 }
 0x20b   : > { %v3086_v61 = vmax.f32 %v3054_v24, 0.0  ;;  %v3017_v18 = vadd.f32 %v2954_v2, %v2746_v54  ;;  %v3057_v14 = vadd.f32 %v6487_v34, %v3018_v5 }
 0x20c   : > { %v4734_v27 = vpop.f32.mrf.mxu0 }
 0x20d   : > { %v3056_v15 = vadd.f32 %v6487_v34, %v3017_v18  ;;  %v3020_v10 = vadd.f32 %v4734_v27, %v2749_v60  ;;  %4778 = vmatprep.mubr.msk.f32.mxu1 %vm3105_vm3, %v3086_v61  ;;  %v3089_v59 = vmax.f32 %v3057_v14, 0.0 }
 0x20e   : > { %v2964_v6 = vpop.f32.mrf.mxu0  ;;  %4779 = vmatmul.mubr.msk.f32.gmra.mxu1 %vm3105_vm3, %v3087_v42 }
 0x20f   : > { %v3088_v8 = vmax.f32 %v3056_v15, 0.0  ;;  %v3019_v58 = vadd.f32 %v2964_v6, %v2748_v33  ;;  %v3059_v12 = vadd.f32 %v6487_v34, %v3020_v10 }
 0x210   : > { %v4737_v0 = vpop.f32.mrf.mxu0 }
 0x211   : > { %v3058_v55 = vadd.f32 %v6487_v34, %v3019_v58  ;;  %v3022_v16 = vadd.f32 %v4737_v0, %v2751_v22  ;;  %4781 = vmatprep.mubr.msk.f32.mxu1 %vm3105_vm3, %v3088_v8  ;;  %v3091_v45 = vmax.f32 %v3059_v12, 0.0 }
 0x212   : > { %v2974_v13 = vpop.f32.mrf.mxu0  ;;  %4782 = vmatmul.mubr.msk.f32.gmra.mxu1 %vm3105_vm3, %v3089_v59 }
 0x213   : > { %v3090_v19 = vmax.f32 %v3058_v55, 0.0  ;;  %v3021_v20 = vadd.f32 %v2974_v13, %v2750_v23  ;;  %v3061_v7 = vadd.f32 %v6487_v34, %v3022_v16 }
 0x214   : > { %v4740_v50 = vpop.f32.mrf.mxu0 }
 0x215   : > { %v3060_v35 = vadd.f32 %v6487_v34, %v3021_v20  ;;  %v3024_v48 = vadd.f32 %v4740_v50, %v2753_v46  ;;  %4784 = vmatprep.mubr.msk.f32.mxu1 %vm3105_vm3, %v3090_v19  ;;  %v3093_v62 = vmax.f32 %v3061_v7, 0.0 }
 0x216   : > { %v2984_v36 = vpop.f32.mrf.mxu0  ;;  %4785 = vmatmul.mubr.msk.f32.gmra.mxu1 %vm3105_vm3, %v3091_v45 }
 0x217   : > { %v3092_v56 = vmax.f32 %v3060_v35, 0.0  ;;  %v3023_v28 = vadd.f32 %v2984_v36, %v2752_v9  ;;  %v3063_v32 = vadd.f32 %v6487_v34, %v3024_v48 }
 0x219   : > { %v3062_v40 = vadd.f32 %v6487_v34, %v3023_v28  ;;  %4787 = vmatprep.mubr.msk.f32.mxu1 %vm3105_vm3, %v3092_v56  ;;  %v3095_v38 = vmax.f32 %v3063_v32, 0.0 }
 0x21a   : > { %4788 = vmatmul.mubr.msk.f32.gmra.mxu1 %vm3105_vm3, %v3093_v62 }
 0x21b   : > { %v3094_v39 = vmax.f32 %v3062_v40, 0.0 }
 0x21d   : > { %4790 = vmatprep.mubr.msk.f32.mxu1 %vm3105_vm3, %v3094_v39 }
 0x21e   : > { %4791 = vmatmul.mubr.msk.f32.gmra.mxu1 %vm3105_vm3, %v3095_v38 }
 0x2a2   : > { %v4747_v34 = vpop.f32.mrf.mxu1 }
 0x2a3   : > { %v3274_v11 = vadd.f32 %v4747_v34, %v6676_v41 }
 0x2a4   : > { %v3268_v54 = vpop.f32.mrf.mxu1 }
 0x2a5   : > { %3428 = vst.msk [vmem:[%s6681_s15 + $0x8] sm:$0xff] %vm3105_vm3, %v3274_v11  ;;  %v3269_v3 = vadd.f32 %v6676_v41, %v3268_v54 }
 0x2a6   : > { %v4750_v26 = vpop.f32.mrf.mxu1 }
 0x2a7   : > { %3427 = vst.msk [vmem:[%s6681_s15] sm:$0xff] %vm3105_vm3, %v3269_v3  ;;  %v3284_v24 = vadd.f32 %v4750_v26, %v6676_v41 }
 0x2a8   : > { %v3278_v5 = vpop.f32.mrf.mxu1 }
 0x2a9   : > { %3430 = vst.msk [vmem:[%s6681_s15 + $0x18] sm:$0xff] %vm3105_vm3, %v3284_v24  ;;  %v3279_v1 = vadd.f32 %v6676_v41, %v3278_v5 }
 0x2aa   : > { %v4753_v49 = vpop.f32.mrf.mxu1 }
 0x2ab   : > { %3429 = vst.msk [vmem:[%s6681_s15 + $0x10] sm:$0xff] %vm3105_vm3, %v3279_v1  ;;  %v3294_v25 = vadd.f32 %v4753_v49, %v6676_v41 }
 0x2ac   : > { %v3288_v17 = vpop.f32.mrf.mxu1 }
 0x2ad   : > { %3432 = vst.msk [vmem:[%s6681_s15 + $0x28] sm:$0xff] %vm3105_vm3, %v3294_v25  ;;  %v3289_v2 = vadd.f32 %v6676_v41, %v3288_v17 }
 0x2ae   : > { %v4756_v60 = vpop.f32.mrf.mxu1 }
 0x2af   : > { %3431 = vst.msk [vmem:[%s6681_s15 + $0x20] sm:$0xff] %vm3105_vm3, %v3289_v2  ;;  %v3304_v21 = vadd.f32 %v4756_v60, %v6676_v41 }
 0x2b0   : > { %v3298_v47 = vpop.f32.mrf.mxu1 }
 0x2b1   : > { %3434 = vst.msk [vmem:[%s6681_s15 + $0x38] sm:$0xff] %vm3105_vm3, %v3304_v21  ;;  %v3299_v61 = vadd.f32 %v6676_v41, %v3298_v47 }
 0x2b2   : > { %v4759_v18 = vpop.f32.mrf.mxu1 }
 0x2b3   : > { %3433 = vst.msk [vmem:[%s6681_s15 + $0x30] sm:$0xff] %vm3105_vm3, %v3299_v61  ;;  %v3314_v51 = vadd.f32 %v4759_v18, %v6676_v41 }
 0x2b4   : > { %v3308_v44 = vpop.f32.mrf.mxu1 }
 0x2b5   : > { %3436 = vst.msk [vmem:[%s6681_s15 + $0x48] sm:$0xff] %vm3105_vm3, %v3314_v51  ;;  %v3309_v4 = vadd.f32 %v6676_v41, %v3308_v44 }
 0x2b6   : > { %v4762_v42 = vpop.f32.mrf.mxu1 }
 0x2b7   : > { %3435 = vst.msk [vmem:[%s6681_s15 + $0x40] sm:$0xff] %vm3105_vm3, %v3309_v4  ;;  %v3324_v14 = vadd.f32 %v4762_v42, %v6676_v41 }
 0x2b8   : > { %v3318_v27 = vpop.f32.mrf.mxu1 }
 0x2b9   : > { %3438 = vst.msk [vmem:[%s6681_s15 + $0x58] sm:$0xff] %vm3105_vm3, %v3324_v14  ;;  %v3319_v33 = vadd.f32 %v6676_v41, %v3318_v27 }
 0x2ba   : > { %v4765_v53 = vpop.f32.mrf.mxu1 }
 0x2bb   : > { %3437 = vst.msk [vmem:[%s6681_s15 + $0x50] sm:$0xff] %vm3105_vm3, %v3319_v33  ;;  %v3334_v31 = vadd.f32 %v4765_v53, %v6676_v41 }
 0x2bc   : > { %v3328_v15 = vpop.f32.mrf.mxu1 }
 0x2bd   : > { %3440 = vst.msk [vmem:[%s6681_s15 + $0x68] sm:$0xff] %vm3105_vm3, %v3334_v31  ;;  %v3329_v10 = vadd.f32 %v6676_v41, %v3328_v15 }
 0x2be   : > { %v4768_v29 = vpop.f32.mrf.mxu1 }
 0x2bf   : > { %3439 = vst.msk [vmem:[%s6681_s15 + $0x60] sm:$0xff] %vm3105_vm3, %v3329_v10  ;;  %v3344_v52 = vadd.f32 %v4768_v29, %v6676_v41 }
 0x2c0   : > { %v3338_v63 = vpop.f32.mrf.mxu1 }
 0x2c1   : > { %3442 = vst.msk [vmem:[%s6681_s15 + $0x78] sm:$0xff] %vm3105_vm3, %v3344_v52  ;;  %v3339_v57 = vadd.f32 %v6676_v41, %v3338_v63 }
 0x2c2   : > { %v4771_v6 = vpop.f32.mrf.mxu1 }
 0x2c3   : > { %3441 = vst.msk [vmem:[%s6681_s15 + $0x70] sm:$0xff] %vm3105_vm3, %v3339_v57  ;;  %v3354_v22 = vadd.f32 %v4771_v6, %v6676_v41 }
 0x2c4   : > { %v3348_v43 = vpop.f32.mrf.mxu1 }
 0x2c5   : > { %3444 = vst.msk [vmem:[%s6681_s15 + $0x88] sm:$0xff] %vm3105_vm3, %v3354_v22  ;;  %v3349_v8 = vadd.f32 %v6676_v41, %v3348_v43 }
 0x2c6   : > { %v4774_v58 = vpop.f32.mrf.mxu1 }
 0x2c7   : > { %3443 = vst.msk [vmem:[%s6681_s15 + $0x80] sm:$0xff] %vm3105_vm3, %v3349_v8  ;;  %v3364_v59 = vadd.f32 %v4774_v58, %v6676_v41 }
 0x2c8   : > { %v3358_v12 = vpop.f32.mrf.mxu1 }
 0x2c9   : > { %3446 = vst.msk [vmem:[%s6681_s15 + $0x98] sm:$0xff] %vm3105_vm3, %v3364_v59  ;;  %v3359_v0 = vadd.f32 %v6676_v41, %v3358_v12 }
 0x2ca   : > { %v4777_v23 = vpop.f32.mrf.mxu1 }
 0x2cb   : > { %3445 = vst.msk [vmem:[%s6681_s15 + $0x90] sm:$0xff] %vm3105_vm3, %v3359_v0  ;;  %v3374_v30 = vadd.f32 %v4777_v23, %v6676_v41 }
 0x2cc   : > { %v3368_v55 = vpop.f32.mrf.mxu1 }
 0x2cd   : > { %3448 = vst.msk [vmem:[%s6681_s15 + $0xa8] sm:$0xff] %vm3105_vm3, %v3374_v30  ;;  %v3369_v16 = vadd.f32 %v6676_v41, %v3368_v55 }
 0x2ce   : > { %v4780_v37 = vpop.f32.mrf.mxu1 }
 0x2cf   : > { %3447 = vst.msk [vmem:[%s6681_s15 + $0xa0] sm:$0xff] %vm3105_vm3, %v3369_v16  ;;  %v3384_v13 = vadd.f32 %v4780_v37, %v6676_v41 }
 0x2d0   : > { %v3378_v46 = vpop.f32.mrf.mxu1 }
 0x2d1   : > { %3450 = vst.msk [vmem:[%s6681_s15 + $0xb8] sm:$0xff] %vm3105_vm3, %v3384_v13  ;;  %v3379_v19 = vadd.f32 %v6676_v41, %v3378_v46 }
 0x2d2   : > { %v4783_v20 = vpop.f32.mrf.mxu1 }
 0x2d3   : > { %3449 = vst.msk [vmem:[%s6681_s15 + $0xb0] sm:$0xff] %vm3105_vm3, %v3379_v19  ;;  %v3394_v45 = vadd.f32 %v4783_v20, %v6676_v41 }
 0x2d4   : > { %v3388_v7 = vpop.f32.mrf.mxu1 }
 0x2d5   : > { %3452 = vst.msk [vmem:[%s6681_s15 + $0xc8] sm:$0xff] %vm3105_vm3, %v3394_v45  ;;  %v3389_v50 = vadd.f32 %v6676_v41, %v3388_v7 }
 0x2d6   : > { %v4786_v9 = vpop.f32.mrf.mxu1 }
 0x2d7   : > { %3451 = vst.msk [vmem:[%s6681_s15 + $0xc0] sm:$0xff] %vm3105_vm3, %v3389_v50  ;;  %v3404_v35 = vadd.f32 %v4786_v9, %v6676_v41 }
 0x2d8   : > { %v3398_v48 = vpop.f32.mrf.mxu1 }
 0x2d9   : > { %3454 = vst.msk [vmem:[%s6681_s15 + $0xd8] sm:$0xff] %vm3105_vm3, %v3404_v35  ;;  %v3399_v36 = vadd.f32 %v6676_v41, %v3398_v48 }
 0x2da   : > { %v4789_v56 = vpop.f32.mrf.mxu1 }
 0x2db   : > { %3453 = vst.msk [vmem:[%s6681_s15 + $0xd0] sm:$0xff] %vm3105_vm3, %v3399_v36  ;;  %v3414_v28 = vadd.f32 %v4789_v56, %v6676_v41 }
 0x2dc   : > { %v3408_v62 = vpop.f32.mrf.mxu1 }
 0x2dd   : > { %3456 = vst.msk [vmem:[%s6681_s15 + $0xe8] sm:$0xff] %vm3105_vm3, %v3414_v28  ;;  %v3409_v32 = vadd.f32 %v6676_v41, %v3408_v62 }
 0x2de   : > { %v4792_v40 = vpop.f32.mrf.mxu1 }
 0x2df   : > { %3455 = vst.msk [vmem:[%s6681_s15 + $0xe0] sm:$0xff] %vm3105_vm3, %v3409_v32  ;;  %v3424_v39 = vadd.f32 %v4792_v40, %v6676_v41 }
 0x2e0   : > { %v3418_v38 = vpop.f32.mrf.mxu1 }
 0x2e1   : > { %3458 = vst.msk [vmem:[%s6681_s15 + $0xf8] sm:$0xff] %vm3105_vm3, %v3424_v39  ;;  %v3419_v34 = vadd.f32 %v6676_v41, %v3418_v38 }
 0x2e3   : > { %3457 = vst.msk [vmem:[%s6681_s15 + $0xf0] sm:$0xff] %vm3105_vm3, %v3419_v34 }
 0x2e4 PF: > { %s15_s18 = sadd.s32 1, %s4808_s18  }
 0x2e5   : > { %p12_p4 = scmp.ge.s32.totalorder %s15_s18, 4  }
 0x2e7   :  { %14 = sbr.rel (!%p12_p4) target bundleno = 1 (0x1), region = 78 }

// kernel: projector_forward.5
= control target key start
LH: loop header
LB: loop body
LE: loop exit
PB: predicated region body
PF: predicated region fallthrough
CT: control target
= control target key end

     0   :  { %8 = vsyncpa [#allocation3], 0  ;;  %s4548_s0 = inlined_call_operand.vmem [shape: f32[2,18,18,16], index: 0, kind: input, shape index: {}]   ;;  %s4549_s1 = inlined_call_operand.vmem [shape: f32[2,9,16], index: 1, kind: input, shape index: {}]   ;;  %s4550_s2 = inlined_call_operand.vmem [shape: f32[2,1,1], index: 2, kind: input, shape index: {}]   ;;  %s4551_s3 = inlined_call_operand.hbm [shape: f32[2,16,16], index: 3, kind: output, shape index: {}]  }
   0x1   :  { %10 = vsyncpa [#allocation3 + $0x1], 0  ;;  %s2525_s12 = smov 0   ;;  %s2527_s13 = smov 0  }
   0x2   :  { %s2529_s14 = smov 0   ;;  %s2531_s15 = smov 0  }
   0x3 LB: > { %s2546_s16 = sadd.s32 4294967295, %s2499_s15   ;;  %s2370_s17 = sadd.s32 4294967294, %s2499_s15   ;;  %s2499_s15 = sphi %s2531_s15, %s4603_s15   ;;  %s2495_s14 = sphi %s2529_s14, %s4602_s14   ;;  %s2491_s13 = sphi %s2527_s13, %s4601_s13   ;;  %s2487_s12 = sphi %s2525_s12, %s4600_s12  }
   0x4   : > { %s2550_s18 = sadd.s32 1, %s2499_s15   ;;  %s101_s19 = sadd.s32 1, %s2495_s14 }
   0x5   : > { %s98_s20 = ssub.s32 %s2499_s15, %s2550_s18  ;;  %p111_p0 = scmp.ne.s32.totalorder %s2495_s14, %s2491_s13 }
   0x6   : > { %p99_p1 = scmp.eq.s32.totalorder %s98_s20, 0  ;;  %p112_p2 = scmp.eq.s32.totalorder %s2546_s16, 1 }
   0x7   : > { %p117_p3 = scmp.ne.s32.totalorder %s2491_s13, %s2487_s12  ;;  %p118_p4 = scmp.eq.s32.totalorder %s2370_s17, 1 }
   0x8   : > { %s2561_s21 = scalar_select %p99_p1, %s2495_s14, %s101_s19  }
   0x9   : > { %p2563_p5 = por %p112_p2, %p111_p0  ;;  %p2567_p6 = por %p118_p4, %p117_p3 }
   0xa   : > { %p2373_p7 = scmp.ge.s32.totalorder %s2499_s15, 1  ;;  %p158_p8 = scmp.lt.s32.totalorder %s2499_s15, 3 }
   0xc   : > { %p159_p9 = pnand %p2373_p7, %p158_p8 }
   0xd   : > { %p190_p10 = scmp.lt.s32.totalorder (!%p159_p9), %s2546_s16, 1  ;;  %s187_s9 = sand.u32 (!%p159_p9), 1, %s2491_s13  }
   0xe   : > { %162 = sbr.rel (%p159_p9) target bundleno = 498 (0x1f2), region = 32  ;;  %s4440_s10 = sshll.u32 (!%p159_p9), %s187_s9, 4 }
   0xf   : > { %s2386_s11 = sshll.u32 (!%p159_p9), %s2546_s16, 8  ;;  %s189_s17 = scalar_lea.vmem (!%p159_p9), [#allocation2], %s4440_s10 }
  0x10   : > { %s2287_s19 = sshll.u32 (!%p159_p9), %s189_s17, 4  ;;  %s2502_s27 = smov (!%p159_p9), [#allocation2]   ;;  %s4496_s19 = int_to_ptr.vmem [resolvable:$true] %s2287_s19 }
  0x11   : > { %s2443_s28 = sshll.u32 (!%p159_p9), %s2502_s27, 4  ;;  %s2444_s28 = int_to_ptr.vmem [resolvable:$false] %s2443_s28 }
  0x12   : > { %p2446_p0 = scmp.lt.s32.totalorder (!%p159_p9), %s4496_s19, %s2444_s28 }
  0x13   : > { %v4552_v0 = vlaneseq  ;;  %s2575_s24 = scalar_select %p190_p10, %s2546_s16, 1  ;;  %vm427_vm0 = vcmask 1046528   ;;  %vm672_vm1 = vcmask 1045504   ;;  %vm1929_vm2 = vcmask 130048  }
  0x14   : > { %vm2111_vm3 = vcmask 130112   ;;  %vm2248_vm4 = vcmask 1041409   ;;  %vm2250_vm5 = vcmask 1042434   ;;  %vm2252_vm6 = vcmask 1043459  }
  0x15   : > { %v2578_v1 = vshrl.u32 %v4552_v0, 7  ;;  %s2387_s25 = smul.u32 432, %s2575_s24  ;;  %s2385_s26 = sshll.u32 %s2575_s24, 4  ;;  %vm2254_vm7 = vcmask 1044484   ;;  %vm2256_vm8 = vcmask 1045509   ;;  %vm2258_vm9 = vcmask 1046534  }
  0x16   : > { %s2589_s29 = scalar_lea.vmem %s4549_s1, %s2385_s26  ;;  %s202_s8 = scalar_lea.vmem %s4550_s2, %s2575_s24  ;;  %vm2260_vm10 = vcmask 1047559  }
  0x17   : > { %v261_v2 = vsub.s32 0, %v2578_v1  ;;  %v329_v3 = vsub.s32 1, %v2578_v1  ;;  %v574_v4 = vsub.s32 2, %v2578_v1  ;;  %v819_v5 = vsub.s32 3, %v2578_v1  ;;  %s2598_s5 = scalar_lea.vmem %s4548_s0, %s2387_s25  ;;  %v257_v10 = vld [vmem:[%s2589_s29] sm:$0xff]  ;;  %s4494_s24 = scalar_lea.hbm %s4551_s3, %s2386_s11 }
  0x18   : > { %v887_v6 = vsub.s32 4, %v2578_v1  ;;  %v1131_v7 = vsub.s32 5, %v2578_v1  ;;  %v1375_v8 = vsub.s32 6, %v2578_v1  ;;  %v1443_v9 = vsub.s32 7, %v2578_v1  ;;  %v203_v11 = vld [vmem:[%s2598_s5] sm:$0xff]  ;;  %v204_v12 = vld [vmem:[%s2598_s5 + $0x8] sm:$0xff] }
  0x19   : > { %v2604_v13 = vld [vmem:[%s2598_s5 + $0x18] sm:$0xff]  ;;  %v2606_v14 = vrot.slane %v257_v10, %v261_v2  ;;  %v2608_v15 = vrot.slane %v257_v10, %v329_v3  ;;  %v2610_v16 = vrot.slane %v257_v10, %v574_v4  ;;  %v2613_v17 = vld [vmem:[%s2598_s5 + $0x20] sm:$0xff]  ;;  %v2615_v18 = vrot.slane %v257_v10, %v819_v5  ;;  %v2629_v26 = vld [vmem:[%s2598_s5 + $0x30] sm:$0xff]  ;;  %s4508_s25 = scalar_lea.sflag [#allocation3], %s187_s9  ;;  %s2439_s26 = scalar_lea.vmem %s4496_s19, 256 }
  0x1a   : > { %v2617_v19 = vrot.slane %v257_v10, %v887_v6  ;;  %v2619_v20 = vrot.slane %v257_v10, %v1131_v7  ;;  %v2621_v21 = vrot.slane %v257_v10, %v1375_v8  ;;  %v2626_v25 = vrot.slane %v257_v10, %v1443_v9  ;;  %v2640_v35 = vld [vmem:[%s2598_s5 + $0x38] sm:$0xff]  ;;  %v2643_v36 = vld [vmem:[%s2589_s29 + $0x8] ss:$0 sm:$0xff]  ;;  %v205_v45 = vld [vmem:[%s2598_s5 + $0x10] sm:$0x3]  ;;  %p2440_p11 = scmp.ne.s32.totalorder %s4496_s19, %s2439_s26 }
  0x1b   : > { %v331_v22 = vmul.f32 %v2608_v15, %v203_v11  ;;  %v332_v23 = vmul.f32 %v2608_v15, %v204_v12  ;;  %v576_v24 = vmul.f32 %v2610_v16, %v203_v11  ;;  %v263_v27 = vmul.f32 %v2606_v14, %v203_v11  ;;  %v2665_v54 = vld [vmem:[%s2598_s5 + $0x28] sm:$0x3]  ;;  %v2674_v3 = vld [vmem:[%s2598_s5 + $0x40] sm:$0x3] }
  0x1c   : > { %v577_v28 = vmul.f32 %v2610_v16, %v204_v12  ;;  %v889_v29 = vmul.f32 %v2617_v19, %v2604_v13  ;;  %v890_v30 = vmul.f32 %v2617_v19, %v2613_v17  ;;  %v1133_v34 = vmul.f32 %v2619_v20, %v2604_v13  ;;  %p2441_p12 = pnand %p2440_p11, %p2563_p5 }
  0x1d   : > { %v428_v31 = vrot.slane %v331_v22, 1  ;;  %v429_v32 = vrot.slane %v332_v23, 1  ;;  %v673_v33 = vrot.slane %v576_v24, 2  ;;  %v1134_v40 = vmul.f32 %v2619_v20, %v2613_v17 }
  0x1e   : > { %v674_v37 = vrot.slane %v577_v28, 2  ;;  %v985_v38 = vrot.slane %v889_v29, 1  ;;  %v986_v39 = vrot.slane %v890_v30, 1  ;;  %v821_v42 = vmul.f32 %v2615_v18, %v2604_v13  ;;  %p2442_p13 = pneg %p2441_p12 }
  0x1f   : > { %v430_v41 = vsel %vm427_vm0, %v428_v31, %v429_v32  ;;  %v1229_v43 = vrot.slane %v1133_v34, 2  ;;  %v1445_v44 = vmul.f32 %v2626_v25, %v2629_v26  ;;  %v1230_v48 = vrot.slane %v1134_v40, 2 }
  0x20   : > { %v540_v46 = vadd.f32 %v430_v41, %v263_v27  ;;  %v675_v47 = vsel %vm672_vm1, %v673_v33, %v674_v37  ;;  %v1377_v49 = vmul.f32 %v2621_v21, %v2629_v26  ;;  %v1446_v50 = vmul.f32 %v2626_v25, %v2640_v35 }
  0x21   : > { %v1541_v51 = vrot.slane %v1445_v44, 1  ;;  %v1689_v52 = vmul.f32 %v2643_v36, %v2629_v26  ;;  %v2662_v53 = vmul.f32 %v2643_v36, %v2640_v35  ;;  %v987_v56 = vsel %vm427_vm0, %v985_v38, %v986_v39 }
  0x22   : > { %v785_v55 = vadd.f32 %v675_v47, %v540_v46  ;;  %v264_v57 = vmul.f32 %v2606_v14, %v204_v12  ;;  %v333_v58 = vmul.f32 %v2608_v15, %v205_v45  ;;  %v1542_v59 = vrot.slane %v1446_v50, 1 }
  0x23   : > { %v1785_v60 = vrot.slane %v1689_v52, 2  ;;  %v1786_v61 = vrot.slane %v2662_v53, 2  ;;  %v578_v62 = vmul.f32 %v2610_v16, %v205_v45  ;;  %v1231_v2 = vsel %vm672_vm1, %v1229_v43, %v1230_v48 }
  0x24   : > { %v853_v63 = vadd.f32 %v821_v42, %v785_v55  ;;  %v431_v4 = vrot.slane %v333_v58, 1  ;;  %v891_v5 = vmul.f32 %v2617_v19, %v2665_v54  ;;  %v1543_v6 = vsel %vm427_vm0, %v1541_v51, %v1542_v59 }
  0x25   : > { %v676_v7 = vrot.slane %v578_v62, 2  ;;  %v822_v8 = vmul.f32 %v2615_v18, %v2613_v17  ;;  %v1135_v9 = vmul.f32 %v2619_v20, %v2665_v54  ;;  %v1787_v11 = vsel %vm672_vm1, %v1785_v60, %v1786_v61  ;;  %v2728_v62 = vld [vmem:[%s2598_s5 + $0x50] sm:$0xff] }
  0x26   : > { %v1097_v10 = vadd.f32 %v987_v56, %v853_v63  ;;  %v432_v12 = vsel %vm427_vm0, %v429_v32, %v431_v4  ;;  %v988_v22 = vrot.slane %v891_v5, 1  ;;  %v1447_v28 = vmul.f32 %v2626_v25, %v2674_v3  ;;  %v2716_v56 = vld [vmem:[%s2598_s5 + $0x48] sm:$0xff] }
  0x27   : > { %v541_v23 = vadd.f32 %v432_v12, %v264_v57  ;;  %v677_v24 = vsel %vm672_vm1, %v674_v37, %v676_v7  ;;  %v1232_v27 = vrot.slane %v1135_v9, 2  ;;  %v1378_v31 = vmul.f32 %v2621_v21, %v2640_v35 }
  0x28   : > { %v1341_v29 = vadd.f32 %v1231_v2, %v1097_v10  ;;  %v989_v30 = vsel %vm427_vm0, %v986_v39, %v988_v22  ;;  %v1691_v33 = vmul.f32 %v2643_v36, %v2674_v3  ;;  %v1544_v38 = vrot.slane %v1447_v28, 1  ;;  %v227_v28 = vld [vmem:[%s2598_s5 + $0xc0] sm:$0xff] }
  0x29   : > { %v786_v34 = vadd.f32 %v677_v24, %v541_v23  ;;  %v265_v32 = vmul.f32 %v2606_v14, %v2604_v13  ;;  %v334_v37 = vmul.f32 %v2608_v15, %v2604_v13  ;;  %v1233_v41 = vsel %vm672_vm1, %v1230_v48, %v1232_v27 }
  0x2a   : > { %v1409_v40 = vadd.f32 %v1377_v49, %v1341_v29  ;;  %v2700_v39 = vmul.f32 %v2608_v15, %v2613_v17  ;;  %v579_v42 = vmul.f32 %v2610_v16, %v2604_v13  ;;  %v1788_v44 = vrot.slane %v1691_v33, 2  ;;  %v2758_v33 = vld [vmem:[%s2598_s5 + $0xc8] sm:$0xff] }
  0x2b   : > { %v854_v43 = vadd.f32 %v822_v8, %v786_v34  ;;  %v433_v45 = vrot.slane %v334_v37, 1  ;;  %v2706_v46 = vmul.f32 %v2610_v16, %v2613_v17  ;;  %v1545_v49 = vsel %vm427_vm0, %v1542_v59, %v1544_v38 }
  0x2c   : > { %v1653_v47 = vadd.f32 %v1543_v6, %v1409_v40  ;;  %v434_v48 = vrot.slane %v2700_v39, 1  ;;  %v678_v50 = vrot.slane %v579_v42, 2  ;;  %v823_v13 = vmul.f32 %v2615_v18, %v2629_v26 }
  0x2d   : > { %v1098_v51 = vadd.f32 %v989_v30, %v854_v43  ;;  %v679_v52 = vrot.slane %v2706_v46, 2  ;;  %v892_v53 = vmul.f32 %v2617_v19, %v2629_v26  ;;  %v2723_v58 = vmul.f32 %v2617_v19, %v2640_v35 }
  0x2e   : > { %v1897_v55 = vadd.f32 %v1787_v11, %v1653_v47  ;;  %v435_v57 = vsel %vm427_vm0, %v433_v45, %v434_v48  ;;  %v1136_v59 = vmul.f32 %v2619_v20, %v2629_v26  ;;  %v2737_v7 = vmul.f32 %v2619_v20, %v2640_v35 }
  0x2f   : > { %v1342_v60 = vadd.f32 %v1233_v41, %v1098_v51  ;;  %v542_v63 = vadd.f32 %v435_v57, %v265_v32  ;;  %v680_v2 = vsel %vm672_vm1, %v678_v50, %v679_v52  ;;  %v990_v4 = vrot.slane %v892_v53, 1  ;;  %v2786_v57 = vld [vmem:[%s2598_s5 + $0xd8] sm:$0xff] }
  0x30   : > { %v1930_v5 = vsel %vm1929_vm2, %v1897_v55, 0.0  ;;  %v991_v6 = vrot.slane %v2723_v58, 1  ;;  %v1234_v8 = vrot.slane %v1136_v59, 2  ;;  %v1789_v10 = vsel %vm672_vm1, %v1786_v61, %v1788_v44  ;;  %v2789_v59 = vld [vmem:[%s2598_s5 + $0xe0] sm:$0xff] }
  0x31   : > { %1931 = vadd.xlane.f32.xlu0 %v1930_v5  ;;  %v1410_v9 = vadd.f32 %v1378_v31, %v1342_v60  ;;  %v787_v11 = vadd.f32 %v680_v2, %v542_v63  ;;  %v1448_v12 = vmul.f32 %v2626_v25, %v2716_v56  ;;  %v1235_v23 = vrot.slane %v2737_v7, 2 }
  0x32   : > { %v992_v22 = vsel %vm427_vm0, %v990_v4, %v991_v6  ;;  %v2748_v24 = vmul.f32 %v2626_v25, %v2728_v62  ;;  %v1692_v27 = vmul.f32 %v2643_v36, %v2716_v56  ;;  %v2755_v31 = vmul.f32 %v2643_v36, %v2728_v62 }
  0x33   : > { %v1654_v29 = vadd.f32 %v1545_v49, %v1410_v9  ;;  %v855_v61 = vadd.f32 %v823_v13, %v787_v11  ;;  %v1546_v30 = vrot.slane %v1448_v12, 1  ;;  %v1236_v34 = vsel %vm672_vm1, %v1234_v8, %v1235_v23 }
  0x34   : > { %v1379_v38 = vmul.f32 %v2621_v21, %v2716_v56  ;;  %v1547_v32 = vrot.slane %v2748_v24, 1  ;;  %v1790_v37 = vrot.slane %v1692_v27, 2  ;;  %v1791_v42 = vrot.slane %v2755_v31, 2 }
  0x35   : > { %v1898_v40 = vadd.f32 %v1789_v10, %v1654_v29  ;;  %v1099_v41 = vadd.f32 %v992_v22, %v855_v61  ;;  %v355_v43 = vmul.f32 %v2608_v15, %v227_v28  ;;  %v279_v44 = vmul.f32 %v2606_v14, %v227_v28  ;;  %v2817_v29 = vld [vmem:[%s2598_s5 + $0xf8] sm:$0xff] }
  0x36   : > { %v2771_v45 = vmul.f32 %v2608_v15, %v2758_v33  ;;  %v600_v47 = vmul.f32 %v2610_v16, %v227_v28  ;;  %v2776_v49 = vmul.f32 %v2610_v16, %v2758_v33  ;;  %v1548_v13 = vsel %vm427_vm0, %v1546_v30, %v1547_v32  ;;  %v2814_v28 = vld [vmem:[%s2598_s5 + $0xf0] sm:$0xff] }
  0x37   : > { %v1933_v50 = vsel %vm1929_vm2, %v1898_v40, 0.0  ;;  %v1343_v51 = vadd.f32 %v1236_v34, %v1099_v41  ;;  %v468_v53 = vrot.slane %v355_v43, 1  ;;  %v1792_v55 = vsel %vm672_vm1, %v1790_v37, %v1791_v42 }
  0x38   : > { %1934 = vadd.xlane.f32.xlu0 %v1933_v50  ;;  %v469_v60 = vrot.slane %v2771_v45, 1  ;;  %v713_v63 = vrot.slane %v600_v47, 2  ;;  %v714_v2 = vrot.slane %v2776_v49, 2  ;;  %v913_v5 = vmul.f32 %v2617_v19, %v2786_v57 }
  0x39   : > { %v1411_v4 = vadd.f32 %v1379_v38, %v1343_v51  ;;  %v2797_v8 = vmul.f32 %v2617_v19, %v2789_v59  ;;  %v1157_v9 = vmul.f32 %v2619_v20, %v2786_v57  ;;  %v837_v12 = vmul.f32 %v2615_v18, %v2786_v57 }
  0x3a   : > { %v470_v10 = vsel %vm427_vm0, %v468_v53, %v469_v60  ;;  %v715_v11 = vsel %vm672_vm1, %v713_v63, %v714_v2  ;;  %v2811_v22 = vmul.f32 %v2619_v20, %v2789_v59  ;;  %v1025_v30 = vrot.slane %v913_v5, 1 }
  0x3b   : > { %v1655_v27 = vadd.f32 %v1548_v13, %v1411_v4  ;;  %v556_v61 = vadd.f32 %v470_v10, %v279_v44  ;;  %v1026_v34 = vrot.slane %v2797_v8, 1  ;;  %v1269_v38 = vrot.slane %v1157_v9, 2 }
  0x3c   : > { %v1270_v37 = vrot.slane %v2811_v22, 2  ;;  %v1469_v40 = vmul.f32 %v2626_v25, %v2814_v28  ;;  %v2825_v41 = vmul.f32 %v2626_v25, %v2817_v29  ;;  %v1393_v50 = vmul.f32 %v2621_v21, %v2814_v28 }
  0x3d   : > { %v1899_v43 = vadd.f32 %v1792_v55, %v1655_v27  ;;  %v801_v47 = vadd.f32 %v715_v11, %v556_v61  ;;  %v1713_v44 = vmul.f32 %v2643_v36, %v2814_v28  ;;  %v1027_v51 = vsel %vm427_vm0, %v1025_v30, %v1026_v34  ;;  %v2845_v11 = vld [vmem:[%s2598_s5 + $0x58] sm:$0x3] }
  0x3e   : > { %v1581_v13 = vrot.slane %v1469_v40, 1  ;;  %v4553_v53 = vrot.slane %v2825_v41, 1  ;;  %v2837_v63 = vmul.f32 %v2643_v36, %v2817_v29  ;;  %v1271_v5 = vsel %vm672_vm1, %v1269_v38, %v1270_v37 }
  0x3f   : > { %v1936_v55 = vsel %vm1929_vm2, %v1899_v43, 0.0  ;;  %v869_v4 = vadd.f32 %v837_v12, %v801_v47  ;;  %v1825_v9 = vrot.slane %v1713_v44, 2  ;;  %v266_v27 = vmul.f32 %v2606_v14, %v2613_v17 }
  0x40   : > { %1937 = vadd.xlane.f32.xlu1 %v1936_v55  ;;  %v1826_v10 = vrot.slane %v2837_v63, 2  ;;  %v336_v61 = vmul.f32 %v2608_v15, %v2665_v54  ;;  %v581_v30 = vmul.f32 %v2610_v16, %v2665_v54  ;;  %v1583_v38 = vsel %vm427_vm0, %v1581_v13, %v4553_v53 }
  0x41   : > { %v1113_v12 = vadd.f32 %v1027_v51, %v869_v4  ;;  %v894_v40 = vmul.f32 %v2617_v19, %v2674_v3  ;;  %v1138_v43 = vmul.f32 %v2619_v20, %v2674_v3  ;;  %v824_v54 = vmul.f32 %v2615_v18, %v2640_v35 }
  0x42   : > { %v1827_v17 = vsel %vm672_vm1, %v1825_v9, %v1826_v10  ;;  %v436_v47 = vrot.slane %v336_v61, 1  ;;  %v681_v44 = vrot.slane %v581_v30, 2  ;;  %v1450_v13 = vmul.f32 %v2626_v25, %v2845_v11 }
  0x43   : > { %v1357_v51 = vadd.f32 %v1271_v5, %v1113_v12  ;;  %v993_v55 = vrot.slane %v894_v40, 1  ;;  %v1237_v4 = vrot.slane %v1138_v43, 2  ;;  %v1380_v9 = vmul.f32 %v2621_v21, %v2728_v62 }
  0x44   : > { %v437_v0 = vsel %vm427_vm0, %v434_v48, %v436_v47  ;;  %v682_v53 = vsel %vm672_vm1, %v679_v52, %v681_v44  ;;  %v1694_v61 = vmul.f32 %v2643_v36, %v2845_v11  ;;  %v281_v39 = vmul.f32 %v2606_v14, %v2786_v57 }
  0x45   : > { %v1425_v5 = vadd.f32 %v1393_v50, %v1357_v51  ;;  %v543_v30 = vadd.f32 %v437_v0, %v266_v27  ;;  %v994_v12 = vsel %vm427_vm0, %v991_v6, %v993_v55  ;;  %v1238_v46 = vsel %vm672_vm1, %v1235_v23, %v1237_v4  ;;  %v2903_v51 = vld [vmem:[%s2598_s5 + $0x108] sm:$0xff]  ;;  %v2918_v4 = vld [vmem:[%s2598_s5 + $0x110] sm:$0xff] }
  0x46   : > { %v1549_v48 = vrot.slane %v1450_v13, 1  ;;  %v358_v52 = vmul.f32 %v2608_v15, %v2786_v57  ;;  %v2889_v50 = vmul.f32 %v2608_v15, %v2789_v59  ;;  %v603_v6 = vmul.f32 %v2610_v16, %v2786_v57 }
  0x47   : > { %v1669_v0 = vadd.f32 %v1583_v38, %v1425_v5  ;;  %v788_v58 = vadd.f32 %v682_v53, %v543_v30  ;;  %v2895_v27 = vmul.f32 %v2610_v16, %v2789_v59  ;;  %v1793_v23 = vrot.slane %v1694_v61, 2 }
  0x48   : > { %v1550_v7 = vsel %vm427_vm0, %v1547_v32, %v1549_v48  ;;  %v473_v40 = vrot.slane %v358_v52, 1  ;;  %v474_v43 = vrot.slane %v2889_v50, 1  ;;  %v718_v38 = vrot.slane %v603_v6, 2 }
  0x49   : > { %v1913_v47 = vadd.f32 %v1827_v17, %v1669_v0  ;;  %v856_v44 = vadd.f32 %v824_v54, %v788_v58  ;;  %v719_v53 = vrot.slane %v2895_v27, 2  ;;  %v839_v24 = vmul.f32 %v2615_v18, %v2814_v28 }
  0x4a   : > { %v475_v57 = vsel %vm427_vm0, %v473_v40, %v474_v43  ;;  %v916_v32 = vmul.f32 %v2617_v19, %v2814_v28  ;;  %v2914_v55 = vmul.f32 %v2617_v19, %v2817_v29  ;;  %v1160_v48 = vmul.f32 %v2619_v20, %v2814_v28 }
  0x4b   : > { %v1978_v17 = vsel %vm1929_vm2, %v1913_v47, 0.0  ;;  %v1100_v54 = vadd.f32 %v994_v12, %v856_v44  ;;  %v558_v13 = vadd.f32 %v475_v57, %v281_v39  ;;  %v720_v61 = vsel %vm672_vm1, %v718_v38, %v719_v53 }
  0x4c   : > { %1979 = vadd.xlane.f32.xlu0 %v1978_v17  ;;  %v1030_v5 = vrot.slane %v916_v32, 1  ;;  %v1031_v30 = vrot.slane %v2914_v55, 1  ;;  %v2928_v52 = vmul.f32 %v2619_v20, %v2817_v29  ;;  %v1794_v39 = vsel %vm672_vm1, %v1791_v42, %v1793_v23 }
  0x4d   : > { %v1344_v12 = vadd.f32 %v1238_v46, %v1100_v54  ;;  %v803_v0 = vadd.f32 %v720_v61, %v558_v13  ;;  %v1472_v58 = vmul.f32 %v2626_v25, %v2903_v51  ;;  %v1274_v40 = vrot.slane %v1160_v48, 2  ;;  %v229_v46 = vld [vmem:[%s2598_s5 + $0xd0] sm:$0x3] }
  0x4e   : > { %v1032_v6 = vsel %vm427_vm0, %v1030_v5, %v1031_v30  ;;  %v1275_v47 = vrot.slane %v2928_v52, 2  ;;  %v2941_v44 = vmul.f32 %v2626_v25, %v2918_v4  ;;  %v1716_v23 = vmul.f32 %v2643_v36, %v2903_v51 }
  0x4f   : > { %v1412_v31 = vadd.f32 %v1380_v9, %v1344_v12  ;;  %v871_v38 = vadd.f32 %v839_v24, %v803_v0  ;;  %v1586_v42 = vrot.slane %v1472_v58, 1  ;;  %v1395_v32 = vmul.f32 %v2621_v21, %v2903_v51  ;;  %v2962_v12 = vld [vmem:[%s2598_s5 + $0xe8] sm:$0x3] }
  0x50   : > { %v1276_v57 = vsel %vm672_vm1, %v1274_v40, %v1275_v47  ;;  %v4554_v17 = vrot.slane %v2941_v44, 1  ;;  %v2954_v54 = vmul.f32 %v2643_v36, %v2918_v4  ;;  %v1830_v24 = vrot.slane %v1716_v23, 2 }
  0x51   : > { %v1656_v13 = vadd.f32 %v1550_v7, %v1412_v31  ;;  %v1115_v9 = vadd.f32 %v1032_v6, %v871_v38  ;;  %v357_v61 = vmul.f32 %v2608_v15, %v229_v46  ;;  %v280_v0 = vmul.f32 %v2606_v14, %v2758_v33 }
  0x52   : > { %v1588_v5 = vsel %vm427_vm0, %v1586_v42, %v4554_v17  ;;  %v4555_v48 = vrot.slane %v2954_v54, 2  ;;  %v602_v58 = vmul.f32 %v2610_v16, %v229_v46  ;;  %v915_v31 = vmul.f32 %v2617_v19, %v2962_v12 }
  0x53   : > { %v1900_v40 = vadd.f32 %v1794_v39, %v1656_v13  ;;  %v1359_v7 = vadd.f32 %v1276_v57, %v1115_v9  ;;  %v471_v6 = vrot.slane %v357_v61, 1  ;;  %v838_v23 = vmul.f32 %v2615_v18, %v2789_v59  ;;  %v2978_v39 = vld [vmem:[%s2598_s5 + $0x100] sm:$0x3] }
  0x54   : > { %v1832_v38 = vsel %vm672_vm1, %v1830_v24, %v4555_v48  ;;  %v716_v42 = vrot.slane %v602_v58, 2  ;;  %v1159_v17 = vmul.f32 %v2619_v20, %v2962_v12  ;;  %v1028_v13 = vrot.slane %v915_v31, 1 }
  0x55   : > { %v1939_v33 = vsel %vm1929_vm2, %v1900_v40, 0.0  ;;  %v1427_v46 = vadd.f32 %v1395_v32, %v1359_v7  ;;  %v472_v57 = vsel %vm427_vm0, %v469_v60, %v471_v6  ;;  %v1471_v58 = vmul.f32 %v2626_v25, %v2978_v39 }
  0x56   : > { %1940 = vadd.xlane.f32.xlu1 %v1939_v33  ;;  %v557_v9 = vadd.f32 %v472_v57, %v280_v0  ;;  %v717_v24 = vsel %vm672_vm1, %v714_v2, %v716_v42  ;;  %v1272_v61 = vrot.slane %v1159_v17, 2  ;;  %v1394_v32 = vmul.f32 %v2621_v21, %v2817_v29  ;;  %v3023_v57 = vld [vmem:[%s2598_s5 + $0x68] sm:$0xff] }
  0x57   : > { %v1671_v48 = vadd.f32 %v1588_v5, %v1427_v46  ;;  %v1715_v45 = vmul.f32 %v2643_v36, %v2978_v39  ;;  %v1029_v60 = vsel %vm427_vm0, %v1026_v34, %v1028_v13  ;;  %v267_v49 = vmul.f32 %v2606_v14, %v2629_v26  ;;  %v3020_v46 = vld [vmem:[%s2598_s5 + $0x60] sm:$0xff] }
  0x58   : > { %v802_v40 = vadd.f32 %v717_v24, %v557_v9  ;;  %v337_v2 = vmul.f32 %v2608_v15, %v2629_v26  ;;  %v1273_v5 = vsel %vm672_vm1, %v1270_v37, %v1272_v61  ;;  %v3004_v0 = vmul.f32 %v2608_v15, %v2640_v35 }
  0x59   : > { %v1915_v17 = vadd.f32 %v1832_v38, %v1671_v48  ;;  %v582_v8 = vmul.f32 %v2610_v16, %v2629_v26  ;;  %v1584_v7 = vrot.slane %v1471_v58, 1  ;;  %v3010_v31 = vmul.f32 %v2610_v16, %v2640_v35 }
  0x5a   : > { %v870_v34 = vadd.f32 %v838_v23, %v802_v40  ;;  %v438_v6 = vrot.slane %v337_v2, 1  ;;  %v1828_v48 = vrot.slane %v1715_v45, 2  ;;  %v4556_v37 = vrot.slane %v3004_v0, 1 }
  0x5b   : > { %v1984_v22 = vsel %vm1929_vm2, %v1915_v17, 0.0  ;;  %v683_v38 = vrot.slane %v582_v8, 2  ;;  %v684_v33 = vrot.slane %v3010_v31, 2  ;;  %v825_v26 = vmul.f32 %v2615_v18, %v2716_v56 }
  0x5c   : > { %1985 = vadd.xlane.f32.xlu0 %v1984_v22  ;;  %v1114_v42 = vadd.f32 %v1029_v60, %v870_v34  ;;  %v895_v23 = vmul.f32 %v2617_v19, %v2716_v56  ;;  %v440_v13 = vsel %vm427_vm0, %v438_v6, %v4556_v37  ;;  %v3030_v9 = vmul.f32 %v2617_v19, %v2728_v62 }
  0x5d   : > { %v1139_v24 = vmul.f32 %v2619_v20, %v2716_v56  ;;  %v3036_v61 = vmul.f32 %v2619_v20, %v2728_v62  ;;  %v544_v45 = vadd.f32 %v440_v13, %v267_v49  ;;  %v685_v40 = vsel %vm672_vm1, %v683_v38, %v684_v33 }
  0x5e   : > { %v1358_v58 = vadd.f32 %v1273_v5, %v1114_v42  ;;  %v995_v60 = vrot.slane %v895_v23, 1  ;;  %v4577_v2 = vrot.slane %v2825_v41, 1  ;;  %v996_v8 = vrot.slane %v3030_v9, 1 }
  0x5f   : > { %v1239_v34 = vrot.slane %v1139_v24, 2  ;;  %v1240_v6 = vrot.slane %v3036_v61, 2  ;;  %v789_v37 = vadd.f32 %v685_v40, %v544_v45  ;;  %v1451_v5 = vmul.f32 %v2626_v25, %v3020_v46 }
  0x60   : > { %v1585_v17 = vsel %vm427_vm0, %v4577_v2, %v1584_v7  ;;  %v1426_v22 = vadd.f32 %v1394_v32, %v1358_v58  ;;  %v3050_v49 = vmul.f32 %v2626_v25, %v3023_v57  ;;  %v1829_v41 = vsel %vm672_vm1, %v1826_v10, %v1828_v48 }
  0x61   : > { %v997_v7 = vsel %vm427_vm0, %v995_v60, %v996_v8  ;;  %v1695_v32 = vmul.f32 %v2643_v36, %v3020_v46  ;;  %v3062_v38 = vmul.f32 %v2643_v36, %v3023_v57  ;;  %v857_v23 = vadd.f32 %v825_v26, %v789_v37  ;;  %v3073_v60 = vld [vmem:[%s2598_s5 + $0x118] sm:$0x3] }
  0x62   : > { %v1670_v42 = vadd.f32 %v1585_v17, %v1426_v22  ;;  %v1551_v13 = vrot.slane %v1451_v5, 1  ;;  %v1552_v24 = vrot.slane %v3050_v49, 1  ;;  %v1241_v63 = vsel %vm672_vm1, %v1239_v34, %v1240_v6 }
  0x63   : > { %v1381_v10 = vmul.f32 %v2621_v21, %v3020_v46  ;;  %v1795_v48 = vrot.slane %v1695_v32, 2  ;;  %v360_v58 = vmul.f32 %v2608_v15, %v2962_v12  ;;  %v1101_v40 = vadd.f32 %v997_v7, %v857_v23 }
  0x64   : > { %v1914_v45 = vadd.f32 %v1829_v41, %v1670_v42  ;;  %v282_v37 = vmul.f32 %v2606_v14, %v2789_v59  ;;  %v605_v26 = vmul.f32 %v2610_v16, %v2962_v12  ;;  %v1553_v2 = vsel %vm427_vm0, %v1551_v13, %v1552_v24 }
  0x65   : > { %v1796_v17 = vrot.slane %v3062_v38, 2  ;;  %v476_v34 = vrot.slane %v360_v58, 1  ;;  %v918_v22 = vmul.f32 %v2617_v19, %v2978_v39  ;;  %v1345_v41 = vadd.f32 %v1241_v63, %v1101_v40 }
  0x66   : > { %v1981_v5 = vsel %vm1929_vm2, %v1914_v45, 0.0  ;;  %v721_v7 = vrot.slane %v605_v26, 2  ;;  %v1162_v59 = vmul.f32 %v2619_v20, %v2978_v39  ;;  %v840_v32 = vmul.f32 %v2615_v18, %v2817_v29 }
  0x67   : > { %1982 = vadd.xlane.f32.xlu1 %v1981_v5  ;;  %v477_v12 = vsel %vm427_vm0, %v474_v43, %v476_v34  ;;  %v1033_v42 = vrot.slane %v918_v22, 1  ;;  %v1474_v23 = vmul.f32 %v2626_v25, %v3073_v60  ;;  %v1413_v13 = vadd.f32 %v1381_v10, %v1345_v41 }
  0x68   : > { %v559_v58 = vadd.f32 %v477_v12, %v282_v37  ;;  %v722_v63 = vsel %vm672_vm1, %v719_v53, %v721_v7  ;;  %v1277_v45 = vrot.slane %v1162_v59, 2  ;;  %v1797_v50 = vsel %vm672_vm1, %v1795_v48, %v1796_v17 }
  0x69   : > { %v1034_v43 = vsel %vm427_vm0, %v1031_v30, %v1033_v42  ;;  %v1396_v40 = vmul.f32 %v2621_v21, %v2918_v4  ;;  %v1718_v10 = vmul.f32 %v2643_v36, %v3073_v60  ;;  %v1657_v37 = vadd.f32 %v1553_v2, %v1413_v13  ;;  %v3136_v13 = vld [vmem:[%s2598_s5 + $0x128] sm:$0xff] }
  0x6a   : > { %v804_v26 = vadd.f32 %v722_v63, %v559_v58  ;;  %v1589_v27 = vrot.slane %v1474_v23, 1  ;;  %v361_v53 = vmul.f32 %v2608_v15, %v2814_v28  ;;  %v1278_v48 = vsel %vm672_vm1, %v1275_v47, %v1277_v45 }
  0x6b   : > { %v283_v55 = vmul.f32 %v2606_v14, %v2814_v28  ;;  %v3117_v30 = vmul.f32 %v2608_v15, %v2817_v29  ;;  %v606_v2 = vmul.f32 %v2610_v16, %v2814_v28  ;;  %v1901_v34 = vadd.f32 %v1797_v50, %v1657_v37 }
  0x6c   : > { %v872_v22 = vadd.f32 %v840_v32, %v804_v26  ;;  %v478_v5 = vrot.slane %v361_v53, 1  ;;  %v3123_v52 = vmul.f32 %v2610_v16, %v2817_v29  ;;  %v1833_v47 = vrot.slane %v1718_v10, 2  ;;  %v3133_v32 = vld [vmem:[%s2598_s5 + $0x120] sm:$0xff] }
  0x6d   : > { %v4557_v41 = vrot.slane %v3117_v30, 1  ;;  %v723_v7 = vrot.slane %v606_v2, 2  ;;  %v841_v59 = vmul.f32 %v2615_v18, %v2903_v51  ;;  %v1942_v12 = vsel %vm1929_vm2, %v1901_v34, 0.0 }
  0x6e   : > { %v1116_v42 = vadd.f32 %v1034_v43, %v872_v22  ;;  %v724_v23 = vrot.slane %v3123_v52, 2  ;;  %v919_v28 = vmul.f32 %v2617_v19, %v2903_v51  ;;  %1943 = vadd.xlane.f32.xlu0 %v1942_v12  ;;  %v3143_v63 = vmul.f32 %v2617_v19, %v2918_v4 }
  0x6f   : > { %v480_v58 = vsel %vm427_vm0, %v478_v5, %v4557_v41  ;;  %v1163_v45 = vmul.f32 %v2619_v20, %v2903_v51  ;;  %v3149_v50 = vmul.f32 %v2619_v20, %v2918_v4  ;;  %v4578_v53 = vrot.slane %v2941_v44, 1 }
  0x70   : > { %v1360_v43 = vadd.f32 %v1278_v48, %v1116_v42  ;;  %v560_v10 = vadd.f32 %v480_v58, %v283_v55  ;;  %v725_v37 = vsel %vm672_vm1, %v723_v7, %v724_v23  ;;  %v1035_v26 = vrot.slane %v919_v28, 1 }
  0x71   : > { %v1590_v2 = vsel %vm427_vm0, %v4578_v53, %v1589_v27  ;;  %v1036_v34 = vrot.slane %v3143_v63, 1  ;;  %v1279_v22 = vrot.slane %v1163_v45, 2  ;;  %v4559_v5 = vrot.slane %v3149_v50, 2 }
  0x72   : > { %v1428_v12 = vadd.f32 %v1396_v40, %v1360_v43  ;;  %v805_v41 = vadd.f32 %v725_v37, %v560_v10  ;;  %v1475_v48 = vmul.f32 %v2626_v25, %v3133_v32  ;;  %v3163_v55 = vmul.f32 %v2626_v25, %v3136_v13 }
  0x73   : > { %v4579_v7 = vrot.slane %v2954_v54, 2  ;;  %v1037_v27 = vsel %vm427_vm0, %v1035_v26, %v1036_v34  ;;  %v1719_v40 = vmul.f32 %v2643_v36, %v3133_v32  ;;  %v3175_v42 = vmul.f32 %v2643_v36, %v3136_v13 }
  0x74   : > { %v1672_v28 = vadd.f32 %v1590_v2, %v1428_v12  ;;  %v873_v58 = vadd.f32 %v841_v59, %v805_v41  ;;  %v1591_v45 = vrot.slane %v1475_v48, 1  ;;  %v4558_v43 = vrot.slane %v3163_v55, 1 }
  0x75   : > { %v1834_v44 = vsel %vm672_vm1, %v4579_v7, %v1833_v47  ;;  %v1281_v54 = vsel %vm672_vm1, %v1279_v22, %v4559_v5  ;;  %v1397_v47 = vmul.f32 %v2621_v21, %v3133_v32  ;;  %v1835_v10 = vrot.slane %v1719_v40, 2  ;;  %v3186_v7 = vld [vmem:[%s2598_s5 + $0x70] sm:$0x3] }
  0x76   : > { %v339_v37 = vmul.f32 %v2608_v15, %v2674_v3  ;;  %v1916_v26 = vadd.f32 %v1834_v44, %v1672_v28  ;;  %v1117_v53 = vadd.f32 %v1037_v27, %v873_v58  ;;  %v268_v41 = vmul.f32 %v2606_v14, %v2640_v35 }
  0x77   : > { %v584_v59 = vmul.f32 %v2610_v16, %v2674_v3  ;;  %v1593_v2 = vsel %vm427_vm0, %v1591_v45, %v4558_v43  ;;  %v1836_v22 = vrot.slane %v3175_v42, 2  ;;  %v897_v48 = vmul.f32 %v2617_v19, %v2845_v11 }
  0x78   : > { %v441_v12 = vrot.slane %v339_v37, 1  ;;  %v1987_v44 = vsel %vm1929_vm2, %v1916_v26, 0.0  ;;  %v1361_v27 = vadd.f32 %v1281_v54, %v1117_v53  ;;  %v1141_v35 = vmul.f32 %v2619_v20, %v2845_v11 }
  0x79   : > { %v686_v40 = vrot.slane %v584_v59, 2  ;;  %1988 = vadd.xlane.f32.xlu1 %v1987_v44  ;;  %v4580_v3 = vrot.slane %v3004_v0, 1  ;;  %v826_v58 = vmul.f32 %v2615_v18, %v2728_v62  ;;  %v998_v45 = vrot.slane %v897_v48, 1 }
  0x7a   : > { %v1453_v37 = vmul.f32 %v2626_v25, %v3186_v7  ;;  %v1429_v43 = vadd.f32 %v1397_v47, %v1361_v27  ;;  %v1242_v26 = vrot.slane %v1141_v35, 2  ;;  %v1837_v0 = vsel %vm672_vm1, %v1835_v10, %v1836_v22 }
  0x7b   : > { %v442_v28 = vsel %vm427_vm0, %v4580_v3, %v441_v12  ;;  %v687_v54 = vsel %vm672_vm1, %v684_v33, %v686_v40  ;;  %v999_v53 = vsel %vm427_vm0, %v996_v8, %v998_v45  ;;  %v1382_v59 = vmul.f32 %v2621_v21, %v3023_v57  ;;  %v3249_v45 = vld [vmem:[%s2598_s5 + $0x80] sm:$0xff] }
  0x7c   : > { %v545_v5 = vadd.f32 %v442_v28, %v268_v41  ;;  %v1697_v47 = vmul.f32 %v2643_v36, %v3186_v7  ;;  %v1673_v41 = vadd.f32 %v1593_v2, %v1429_v43  ;;  %v1554_v31 = vrot.slane %v1453_v37, 1 }
  0x7d   : > { %v340_v33 = vmul.f32 %v2608_v15, %v2716_v56  ;;  %v1243_v10 = vsel %vm672_vm1, %v1240_v6, %v1242_v26  ;;  %v269_v9 = vmul.f32 %v2606_v14, %v2716_v56  ;;  %v3230_v8 = vmul.f32 %v2608_v15, %v2728_v62 }
  0x7e   : > { %v790_v12 = vadd.f32 %v687_v54, %v545_v5  ;;  %v585_v5 = vmul.f32 %v2610_v16, %v2716_v56  ;;  %v1917_v43 = vadd.f32 %v1837_v0, %v1673_v41  ;;  %v3236_v61 = vmul.f32 %v2610_v16, %v2728_v62 }
  0x7f   : > { %v443_v48 = vrot.slane %v340_v33, 1  ;;  %v1798_v6 = vrot.slane %v1697_v47, 2  ;;  %v444_v44 = vrot.slane %v3230_v8, 1  ;;  %v827_v40 = vmul.f32 %v2615_v18, %v3020_v46 }
  0x80   : > { %v858_v2 = vadd.f32 %v826_v58, %v790_v12  ;;  %v688_v27 = vrot.slane %v585_v5, 2  ;;  %v1990_v35 = vsel %vm1929_vm2, %v1917_v43, 0.0  ;;  %v689_v28 = vrot.slane %v3236_v61, 2  ;;  %v3246_v58 = vld [vmem:[%s2598_s5 + $0x78] sm:$0xff] }
  0x81   : > { %v898_v56 = vmul.f32 %v2617_v19, %v3020_v46  ;;  %1991 = vadd.xlane.f32.xlu0 %v1990_v35  ;;  %v445_v37 = vsel %vm427_vm0, %v443_v48, %v444_v44  ;;  %v3256_v54 = vmul.f32 %v2617_v19, %v3023_v57  ;;  %v1142_v26 = vmul.f32 %v2619_v20, %v3020_v46 }
  0x82   : > { %v1102_v3 = vadd.f32 %v999_v53, %v858_v2  ;;  %v3262_v0 = vmul.f32 %v2619_v20, %v3023_v57  ;;  %v546_v47 = vadd.f32 %v445_v37, %v269_v9  ;;  %v690_v41 = vsel %vm672_vm1, %v688_v27, %v689_v28 }
  0x83   : > { %v1000_v12 = vrot.slane %v898_v56, 1  ;;  %v1555_v33 = vsel %vm427_vm0, %v1552_v24, %v1554_v31  ;;  %v1001_v5 = vrot.slane %v3256_v54, 1  ;;  %v1244_v43 = vrot.slane %v1142_v26, 2 }
  0x84   : > { %v1346_v53 = vadd.f32 %v1243_v10, %v1102_v3  ;;  %v1245_v2 = vrot.slane %v3262_v0, 2  ;;  %v791_v35 = vadd.f32 %v690_v41, %v546_v47  ;;  %v1454_v10 = vmul.f32 %v2626_v25, %v3246_v58  ;;  %v3299_v41 = vld [vmem:[%s2598_s5 + $0x130] sm:$0x3] }
  0x85   : > { %v3276_v9 = vmul.f32 %v2626_v25, %v3249_v45  ;;  %v1799_v49 = vsel %vm672_vm1, %v1796_v17, %v1798_v6  ;;  %v1002_v24 = vsel %vm427_vm0, %v1000_v12, %v1001_v5  ;;  %v3288_v31 = vmul.f32 %v2643_v36, %v3249_v45 }
  0x86   : > { %v1414_v48 = vadd.f32 %v1382_v59, %v1346_v53  ;;  %v1698_v59 = vmul.f32 %v2643_v36, %v3246_v58  ;;  %v859_v3 = vadd.f32 %v827_v40, %v791_v35  ;;  %v1556_v56 = vrot.slane %v1454_v10, 1 }
  0x87   : > { %v4560_v37 = vrot.slane %v3276_v9, 1  ;;  %v1246_v38 = vsel %vm672_vm1, %v1244_v43, %v1245_v2  ;;  %v1383_v17 = vmul.f32 %v2621_v21, %v3246_v58  ;;  %v363_v26 = vmul.f32 %v2608_v15, %v2978_v39 }
  0x88   : > { %v1658_v27 = vadd.f32 %v1555_v33, %v1414_v48  ;;  %v1800_v6 = vrot.slane %v1698_v59, 2  ;;  %v1103_v47 = vadd.f32 %v1002_v24, %v859_v3  ;;  %v284_v40 = vmul.f32 %v2606_v14, %v2817_v29 }
  0x89   : > { %v608_v12 = vmul.f32 %v2610_v16, %v2978_v39  ;;  %v1558_v33 = vsel %vm427_vm0, %v1556_v56, %v4560_v37  ;;  %v1801_v43 = vrot.slane %v3288_v31, 2  ;;  %v481_v48 = vrot.slane %v363_v26, 1 }
  0x8a   : > { %v1902_v53 = vadd.f32 %v1799_v49, %v1658_v27  ;;  %v921_v35 = vmul.f32 %v2617_v19, %v3073_v60  ;;  %v1347_v49 = vadd.f32 %v1246_v38, %v1103_v47  ;;  %v1165_v29 = vmul.f32 %v2619_v20, %v3073_v60 }
  0x8b   : > { %v726_v24 = vrot.slane %v608_v12, 2  ;;  %v4581_v39 = vrot.slane %v3117_v30, 1  ;;  %v842_v27 = vmul.f32 %v2615_v18, %v2918_v4  ;;  %v1477_v56 = vmul.f32 %v2626_v25, %v3299_v41 }
  0x8c   : > { %v1945_v10 = vsel %vm1929_vm2, %v1902_v53, 0.0  ;;  %v1038_v3 = vrot.slane %v921_v35, 1  ;;  %v1415_v26 = vadd.f32 %v1383_v17, %v1347_v49  ;;  %v1282_v53 = vrot.slane %v1165_v29, 2 }
  0x8d   : > { %1946 = vadd.xlane.f32.xlu1 %v1945_v10  ;;  %v482_v59 = vsel %vm427_vm0, %v4581_v39, %v481_v48  ;;  %v727_v38 = vsel %vm672_vm1, %v724_v23, %v726_v24  ;;  %v1802_v30 = vsel %vm672_vm1, %v1800_v6, %v1801_v43  ;;  %v1398_v12 = vmul.f32 %v2621_v21, %v3136_v13 }
  0x8e   : > { %v561_v37 = vadd.f32 %v482_v59, %v284_v40  ;;  %v1039_v47 = vsel %vm427_vm0, %v1036_v34, %v1038_v3  ;;  %v1721_v17 = vmul.f32 %v2643_v36, %v3299_v41  ;;  %v1659_v40 = vadd.f32 %v1558_v33, %v1415_v26  ;;  %v3362_v26 = vld [vmem:[%s2598_s5 + $0x140] sm:$0xff] }
  0x8f   : > { %v1594_v52 = vrot.slane %v1477_v56, 1  ;;  %v364_v23 = vmul.f32 %v2608_v15, %v2903_v51  ;;  %v4582_v35 = vrot.slane %v3149_v50, 2  ;;  %v285_v63 = vmul.f32 %v2606_v14, %v2903_v51 }
  0x90   : > { %v806_v48 = vadd.f32 %v727_v38, %v561_v37  ;;  %v3343_v34 = vmul.f32 %v2608_v15, %v2918_v4  ;;  %v609_v36 = vmul.f32 %v2610_v16, %v2903_v51  ;;  %v1903_v37 = vadd.f32 %v1802_v30, %v1659_v40 }
  0x91   : > { %v1283_v6 = vsel %vm672_vm1, %v4582_v35, %v1282_v53  ;;  %v483_v10 = vrot.slane %v364_v23, 1  ;;  %v3349_v50 = vmul.f32 %v2610_v16, %v2918_v4  ;;  %v1838_v49 = vrot.slane %v1721_v17, 2 }
  0x92   : > { %v874_v33 = vadd.f32 %v842_v27, %v806_v48  ;;  %v4561_v24 = vrot.slane %v3343_v34, 1  ;;  %v728_v29 = vrot.slane %v609_v36, 2  ;;  %v843_v39 = vmul.f32 %v2615_v18, %v3133_v32  ;;  %v3359_v27 = vld [vmem:[%s2598_s5 + $0x138] sm:$0xff] }
  0x93   : > { %v1948_v59 = vsel %vm1929_vm2, %v1903_v37, 0.0  ;;  %v729_v56 = vrot.slane %v3349_v50, 2  ;;  %v922_v51 = vmul.f32 %v2617_v19, %v3133_v32  ;;  %v3369_v53 = vmul.f32 %v2617_v19, %v3136_v13 }
  0x94   : > { %v1118_v3 = vadd.f32 %v1039_v47, %v874_v33  ;;  %1949 = vadd.xlane.f32.xlu0 %v1948_v59  ;;  %v485_v38 = vsel %vm427_vm0, %v483_v10, %v4561_v24  ;;  %v1166_v30 = vmul.f32 %v2619_v20, %v3133_v32  ;;  %v3375_v47 = vmul.f32 %v2619_v20, %v3136_v13 }
  0x95   : > { %v562_v40 = vadd.f32 %v485_v38, %v285_v63  ;;  %v730_v48 = vsel %vm672_vm1, %v728_v29, %v729_v56  ;;  %v1040_v23 = vrot.slane %v922_v51, 1  ;;  %v4583_v35 = vrot.slane %v3163_v55, 1  ;;  %v3398_v29 = vld [vmem:[%s2589_s29 + $0x8] ss:$0 sm:$0xff] }
  0x96   : > { %v1362_v17 = vadd.f32 %v1283_v6, %v1118_v3  ;;  %v1041_v37 = vrot.slane %v3369_v53, 1  ;;  %v1284_v33 = vrot.slane %v1166_v30, 2  ;;  %v1285_v10 = vrot.slane %v3375_v47, 2 }
  0x97   : > { %v1595_v36 = vsel %vm427_vm0, %v4583_v35, %v1594_v52  ;;  %v807_v24 = vadd.f32 %v730_v48, %v562_v40  ;;  %v1478_v6 = vmul.f32 %v2626_v25, %v3359_v27  ;;  %v3389_v63 = vmul.f32 %v2626_v25, %v3362_v26  ;;  %v3415_v35 = vld [vmem:[%s2598_s5 + $0x88] sm:$0x3] }
  0x98   : > { %v1430_v59 = vadd.f32 %v1398_v12, %v1362_v17  ;;  %v1839_v55 = vsel %vm672_vm1, %v1836_v22, %v1838_v49  ;;  %v1042_v52 = vsel %vm427_vm0, %v1040_v23, %v1041_v37  ;;  %v1722_v12 = vmul.f32 %v3398_v29, %v3359_v27 }
  0x99   : > { %v3404_v3 = vmul.f32 %v3398_v29, %v3362_v26  ;;  %v875_v38 = vadd.f32 %v843_v39, %v807_v24  ;;  %v1596_v30 = vrot.slane %v1478_v6, 1  ;;  %v4562_v42 = vrot.slane %v3389_v63, 1 }
  0x9a   : > { %v1674_v51 = vadd.f32 %v1595_v36, %v1430_v59  ;;  %v1286_v22 = vsel %vm672_vm1, %v1284_v33, %v1285_v10  ;;  %v1399_v49 = vmul.f32 %v2621_v21, %v3359_v27  ;;  %v1840_v17 = vrot.slane %v1722_v12, 2 }
  0x9b   : > { %v342_v40 = vmul.f32 %v2608_v15, %v2845_v11  ;;  %v1119_v23 = vadd.f32 %v1042_v52, %v875_v38  ;;  %v270_v24 = vmul.f32 %v2606_v14, %v2728_v62  ;;  %v587_v39 = vmul.f32 %v2610_v16, %v2845_v11 }
  0x9c   : > { %v1918_v48 = vadd.f32 %v1839_v55, %v1674_v51  ;;  %v1598_v36 = vsel %vm427_vm0, %v1596_v30, %v4562_v42  ;;  %v1841_v33 = vrot.slane %v3404_v3, 2  ;;  %v900_v6 = vmul.f32 %v2617_v19, %v3186_v7 }
  0x9d   : > { %v446_v59 = vrot.slane %v342_v40, 1  ;;  %v1363_v52 = vadd.f32 %v1286_v22, %v1119_v23  ;;  %v691_v12 = vrot.slane %v587_v39, 2  ;;  %v1144_v62 = vmul.f32 %v2619_v20, %v3186_v7 }
  0x9e   : > { %v1993_v55 = vsel %vm1929_vm2, %v1918_v48, 0.0  ;;  %v828_v51 = vmul.f32 %v2615_v18, %v3023_v57  ;;  %v1003_v38 = vrot.slane %v900_v6, 1  ;;  %v1456_v30 = vmul.f32 %v2626_v25, %v3415_v35 }
  0x9f   : > { %1994 = vadd.xlane.f32.xlu1 %v1993_v55  ;;  %v447_v11 = vsel %vm427_vm0, %v444_v44, %v446_v59  ;;  %v1431_v40 = vadd.f32 %v1399_v49, %v1363_v52  ;;  %v692_v22 = vsel %vm672_vm1, %v689_v28, %v691_v12  ;;  %v1247_v48 = vrot.slane %v1144_v62, 2 }
  0xa0   : > { %v547_v42 = vadd.f32 %v447_v11, %v270_v24  ;;  %v1842_v8 = vsel %vm672_vm1, %v1840_v17, %v1841_v33  ;;  %v1004_v44 = vsel %vm427_vm0, %v1001_v5, %v1003_v38  ;;  %v1384_v23 = vmul.f32 %v2621_v21, %v3249_v45 }
  0xa1   : > { %v1700_v49 = vmul.f32 %v3398_v29, %v3415_v35  ;;  %v1675_v24 = vadd.f32 %v1598_v36, %v1431_v40  ;;  %v1559_v61 = vrot.slane %v1456_v30, 1  ;;  %v343_v28 = vmul.f32 %v2608_v15, %v3020_v46  ;;  %v3478_v30 = vld [vmem:[%s2598_s5 + $0x98] sm:$0xff] }
  0xa2   : > { %v792_v39 = vadd.f32 %v692_v22, %v547_v42  ;;  %v1248_v17 = vsel %vm672_vm1, %v1245_v2, %v1247_v48  ;;  %v271_v54 = vmul.f32 %v2606_v14, %v3020_v46  ;;  %v3459_v5 = vmul.f32 %v2608_v15, %v3023_v57 }
  0xa3   : > { %v588_v42 = vmul.f32 %v2610_v16, %v3020_v46  ;;  %v1919_v36 = vadd.f32 %v1842_v8, %v1675_v24  ;;  %v448_v6 = vrot.slane %v343_v28, 1  ;;  %v3465_v0 = vmul.f32 %v2610_v16, %v3023_v57 }
  0xa4   : > { %v860_v59 = vadd.f32 %v828_v51, %v792_v39  ;;  %v1803_v2 = vrot.slane %v1700_v49, 2  ;;  %v4563_v55 = vrot.slane %v3459_v5, 1  ;;  %v829_v12 = vmul.f32 %v2615_v18, %v3246_v58  ;;  %v3475_v51 = vld [vmem:[%s2598_s5 + $0x90] sm:$0xff] }
  0xa5   : > { %v693_v52 = vrot.slane %v588_v42, 2  ;;  %v1996_v62 = vsel %vm1929_vm2, %v1919_v36, 0.0  ;;  %v694_v38 = vrot.slane %v3465_v0, 2  ;;  %v901_v46 = vmul.f32 %v2617_v19, %v3246_v58 }
  0xa6   : > { %v1104_v11 = vadd.f32 %v1004_v44, %v860_v59  ;;  %1997 = vadd.xlane.f32.xlu0 %v1996_v62  ;;  %v450_v40 = vsel %vm427_vm0, %v448_v6, %v4563_v55  ;;  %v3485_v22 = vmul.f32 %v2617_v19, %v3249_v45  ;;  %v1145_v48 = vmul.f32 %v2619_v20, %v3246_v58 }
  0xa7   : > { %v3491_v8 = vmul.f32 %v2619_v20, %v3249_v45  ;;  %v548_v49 = vadd.f32 %v450_v40, %v271_v54  ;;  %v695_v24 = vsel %vm672_vm1, %v693_v52, %v694_v38  ;;  %v1005_v39 = vrot.slane %v901_v46, 1 }
  0xa8   : > { %v1348_v44 = vadd.f32 %v1248_v17, %v1104_v11  ;;  %v4584_v28 = vrot.slane %v3276_v9, 1  ;;  %v1006_v36 = vrot.slane %v3485_v22, 1  ;;  %v1249_v59 = vrot.slane %v1145_v48, 2 }
  0xa9   : > { %v1250_v6 = vrot.slane %v3491_v8, 2  ;;  %v793_v55 = vadd.f32 %v695_v24, %v548_v49  ;;  %v1457_v17 = vmul.f32 %v2626_v25, %v3475_v51  ;;  %v3505_v54 = vmul.f32 %v2626_v25, %v3478_v30 }
  0xaa   : > { %v1560_v42 = vsel %vm427_vm0, %v4584_v28, %v1559_v61  ;;  %v1416_v62 = vadd.f32 %v1384_v23, %v1348_v44  ;;  %v1804_v9 = vsel %vm672_vm1, %v1801_v43, %v1803_v2  ;;  %v1007_v61 = vsel %vm427_vm0, %v1005_v39, %v1006_v36  ;;  %v3528_v39 = vld [vmem:[%s2598_s5 + $0x148] sm:$0x3] }
  0xab   : > { %v1701_v23 = vmul.f32 %v3398_v29, %v3475_v51  ;;  %v3517_v52 = vmul.f32 %v3398_v29, %v3478_v30  ;;  %v861_v46 = vadd.f32 %v829_v12, %v793_v55  ;;  %v1561_v40 = vrot.slane %v1457_v17, 1 }
  0xac   : > { %v1660_v11 = vadd.f32 %v1560_v42, %v1416_v62  ;;  %v4564_v48 = vrot.slane %v3505_v54, 1  ;;  %v1251_v31 = vsel %vm672_vm1, %v1249_v59, %v1250_v6  ;;  %v1385_v43 = vmul.f32 %v2621_v21, %v3475_v51 }
  0xad   : > { %v1805_v2 = vrot.slane %v1701_v23, 2  ;;  %v366_v44 = vmul.f32 %v2608_v15, %v3073_v60  ;;  %v1105_v24 = vadd.f32 %v1007_v61, %v861_v46  ;;  %v286_v55 = vmul.f32 %v2606_v14, %v2918_v4 }
  0xae   : > { %v1904_v49 = vadd.f32 %v1804_v9, %v1660_v11  ;;  %v611_v12 = vmul.f32 %v2610_v16, %v3073_v60  ;;  %v1563_v28 = vsel %vm427_vm0, %v1561_v40, %v4564_v48  ;;  %v1806_v42 = vrot.slane %v3517_v52, 2 }
  0xaf   : > { %v486_v59 = vrot.slane %v366_v44, 1  ;;  %v924_v62 = vmul.f32 %v2617_v19, %v3299_v41  ;;  %v1349_v9 = vadd.f32 %v1251_v31, %v1105_v24  ;;  %v1168_v4 = vmul.f32 %v2619_v20, %v3299_v41 }
  0xb0   : > { %v1951_v17 = vsel %vm1929_vm2, %v1904_v49, 0.0  ;;  %v731_v61 = vrot.slane %v611_v12, 2  ;;  %v4585_v60 = vrot.slane %v3343_v34, 1  ;;  %v844_v11 = vmul.f32 %v2615_v18, %v3136_v13 }
  0xb1   : > { %1952 = vadd.xlane.f32.xlu1 %v1951_v17  ;;  %v1043_v46 = vrot.slane %v924_v62, 1  ;;  %v1480_v40 = vmul.f32 %v2626_v25, %v3528_v39  ;;  %v1417_v44 = vadd.f32 %v1385_v43, %v1349_v9  ;;  %v1287_v49 = vrot.slane %v1168_v4, 2 }
  0xb2   : > { %v487_v23 = vsel %vm427_vm0, %v4585_v60, %v486_v59  ;;  %v732_v31 = vsel %vm672_vm1, %v729_v56, %v731_v61  ;;  %v1807_v34 = vsel %vm672_vm1, %v1805_v2, %v1806_v42  ;;  %v1400_v12 = vmul.f32 %v2621_v21, %v3362_v26 }
  0xb3   : > { %v563_v48 = vadd.f32 %v487_v23, %v286_v55  ;;  %v1044_v24 = vsel %vm427_vm0, %v1041_v37, %v1043_v46  ;;  %v1724_v43 = vmul.f32 %v3398_v29, %v3528_v39  ;;  %v1661_v55 = vadd.f32 %v1563_v28, %v1417_v44 }
  0xb4   : > { %v1599_v50 = vrot.slane %v1480_v40, 1  ;;  %v367_v56 = vmul.f32 %v2608_v15, %v3133_v32  ;;  %v1288_v2 = vsel %vm672_vm1, %v1285_v10, %v1287_v49  ;;  %v287_v53 = vmul.f32 %v2606_v14, %v3133_v32  ;;  %v3591_v40 = vld [vmem:[%s2598_s5 + $0x158] sm:$0xff] }
  0xb5   : > { %v808_v59 = vadd.f32 %v732_v31, %v563_v48  ;;  %v3572_v37 = vmul.f32 %v2608_v15, %v3136_v13  ;;  %v612_v48 = vmul.f32 %v2610_v16, %v3133_v32  ;;  %v1905_v28 = vadd.f32 %v1807_v34, %v1661_v55 }
  0xb6   : > { %v488_v17 = vrot.slane %v367_v56, 1  ;;  %v3578_v47 = vmul.f32 %v2610_v16, %v3136_v13  ;;  %v1843_v10 = vrot.slane %v1724_v43, 2  ;;  %v845_v4 = vmul.f32 %v2615_v18, %v3359_v27 }
  0xb7   : > { %v876_v62 = vadd.f32 %v844_v11, %v808_v59  ;;  %v4565_v9 = vrot.slane %v3572_v37, 1  ;;  %v733_v61 = vrot.slane %v612_v48, 2  ;;  %v1954_v60 = vsel %vm1929_vm2, %v1905_v28, 0.0  ;;  %v3588_v11 = vld [vmem:[%s2598_s5 + $0x150] sm:$0xff] }
  0xb8   : > { %v734_v46 = vrot.slane %v3578_v47, 2  ;;  %v925_v32 = vmul.f32 %v2617_v19, %v3359_v27  ;;  %1955 = vadd.xlane.f32.xlu0 %v1954_v60  ;;  %v3598_v31 = vmul.f32 %v2617_v19, %v3362_v26  ;;  %v1169_v49 = vmul.f32 %v2619_v20, %v3359_v27 }
  0xb9   : > { %v1120_v23 = vadd.f32 %v1044_v24, %v876_v62  ;;  %v490_v44 = vsel %vm427_vm0, %v488_v17, %v4565_v9  ;;  %v3604_v34 = vmul.f32 %v2619_v20, %v3362_v26  ;;  %v4586_v56 = vrot.slane %v3389_v63, 1 }
  0xba   : > { %v564_v43 = vadd.f32 %v490_v44, %v287_v53  ;;  %v735_v55 = vsel %vm672_vm1, %v733_v61, %v734_v46  ;;  %v1045_v59 = vrot.slane %v925_v32, 1  ;;  %v1046_v28 = vrot.slane %v3598_v31, 1 }
  0xbb   : > { %v1364_v24 = vadd.f32 %v1288_v2, %v1120_v23  ;;  %v1600_v48 = vsel %vm427_vm0, %v4586_v56, %v1599_v50  ;;  %v1289_v62 = vrot.slane %v1169_v49, 2  ;;  %v1290_v17 = vrot.slane %v3604_v34, 2 }
  0xbc   : > { %v809_v9 = vadd.f32 %v735_v55, %v564_v43  ;;  %v1481_v2 = vmul.f32 %v2626_v25, %v3588_v11  ;;  %v3618_v53 = vmul.f32 %v2626_v25, %v3591_v40  ;;  %v1844_v63 = vsel %vm672_vm1, %v1841_v33, %v1843_v10 }
  0xbd   : > { %v1432_v60 = vadd.f32 %v1400_v12, %v1364_v24  ;;  %v1047_v50 = vsel %vm427_vm0, %v1045_v59, %v1046_v28  ;;  %v1725_v12 = vmul.f32 %v3398_v29, %v3588_v11  ;;  %v3630_v61 = vmul.f32 %v3398_v29, %v3591_v40  ;;  %v3641_v59 = vld [vmem:[%s2598_s5 + $0xa0] sm:$0x3] }
  0xbe   : > { %v877_v32 = vadd.f32 %v845_v4, %v809_v9  ;;  %v1601_v44 = vrot.slane %v1481_v2, 1  ;;  %v4566_v49 = vrot.slane %v3618_v53, 1  ;;  %v1291_v3 = vsel %vm672_vm1, %v1289_v62, %v1290_v17 }
  0xbf   : > { %v1676_v23 = vadd.f32 %v1600_v48, %v1432_v60  ;;  %v1401_v33 = vmul.f32 %v2621_v21, %v3588_v11  ;;  %v1845_v10 = vrot.slane %v1725_v12, 2  ;;  %v345_v24 = vmul.f32 %v2608_v15, %v3186_v7 }
  0xc0   : > { %v1121_v55 = vadd.f32 %v1047_v50, %v877_v32  ;;  %v272_v9 = vmul.f32 %v2606_v14, %v3023_v57  ;;  %v590_v4 = vmul.f32 %v2610_v16, %v3186_v7  ;;  %v1603_v56 = vsel %vm427_vm0, %v1601_v44, %v4566_v49 }
  0xc1   : > { %v1920_v43 = vadd.f32 %v1844_v63, %v1676_v23  ;;  %v1846_v48 = vrot.slane %v3630_v61, 2  ;;  %v451_v62 = vrot.slane %v345_v24, 1  ;;  %v903_v60 = vmul.f32 %v2617_v19, %v3415_v35 }
  0xc2   : > { %v1365_v63 = vadd.f32 %v1291_v3, %v1121_v55  ;;  %v696_v50 = vrot.slane %v590_v4, 2  ;;  %v1147_v57 = vmul.f32 %v2619_v20, %v3415_v35  ;;  %v4587_v7 = vrot.slane %v3459_v5, 1 }
  0xc3   : > { %v1999_v2 = vsel %vm1929_vm2, %v1920_v43, 0.0  ;;  %v830_v23 = vmul.f32 %v2615_v18, %v3249_v45  ;;  %v1008_v32 = vrot.slane %v903_v60, 1  ;;  %v1459_v44 = vmul.f32 %v2626_v25, %v3641_v59 }
  0xc4   : > { %2000 = vadd.xlane.f32.xlu1 %v1999_v2  ;;  %v452_v12 = vsel %vm427_vm0, %v4587_v7, %v451_v62  ;;  %v1433_v24 = vadd.f32 %v1401_v33, %v1365_v63  ;;  %v697_v3 = vsel %vm672_vm1, %v694_v38, %v696_v50  ;;  %v1252_v43 = vrot.slane %v1147_v57, 2 }
  0xc5   : > { %v549_v49 = vadd.f32 %v452_v12, %v272_v9  ;;  %v1847_v5 = vsel %vm672_vm1, %v1845_v10, %v1846_v48  ;;  %v1009_v55 = vsel %vm427_vm0, %v1006_v36, %v1008_v32  ;;  %v1386_v4 = vmul.f32 %v2621_v21, %v3478_v30 }
  0xc6   : > { %v1703_v33 = vmul.f32 %v3398_v29, %v3641_v59  ;;  %v1677_v9 = vadd.f32 %v1603_v56, %v1433_v24  ;;  %v1564_v0 = vrot.slane %v1459_v44, 1  ;;  %v346_v38 = vmul.f32 %v2608_v15, %v3246_v58  ;;  %v3704_v44 = vld [vmem:[%s2598_s5 + $0xb0] sm:$0xff] }
  0xc7   : > { %v794_v62 = vadd.f32 %v697_v3, %v549_v49  ;;  %v1253_v10 = vsel %vm672_vm1, %v1250_v6, %v1252_v43  ;;  %v273_v22 = vmul.f32 %v2606_v14, %v3246_v58  ;;  %v3685_v36 = vmul.f32 %v2608_v15, %v3249_v45 }
  0xc8   : > { %v591_v49 = vmul.f32 %v2610_v16, %v3246_v58  ;;  %v1921_v56 = vadd.f32 %v1847_v5, %v1677_v9  ;;  %v453_v2 = vrot.slane %v346_v38, 1  ;;  %v3691_v8 = vmul.f32 %v2610_v16, %v3249_v45 }
  0xc9   : > { %v862_v60 = vadd.f32 %v830_v23, %v794_v62  ;;  %v1808_v6 = vrot.slane %v1703_v33, 2  ;;  %v4567_v63 = vrot.slane %v3685_v36, 1  ;;  %v831_v57 = vmul.f32 %v2615_v18, %v3475_v51  ;;  %v3701_v23 = vld [vmem:[%s2598_s5 + $0xa8] sm:$0xff] }
  0xca   : > { %v698_v50 = vrot.slane %v591_v49, 2  ;;  %v2002_v7 = vsel %vm1929_vm2, %v1921_v56, 0.0  ;;  %v699_v32 = vrot.slane %v3691_v8, 2  ;;  %v904_v58 = vmul.f32 %v2617_v19, %v3475_v51 }
  0xcb   : > { %v1106_v12 = vadd.f32 %v1009_v55, %v862_v60  ;;  %2003 = vadd.xlane.f32.xlu0 %v2002_v7  ;;  %v455_v24 = vsel %vm427_vm0, %v453_v2, %v4567_v63  ;;  %v3711_v3 = vmul.f32 %v2617_v19, %v3478_v30  ;;  %v1148_v43 = vmul.f32 %v2619_v20, %v3475_v51 }
  0xcc   : > { %v3717_v5 = vmul.f32 %v2619_v20, %v3478_v30  ;;  %v550_v33 = vadd.f32 %v455_v24, %v273_v22  ;;  %v700_v9 = vsel %vm672_vm1, %v698_v50, %v699_v32  ;;  %v1010_v62 = vrot.slane %v904_v58, 1 }
  0xcd   : > { %v1350_v55 = vadd.f32 %v1253_v10, %v1106_v12  ;;  %v4588_v38 = vrot.slane %v3505_v54, 1  ;;  %v1011_v56 = vrot.slane %v3711_v3, 1  ;;  %v1254_v60 = vrot.slane %v1148_v43, 2 }
  0xce   : > { %v1255_v2 = vrot.slane %v3717_v5, 2  ;;  %v795_v63 = vadd.f32 %v700_v9, %v550_v33  ;;  %v1460_v10 = vmul.f32 %v2626_v25, %v3701_v23  ;;  %v3731_v22 = vmul.f32 %v2626_v25, %v3704_v44 }
  0xcf   : > { %v1565_v49 = vsel %vm427_vm0, %v4588_v38, %v1564_v0  ;;  %v1418_v7 = vadd.f32 %v1386_v4, %v1350_v55  ;;  %v1809_v54 = vsel %vm672_vm1, %v1806_v42, %v1808_v6  ;;  %v1012_v0 = vsel %vm427_vm0, %v1010_v62, %v1011_v56  ;;  %v3754_v62 = vld [vmem:[%s2598_s5 + $0x160] sm:$0x3] }
  0xd0   : > { %v1704_v4 = vmul.f32 %v3398_v29, %v3701_v23  ;;  %v3743_v50 = vmul.f32 %v3398_v29, %v3704_v44  ;;  %v863_v58 = vadd.f32 %v831_v57, %v795_v63  ;;  %v1566_v24 = vrot.slane %v1460_v10, 1 }
  0xd1   : > { %v1662_v12 = vadd.f32 %v1565_v49, %v1418_v7  ;;  %v4568_v43 = vrot.slane %v3731_v22, 1  ;;  %v1256_v52 = vsel %vm672_vm1, %v1254_v60, %v1255_v2  ;;  %v1387_v42 = vmul.f32 %v2621_v21, %v3701_v23 }
  0xd2   : > { %v1810_v6 = vrot.slane %v1704_v4, 2  ;;  %v369_v55 = vmul.f32 %v2608_v15, %v3299_v41  ;;  %v1107_v9 = vadd.f32 %v1012_v0, %v863_v58  ;;  %v288_v63 = vmul.f32 %v2606_v14, %v3136_v13 }
  0xd3   : > { %v1906_v33 = vadd.f32 %v1809_v54, %v1662_v12  ;;  %v614_v57 = vmul.f32 %v2610_v16, %v3299_v41  ;;  %v1568_v38 = vsel %vm427_vm0, %v1566_v24, %v4568_v43  ;;  %v1811_v49 = vrot.slane %v3743_v50, 2 }
  0xd4   : > { %v491_v60 = vrot.slane %v369_v55, 1  ;;  %v927_v7 = vmul.f32 %v2617_v19, %v3528_v39  ;;  %v1351_v54 = vadd.f32 %v1256_v52, %v1107_v9  ;;  %v1171_v13 = vmul.f32 %v2619_v20, %v3528_v39 }
  0xd5   : > { %v1957_v10 = vsel %vm1929_vm2, %v1906_v33, 0.0  ;;  %v736_v0 = vrot.slane %v614_v57, 2  ;;  %v4589_v41 = vrot.slane %v3572_v37, 1  ;;  %v846_v12 = vmul.f32 %v2615_v18, %v3362_v26 }
  0xd6   : > { %1958 = vadd.xlane.f32.xlu1 %v1957_v10  ;;  %v1048_v58 = vrot.slane %v927_v7, 1  ;;  %v1483_v24 = vmul.f32 %v2626_v25, %v3754_v62  ;;  %v1419_v55 = vadd.f32 %v1387_v42, %v1351_v54  ;;  %v1292_v33 = vrot.slane %v1171_v13, 2 }
  0xd7   : > { %v492_v4 = vsel %vm427_vm0, %v4589_v41, %v491_v60  ;;  %v737_v52 = vsel %vm672_vm1, %v734_v46, %v736_v0  ;;  %v1812_v37 = vsel %vm672_vm1, %v1810_v6, %v1811_v49  ;;  %v1402_v57 = vmul.f32 %v2621_v21, %v3591_v40 }
  0xd8   : > { %v565_v43 = vadd.f32 %v492_v4, %v288_v63  ;;  %v1049_v9 = vsel %vm427_vm0, %v1046_v28, %v1048_v58  ;;  %v1727_v42 = vmul.f32 %v3398_v29, %v3754_v62  ;;  %v1663_v63 = vadd.f32 %v1568_v38, %v1419_v55 }
  0xd9   : > { %v1604_v47 = vrot.slane %v1483_v24, 1  ;;  %v370_v46 = vmul.f32 %v2608_v15, %v3359_v27  ;;  %v1293_v6 = vsel %vm672_vm1, %v1290_v17, %v1292_v33  ;;  %v289_v31 = vmul.f32 %v2606_v14, %v3359_v27  ;;  %v3817_v24 = vld [vmem:[%s2598_s5 + $0x170] sm:$0xff] }
  0xda   : > { %v810_v60 = vadd.f32 %v737_v52, %v565_v43  ;;  %v3798_v28 = vmul.f32 %v2608_v15, %v3362_v26  ;;  %v615_v43 = vmul.f32 %v2610_v16, %v3359_v27  ;;  %v1907_v38 = vadd.f32 %v1812_v37, %v1663_v63 }
  0xdb   : > { %v493_v10 = vrot.slane %v370_v46, 1  ;;  %v3804_v34 = vmul.f32 %v2610_v16, %v3362_v26  ;;  %v1848_v17 = vrot.slane %v1727_v42, 2  ;;  %v847_v13 = vmul.f32 %v2615_v18, %v3588_v11 }
  0xdc   : > { %v878_v7 = vadd.f32 %v846_v12, %v810_v60  ;;  %v4569_v54 = vrot.slane %v3798_v28, 1  ;;  %v738_v0 = vrot.slane %v615_v43, 2  ;;  %v1960_v41 = vsel %vm1929_vm2, %v1907_v38, 0.0  ;;  %v3814_v12 = vld [vmem:[%s2598_s5 + $0x168] sm:$0xff] }
  0xdd   : > { %v739_v58 = vrot.slane %v3804_v34, 2  ;;  %v928_v27 = vmul.f32 %v2617_v19, %v3588_v11  ;;  %1961 = vadd.xlane.f32.xlu0 %v1960_v41  ;;  %v3824_v52 = vmul.f32 %v2617_v19, %v3591_v40  ;;  %v1172_v33 = vmul.f32 %v2619_v20, %v3588_v11 }
  0xde   : > { %v1122_v4 = vadd.f32 %v1049_v9, %v878_v7  ;;  %v495_v55 = vsel %vm427_vm0, %v493_v10, %v4569_v54  ;;  %v3830_v37 = vmul.f32 %v2619_v20, %v3591_v40  ;;  %v4590_v46 = vrot.slane %v3618_v53, 1 }
  0xdf   : > { %v566_v42 = vadd.f32 %v495_v55, %v289_v31  ;;  %v740_v63 = vsel %vm672_vm1, %v738_v0, %v739_v58  ;;  %v1050_v60 = vrot.slane %v928_v27, 1  ;;  %v1051_v38 = vrot.slane %v3824_v52, 1 }
  0xe0   : > { %v1366_v9 = vadd.f32 %v1293_v6, %v1122_v4  ;;  %v1605_v43 = vsel %vm427_vm0, %v4590_v46, %v1604_v47  ;;  %v1294_v7 = vrot.slane %v1172_v33, 2  ;;  %v1295_v10 = vrot.slane %v3830_v37, 2 }
  0xe1   : > { %v811_v54 = vadd.f32 %v740_v63, %v566_v42  ;;  %v1484_v6 = vmul.f32 %v2626_v25, %v3814_v12  ;;  %v3844_v31 = vmul.f32 %v2626_v25, %v3817_v24  ;;  %v1849_v53 = vsel %vm672_vm1, %v1846_v48, %v1848_v17 }
  0xe2   : > { %v1434_v41 = vadd.f32 %v1402_v57, %v1366_v9  ;;  %v1052_v47 = vsel %vm427_vm0, %v1050_v60, %v1051_v38  ;;  %v1728_v57 = vmul.f32 %v3398_v29, %v3814_v12  ;;  %v3856_v0 = vmul.f32 %v3398_v29, %v3817_v24  ;;  %v3867_v60 = vld [vmem:[%s2598_s5 + $0xb8] sm:$0x3] }
  0xe3   : > { %v879_v27 = vadd.f32 %v847_v13, %v811_v54  ;;  %v1606_v55 = vrot.slane %v1484_v6, 1  ;;  %v4570_v33 = vrot.slane %v3844_v31, 1  ;;  %v1296_v61 = vsel %vm672_vm1, %v1294_v7, %v1295_v10 }
  0xe4   : > { %v1678_v4 = vadd.f32 %v1605_v43, %v1434_v41  ;;  %v1403_v48 = vmul.f32 %v2621_v21, %v3814_v12  ;;  %v1850_v17 = vrot.slane %v1728_v57, 2  ;;  %v348_v9 = vmul.f32 %v2608_v15, %v3415_v35 }
  0xe5   : > { %v1123_v63 = vadd.f32 %v1052_v47, %v879_v27  ;;  %v274_v54 = vmul.f32 %v2606_v14, %v3249_v45  ;;  %v593_v13 = vmul.f32 %v2610_v16, %v3415_v35  ;;  %v1608_v46 = vsel %vm427_vm0, %v1606_v55, %v4570_v33 }
  0xe6   : > { %v1922_v42 = vadd.f32 %v1849_v53, %v1678_v4  ;;  %v1851_v43 = vrot.slane %v3856_v0, 2  ;;  %v456_v7 = vrot.slane %v348_v9, 1  ;;  %v906_v41 = vmul.f32 %v2617_v19, %v3641_v59 }
  0xe7   : > { %v1367_v53 = vadd.f32 %v1296_v61, %v1123_v63  ;;  %v701_v47 = vrot.slane %v593_v13, 2  ;;  %v1150_v45 = vmul.f32 %v2619_v20, %v3641_v59  ;;  %v4591_v35 = vrot.slane %v3685_v36, 1 }
  0xe8   : > { %v2005_v6 = vsel %vm1929_vm2, %v1922_v42, 0.0  ;;  %v832_v4 = vmul.f32 %v2615_v18, %v3478_v30  ;;  %v1013_v27 = vrot.slane %v906_v41, 1  ;;  %v1462_v55 = vmul.f32 %v2626_v25, %v3867_v60 }
  0xe9   : > { %2006 = vadd.xlane.f32.xlu1 %v2005_v6  ;;  %v457_v57 = vsel %vm427_vm0, %v4591_v35, %v456_v7  ;;  %v1435_v9 = vadd.f32 %v1403_v48, %v1367_v53  ;;  %v702_v61 = vsel %vm672_vm1, %v699_v32, %v701_v47  ;;  %v1257_v42 = vrot.slane %v1150_v45, 2 }
  0xea   : > { %v551_v33 = vadd.f32 %v457_v57, %v274_v54  ;;  %v1852_v36 = vsel %vm672_vm1, %v1850_v17, %v1851_v43  ;;  %v1014_v63 = vsel %vm427_vm0, %v1011_v56, %v1013_v27  ;;  %v1388_v13 = vmul.f32 %v2621_v21, %v3704_v44 }
  0xeb   : > { %v1706_v48 = vmul.f32 %v3398_v29, %v3867_v60  ;;  %v1679_v54 = vadd.f32 %v1608_v46, %v1435_v9  ;;  %v1569_v8 = vrot.slane %v1462_v55, 1  ;;  %v349_v32 = vmul.f32 %v2608_v15, %v3475_v51 }
  0xec   : > { %v796_v7 = vadd.f32 %v702_v61, %v551_v33  ;;  %v1258_v17 = vsel %vm672_vm1, %v1255_v2, %v1257_v42  ;;  %v275_v3 = vmul.f32 %v2606_v14, %v3475_v51  ;;  %v3911_v56 = vmul.f32 %v2608_v15, %v3478_v30 }
  0xed   : > { %v594_v41 = vmul.f32 %v2610_v16, %v3475_v51  ;;  %v1923_v46 = vadd.f32 %v1852_v36, %v1679_v54  ;;  %v458_v6 = vrot.slane %v349_v32, 1  ;;  %v3917_v53 = vmul.f32 %v2610_v16, %v3478_v30 }
  0xee   : > { %v864_v33 = vadd.f32 %v832_v4, %v796_v7  ;;  %v1813_v5 = vrot.slane %v1706_v48, 2  ;;  %v459_v2 = vrot.slane %v3911_v56, 1  ;;  %v833_v45 = vmul.f32 %v2615_v18, %v3701_v23 }
  0xef   : > { %v703_v47 = vrot.slane %v594_v41, 2  ;;  %v2008_v35 = vsel %vm1929_vm2, %v1923_v46, 0.0  ;;  %v704_v27 = vrot.slane %v3917_v53, 2  ;;  %v907_v51 = vmul.f32 %v2617_v19, %v3701_v23 }
  0xf0   : > { %v1108_v57 = vadd.f32 %v1014_v63, %v864_v33  ;;  %2009 = vadd.xlane.f32.xlu0 %v2008_v35  ;;  %v460_v4 = vsel %vm427_vm0, %v458_v6, %v459_v2  ;;  %v3931_v55 = vmul.f32 %v2617_v19, %v3704_v44  ;;  %v1151_v9 = vmul.f32 %v2619_v20, %v3701_v23  ;;  %v3948_v35 = vld [vmem:[%s2598_s5 + $0xc0] sm:$0xff] }
  0xf1   : > { %v3937_v61 = vmul.f32 %v2619_v20, %v3704_v44  ;;  %v552_v36 = vadd.f32 %v460_v4, %v275_v3  ;;  %v705_v63 = vsel %vm672_vm1, %v703_v47, %v704_v27  ;;  %v1015_v48 = vrot.slane %v907_v51, 1  ;;  %v3953_v3 = vld [vmem:[%s2598_s5 + $0xc8] sm:$0xff] }
  0xf2   : > { %v1352_v42 = vadd.f32 %v1258_v17, %v1108_v57  ;;  %v4592_v54 = vrot.slane %v3731_v22, 1  ;;  %v1016_v32 = vrot.slane %v3931_v55, 1  ;;  %v1259_v41 = vrot.slane %v1151_v9, 2 }
  0xf3   : > { %v4572_v46 = vrot.slane %v3937_v61, 2  ;;  %v797_v6 = vadd.f32 %v705_v63, %v552_v36  ;;  %v1463_v17 = vmul.f32 %v3948_v35, %v2626_v25  ;;  %v3957_v22 = vmul.f32 %v3953_v3, %v2626_v25 }
  0xf4   : > { %v1570_v7 = vsel %vm427_vm0, %v4592_v54, %v1569_v8  ;;  %v1420_v33 = vadd.f32 %v1388_v13, %v1352_v42  ;;  %v1814_v8 = vsel %vm672_vm1, %v1811_v49, %v1813_v5  ;;  %v1017_v13 = vsel %vm427_vm0, %v1015_v48, %v1016_v32  ;;  %v3980_v54 = vld [vmem:[%s2598_s5 + $0x178] sm:$0x3] }
  0xf5   : > { %v1707_v47 = vmul.f32 %v3948_v35, %v3398_v29  ;;  %v3969_v57 = vmul.f32 %v3953_v3, %v3398_v29  ;;  %v865_v4 = vadd.f32 %v833_v45, %v797_v6  ;;  %v1571_v9 = vrot.slane %v1463_v17, 1 }
  0xf6   : > { %v1664_v51 = vadd.f32 %v1570_v7, %v1420_v33  ;;  %v4571_v42 = vrot.slane %v3957_v22, 1  ;;  %v1261_v50 = vsel %vm672_vm1, %v1259_v41, %v4572_v46  ;;  %v1389_v49 = vmul.f32 %v3948_v35, %v2621_v21 }
  0xf7   : > { %v1815_v5 = vrot.slane %v1707_v47, 2  ;;  %v372_v36 = vmul.f32 %v2608_v15, %v3528_v39  ;;  %v1109_v48 = vadd.f32 %v1017_v13, %v865_v4  ;;  %v290_v45 = vmul.f32 %v2606_v14, %v3362_v26 }
  0xf8   : > { %v1908_v63 = vadd.f32 %v1814_v8, %v1664_v51  ;;  %v617_v7 = vmul.f32 %v2610_v16, %v3528_v39  ;;  %v1573_v41 = vsel %vm427_vm0, %v1571_v9, %v4571_v42  ;;  %v1816_v33 = vrot.slane %v3969_v57, 2 }
  0xf9   : > { %v496_v6 = vrot.slane %v372_v36, 1  ;;  %v930_v17 = vmul.f32 %v2617_v19, %v3754_v62  ;;  %v1353_v13 = vadd.f32 %v1261_v50, %v1109_v48  ;;  %v1174_v26 = vmul.f32 %v2619_v20, %v3754_v62 }
  0xfa   : > { %v1963_v8 = vsel %vm1929_vm2, %v1908_v63, 0.0  ;;  %v741_v47 = vrot.slane %v617_v7, 2  ;;  %v4593_v39 = vrot.slane %v3798_v28, 1  ;;  %v848_v4 = vmul.f32 %v2615_v18, %v3591_v40 }
  0xfb   : > { %1964 = vadd.xlane.f32.xlu1 %v1963_v8  ;;  %v1053_v9 = vrot.slane %v930_v17, 1  ;;  %v1486_v36 = vmul.f32 %v2626_v25, %v3980_v54  ;;  %v1421_v42 = vadd.f32 %v1389_v49, %v1353_v13  ;;  %v1297_v63 = vrot.slane %v1174_v26, 2 }
  0xfc   : > { %v497_v51 = vsel %vm427_vm0, %v4593_v39, %v496_v6  ;;  %v742_v50 = vsel %vm672_vm1, %v739_v58, %v741_v47  ;;  %v1817_v28 = vsel %vm672_vm1, %v1815_v5, %v1816_v33  ;;  %v1404_v7 = vmul.f32 %v2621_v21, %v3817_v24 }
  0xfd   : > { %v567_v46 = vadd.f32 %v497_v51, %v290_v45  ;;  %v1054_v48 = vsel %vm427_vm0, %v1051_v38, %v1053_v9  ;;  %v1730_v49 = vmul.f32 %v3398_v29, %v3980_v54  ;;  %v1665_v45 = vadd.f32 %v1573_v41, %v1421_v42  ;;  %v4043_v9 = vld [vmem:[%s2598_s5 + $0x188] sm:$0xff] }
  0xfe   : > { %v1609_v34 = vrot.slane %v1486_v36, 1  ;;  %v373_v58 = vmul.f32 %v2608_v15, %v3588_v11  ;;  %v1298_v5 = vsel %vm672_vm1, %v1295_v10, %v1297_v63  ;;  %v291_v52 = vmul.f32 %v2606_v14, %v3588_v11 }
  0xff   : > { %v812_v6 = vadd.f32 %v742_v50, %v567_v46  ;;  %v4024_v38 = vmul.f32 %v2608_v15, %v3591_v40  ;;  %v618_v46 = vmul.f32 %v2610_v16, %v3588_v11  ;;  %v1909_v42 = vadd.f32 %v1817_v28, %v1665_v45 }
 0x100   : > { %v498_v17 = vrot.slane %v373_v58, 1  ;;  %v4030_v37 = vmul.f32 %v2610_v16, %v3591_v40  ;;  %v1853_v10 = vrot.slane %v1730_v49, 2  ;;  %v849_v47 = vmul.f32 %v2615_v18, %v3814_v12 }
 0x101   : > { %v880_v41 = vadd.f32 %v848_v4, %v812_v6  ;;  %v4573_v8 = vrot.slane %v4024_v38, 1  ;;  %v743_v13 = vrot.slane %v618_v46, 2  ;;  %v1966_v26 = vsel %vm1929_vm2, %v1909_v42, 0.0  ;;  %v4040_v4 = vld [vmem:[%s2598_s5 + $0x180] sm:$0xff] }
 0x102   : > { %v744_v51 = vrot.slane %v4030_v37, 2  ;;  %v931_v11 = vmul.f32 %v2617_v19, %v3814_v12  ;;  %1967 = vadd.xlane.f32.xlu0 %v1966_v26  ;;  %v4050_v50 = vmul.f32 %v2617_v19, %v3817_v24  ;;  %v1175_v63 = vmul.f32 %v2619_v20, %v3814_v12 }
 0x103   : > { %v1124_v39 = vadd.f32 %v1054_v48, %v880_v41  ;;  %v500_v36 = vsel %vm427_vm0, %v498_v17, %v4573_v8  ;;  %v4056_v28 = vmul.f32 %v2619_v20, %v3817_v24  ;;  %v4594_v58 = vrot.slane %v3844_v31, 1 }
 0x104   : > { %v568_v49 = vadd.f32 %v500_v36, %v291_v52  ;;  %v745_v45 = vsel %vm672_vm1, %v743_v13, %v744_v51  ;;  %v1055_v6 = vrot.slane %v931_v11, 1  ;;  %v1056_v42 = vrot.slane %v4050_v50, 1 }
 0x105   : > { %v1368_v48 = vadd.f32 %v1298_v5, %v1124_v39  ;;  %v1610_v46 = vsel %vm427_vm0, %v4594_v58, %v1609_v34  ;;  %v1299_v41 = vrot.slane %v1175_v63, 2  ;;  %v1300_v17 = vrot.slane %v4056_v28, 2 }
 0x106   : > { %v813_v8 = vadd.f32 %v745_v45, %v568_v49  ;;  %v1487_v5 = vmul.f32 %v2626_v25, %v4040_v4  ;;  %v4070_v52 = vmul.f32 %v2626_v25, %v4043_v9  ;;  %v1854_v31 = vsel %vm672_vm1, %v1851_v43, %v1853_v10 }
 0x107   : > { %v1436_v26 = vadd.f32 %v1404_v7, %v1368_v48  ;;  %v1057_v34 = vsel %vm427_vm0, %v1055_v6, %v1056_v42  ;;  %v1731_v13 = vmul.f32 %v3398_v29, %v4040_v4  ;;  %v4082_v7 = vmul.f32 %v3398_v29, %v4043_v9 }
 0x108   : > { %v881_v11 = vadd.f32 %v849_v47, %v813_v8  ;;  %v1611_v36 = vrot.slane %v1487_v5, 1  ;;  %v1612_v63 = vrot.slane %v4070_v52, 1  ;;  %v1301_v0 = vsel %vm672_vm1, %v1299_v41, %v1300_v17 }
 0x109   : > { %v1680_v39 = vadd.f32 %v1610_v46, %v1436_v26  ;;  %v1405_v43 = vmul.f32 %v2621_v21, %v4040_v4  ;;  %v1855_v10 = vrot.slane %v1731_v13, 2  ;;  %v351_v48 = vmul.f32 %v2608_v15, %v3641_v59 }
 0x10a   : > { %v1125_v45 = vadd.f32 %v1057_v34, %v881_v11  ;;  %v276_v8 = vmul.f32 %v2606_v14, %v3478_v30  ;;  %v596_v47 = vmul.f32 %v2610_v16, %v3641_v59  ;;  %v1613_v6 = vsel %vm427_vm0, %v1611_v36, %v1612_v63 }
 0x10b   : > { %v1924_v49 = vadd.f32 %v1854_v31, %v1680_v39  ;;  %v1856_v58 = vrot.slane %v4082_v7, 2  ;;  %v461_v46 = vrot.slane %v351_v48, 1  ;;  %v909_v41 = vmul.f32 %v2617_v19, %v3867_v60  ;;  %v4111_v39 = vld [vmem:[%s2598_s5 + $0xd0] sm:$0x3] }
 0x10c   : > { %v1369_v5 = vadd.f32 %v1301_v0, %v1125_v45  ;;  %v706_v31 = vrot.slane %v596_v47, 2  ;;  %v1153_v30 = vmul.f32 %v2619_v20, %v3867_v60  ;;  %v834_v34 = vmul.f32 %v2615_v18, %v3704_v44 }
 0x10d   : > { %v2011_v26 = vsel %vm1929_vm2, %v1924_v49, 0.0  ;;  %v462_v59 = vsel %vm427_vm0, %v459_v2, %v461_v46  ;;  %v1018_v13 = vrot.slane %v909_v41, 1  ;;  %v1465_v11 = vmul.f32 %v4111_v39, %v2626_v25 }
 0x10e   : > { %2012 = vadd.xlane.f32.xlu1 %v2011_v26  ;;  %v1437_v36 = vadd.f32 %v1405_v43, %v1369_v5  ;;  %v553_v0 = vadd.f32 %v462_v59, %v276_v8  ;;  %v707_v48 = vsel %vm672_vm1, %v704_v27, %v706_v31  ;;  %v1262_v49 = vrot.slane %v1153_v30, 2 }
 0x10f   : > { %v1857_v56 = vsel %vm672_vm1, %v1855_v10, %v1856_v58  ;;  %v1019_v2 = vsel %vm427_vm0, %v1016_v32, %v1018_v13  ;;  %v1390_v45 = vmul.f32 %v3953_v3, %v2621_v21  ;;  %v1709_v43 = vmul.f32 %v4111_v39, %v3398_v29 }
 0x110   : > { %v1681_v8 = vadd.f32 %v1613_v6, %v1437_v36  ;;  %v798_v47 = vadd.f32 %v707_v48, %v553_v0  ;;  %v1574_v53 = vrot.slane %v1465_v11, 1  ;;  %v352_v27 = vmul.f32 %v2608_v15, %v3701_v23 }
 0x111   : > { %v4595_v46 = vrot.slane %v3937_v61, 2  ;;  %v277_v55 = vmul.f32 %v2606_v14, %v3701_v23  ;;  %v4137_v32 = vmul.f32 %v2608_v15, %v3704_v44  ;;  %v597_v29 = vmul.f32 %v2610_v16, %v3701_v23 }
 0x112   : > { %v1925_v6 = vadd.f32 %v1857_v56, %v1681_v8  ;;  %v866_v41 = vadd.f32 %v834_v34, %v798_v47  ;;  %v463_v26 = vrot.slane %v352_v27, 1  ;;  %v4143_v5 = vmul.f32 %v2610_v16, %v3704_v44 }
 0x113   : > { %v1263_v10 = vsel %vm672_vm1, %v4595_v46, %v1262_v49  ;;  %v1818_v61 = vrot.slane %v1709_v43, 2  ;;  %v464_v31 = vrot.slane %v4137_v32, 1  ;;  %v708_v30 = vrot.slane %v597_v29, 2 }
 0x114   : > { %v835_v59 = vmul.f32 %v3948_v35, %v2615_v18  ;;  %v2014_v13 = vsel %vm1929_vm2, %v1925_v6, 0.0  ;;  %v1110_v11 = vadd.f32 %v1019_v2, %v866_v41  ;;  %v709_v36 = vrot.slane %v4143_v5, 2 }
 0x115   : > { %v910_v23 = vmul.f32 %v3948_v35, %v2617_v19  ;;  %2015 = vadd.xlane.f32.xlu0 %v2014_v13  ;;  %v465_v34 = vsel %vm427_vm0, %v463_v26, %v464_v31  ;;  %v4157_v0 = vmul.f32 %v3953_v3, %v2617_v19  ;;  %v1154_v48 = vmul.f32 %v3948_v35, %v2619_v20  ;;  %v2435_v26 = vld [vmem:[%s2598_s5 + $0xd8] sm:$0xff] }
 0x116   : > { %v4163_v49 = vmul.f32 %v3953_v3, %v2619_v20  ;;  %v1354_v56 = vadd.f32 %v1263_v10, %v1110_v11  ;;  %v554_v2 = vadd.f32 %v465_v34, %v277_v55  ;;  %v710_v43 = vsel %vm672_vm1, %v708_v30, %v709_v36  ;;  %v4176_v55 = vld [vmem:[%s2598_s5 + $0xe0] sm:$0xff] }
 0x117   : > { %v1020_v8 = vrot.slane %v910_v23, 1  ;;  %v4596_v47 = vrot.slane %v3957_v22, 1  ;;  %v1021_v46 = vrot.slane %v4157_v0, 1  ;;  %v1264_v29 = vrot.slane %v1154_v48, 2 }
 0x118   : > { %v1265_v35 = vrot.slane %v4163_v49, 2  ;;  %v1422_v6 = vadd.f32 %v1390_v45, %v1354_v56  ;;  %v799_v41 = vadd.f32 %v710_v43, %v554_v2  ;;  %v1466_v10 = vmul.f32 %v2435_v26, %v2626_v25  ;;  %v4189_v45 = vld [vmem:[%s2589_s29 + $0x8] ss:$0 sm:$0xff]  ;;  %s2445_s29 = scalar_lea.vmem %s2444_s28, 512 }
 0x119   : > { %v1575_v27 = vsel %vm427_vm0, %v4596_v47, %v1574_v53  ;;  %v4180_v30 = vmul.f32 %v4176_v55, %v2626_v25  ;;  %v1819_v22 = vsel %vm672_vm1, %v1816_v33, %v1818_v61  ;;  %v1022_v53 = vsel %vm427_vm0, %v1020_v8, %v1021_v46  ;;  %v4204_v47 = vld [vmem:[%s2598_s5 + $0x190] sm:$0x3]  ;;  %p2447_p1 = scmp.lt.s32.totalorder %s2445_s29, %s2439_s26 }
 0x11a   : > { %v1710_v13 = vmul.f32 %v4189_v45, %v2435_v26  ;;  %v4194_v11 = vmul.f32 %v4189_v45, %v4176_v55  ;;  %v1666_v23 = vadd.f32 %v1575_v27, %v1422_v6  ;;  %v867_v34 = vadd.f32 %v835_v59, %v799_v41 }
 0x11b   : > { %v1576_v48 = vrot.slane %v1466_v10, 1  ;;  %v4574_v57 = vrot.slane %v4180_v30, 1  ;;  %v1266_v33 = vsel %vm672_vm1, %v1264_v29, %v1265_v35  ;;  %v1391_v61 = vmul.f32 %v2435_v26, %v2621_v21  ;;  %p2448_p2 = por %p2447_p1, %p2446_p0 }
 0x11c   : > { %v1820_v56 = vrot.slane %v1710_v13, 2  ;;  %v375_v2 = vmul.f32 %v2608_v15, %v3754_v62  ;;  %v1910_v43 = vadd.f32 %v1819_v22, %v1666_v23  ;;  %v1111_v8 = vadd.f32 %v1022_v53, %v867_v34 }
 0x11d   : > { %v292_v59 = vmul.f32 %v2606_v14, %v3591_v40  ;;  %v620_v27 = vmul.f32 %v2610_v16, %v3754_v62  ;;  %v1578_v29 = vsel %vm427_vm0, %v1576_v48, %v4574_v57  ;;  %v1821_v6 = vrot.slane %v4194_v11, 2  ;;  %p2449_p3 = pnand %p2448_p2, %p2442_p13 }
 0x11e   : > { %v501_v41 = vrot.slane %v375_v2, 1  ;;  %v933_v26 = vmul.f32 %v2617_v19, %v3980_v54  ;;  %v1969_v10 = vsel %vm1929_vm2, %v1910_v43, 0.0  ;;  %v1355_v22 = vadd.f32 %v1266_v33, %v1111_v8 }
 0x11f   : > { %v746_v53 = vrot.slane %v620_v27, 2  ;;  %v1177_v40 = vmul.f32 %v2619_v20, %v3980_v54  ;;  %1970 = vadd.xlane.f32.xlu1 %v1969_v10  ;;  %v4597_v62 = vrot.slane %v4024_v38, 1  ;;  %v850_v23 = vmul.f32 %v2615_v18, %v3817_v24 }
 0x120   : > { %v1058_v34 = vrot.slane %v933_v26, 1  ;;  %v1489_v48 = vmul.f32 %v2626_v25, %v4204_v47  ;;  %v1423_v2 = vadd.f32 %v1391_v61, %v1355_v22  ;;  %v1822_v38 = vsel %vm672_vm1, %v1820_v56, %v1821_v6 }
 0x121   : > { %v502_v13 = vsel %vm427_vm0, %v4597_v62, %v501_v41  ;;  %v747_v33 = vsel %vm672_vm1, %v744_v51, %v746_v53  ;;  %v1302_v43 = vrot.slane %v1177_v40, 2  ;;  %v1406_v27 = vmul.f32 %v2621_v21, %v4043_v9 }
 0x122   : > { %v569_v57 = vadd.f32 %v502_v13, %v292_v59  ;;  %v1059_v8 = vsel %vm427_vm0, %v1056_v42, %v1058_v34  ;;  %v1733_v61 = vmul.f32 %v4189_v45, %v4204_v47  ;;  %v1667_v59 = vadd.f32 %v1578_v29, %v1423_v2 }
 0x123   : > { %v1614_v37 = vrot.slane %v1489_v48, 1  ;;  %v376_v51 = vmul.f32 %v2608_v15, %v3814_v12  ;;  %v1303_v56 = vsel %vm672_vm1, %v1300_v17, %v1302_v43  ;;  %v293_v50 = vmul.f32 %v2606_v14, %v3814_v12  ;;  %v4265_v48 = vld [vmem:[%s2598_s5 + $0x1a0] sm:$0xff] }
 0x124   : > { %v814_v41 = vadd.f32 %v747_v33, %v569_v57  ;;  %v4248_v42 = vmul.f32 %v2608_v15, %v3817_v24  ;;  %v621_v57 = vmul.f32 %v2610_v16, %v3814_v12  ;;  %v1911_v29 = vadd.f32 %v1822_v38, %v1667_v59 }
 0x125   : > { %v503_v10 = vrot.slane %v376_v51, 1  ;;  %v4254_v28 = vmul.f32 %v2610_v16, %v3817_v24  ;;  %v1858_v17 = vrot.slane %v1733_v61, 2  ;;  %v851_v40 = vmul.f32 %v2615_v18, %v4040_v4 }
 0x126   : > { %v882_v26 = vadd.f32 %v850_v23, %v814_v41  ;;  %v504_v22 = vrot.slane %v4248_v42, 1  ;;  %v748_v53 = vrot.slane %v621_v57, 2  ;;  %v1972_v62 = vsel %vm1929_vm2, %v1911_v29, 0.0  ;;  %v254_v23 = vld [vmem:[%s2598_s5 + $0x198] sm:$0xff] }
 0x127   : > { %v749_v34 = vrot.slane %v4254_v28, 2  ;;  %v934_v12 = vmul.f32 %v2617_v19, %v4040_v4  ;;  %1973 = vadd.xlane.f32.xlu0 %v1972_v62  ;;  %v4272_v33 = vmul.f32 %v2617_v19, %v4043_v9  ;;  %v1178_v43 = vmul.f32 %v2619_v20, %v4040_v4 }
 0x128   : > { %v1126_v13 = vadd.f32 %v1059_v8, %v882_v26  ;;  %v505_v2 = vsel %vm427_vm0, %v503_v10, %v504_v22  ;;  %v4278_v38 = vmul.f32 %v2619_v20, %v4043_v9  ;;  %v1615_v51 = vsel %vm427_vm0, %v1612_v63, %v1614_v37 }
 0x129   : > { %v570_v61 = vadd.f32 %v505_v2, %v293_v50  ;;  %v750_v59 = vsel %vm672_vm1, %v748_v53, %v749_v34  ;;  %v1060_v41 = vrot.slane %v934_v12, 1  ;;  %v1061_v57 = vrot.slane %v4272_v33, 1 }
 0x12a   : > { %v1370_v8 = vadd.f32 %v1303_v56, %v1126_v13  ;;  %v1304_v29 = vrot.slane %v1178_v43, 2  ;;  %v1305_v4 = vrot.slane %v4278_v38, 2  ;;  %v1490_v62 = vmul.f32 %v2626_v25, %v254_v23 }
 0x12b   : > { %v815_v10 = vadd.f32 %v750_v59, %v570_v61  ;;  %v4291_v56 = vmul.f32 %v2626_v25, %v4265_v48  ;;  %v1859_v50 = vsel %vm672_vm1, %v1856_v58, %v1858_v17  ;;  %v1062_v52 = vsel %vm427_vm0, %v1060_v41, %v1061_v57 }
 0x12c   : > { %v1438_v26 = vadd.f32 %v1406_v27, %v1370_v8  ;;  %v1734_v63 = vmul.f32 %v4189_v45, %v254_v23  ;;  %v4302_v27 = vmul.f32 %v4189_v45, %v4265_v48  ;;  %v1407_v13 = vmul.f32 %v2621_v21, %v254_v23 }
 0x12d   : > { %v883_v53 = vadd.f32 %v851_v40, %v815_v10  ;;  %v1306_v7 = vsel %vm672_vm1, %v1304_v29, %v1305_v4  ;;  %v1616_v12 = vrot.slane %v1490_v62, 1  ;;  %v1617_v58 = vrot.slane %v4291_v56, 1 }
 0x12e   : > { %v1682_v37 = vadd.f32 %v1615_v51, %v1438_v26  ;;  %v354_v17 = vmul.f32 %v2608_v15, %v3867_v60  ;;  %v278_v8 = vmul.f32 %v2606_v14, %v3704_v44  ;;  %v599_v40 = vmul.f32 %v2610_v16, %v3867_v60 }
 0x12f   : > { %v1127_v43 = vadd.f32 %v1062_v52, %v883_v53  ;;  %v1860_v61 = vrot.slane %v1734_v63, 2  ;;  %v1861_v23 = vrot.slane %v4302_v27, 2  ;;  %v912_v41 = vmul.f32 %v4111_v39, %v2617_v19 }
 0x130   : > { %v1926_v2 = vadd.f32 %v1859_v50, %v1682_v37  ;;  %v466_v59 = vrot.slane %v354_v17, 1  ;;  %v711_v26 = vrot.slane %v599_v40, 2  ;;  %v1156_v10 = vmul.f32 %v4111_v39, %v2619_v20 }
 0x131   : > { %v1371_v29 = vadd.f32 %v1306_v7, %v1127_v43  ;;  %v1618_v44 = vsel %vm427_vm0, %v1616_v12, %v1617_v58  ;;  %v1023_v62 = vrot.slane %v912_v41, 1  ;;  %v836_v37 = vmul.f32 %v3953_v3, %v2615_v18  ;;  %v2438_v7 = vld [vmem:[%s2598_s5 + $0xe8] sm:$0x3] }
 0x132   : > { %v2017_v51 = vsel %vm1929_vm2, %v1926_v2, 0.0  ;;  %v467_v60 = vsel %vm427_vm0, %v464_v31, %v466_v59  ;;  %v712_v63 = vsel %vm672_vm1, %v709_v36, %v711_v26  ;;  %v1862_v39 = vsel %vm672_vm1, %v1860_v61, %v1861_v23 }
 0x133   : > { %2018 = vadd.xlane.f32.xlu1 %v2017_v51  ;;  %v1439_v50 = vadd.f32 %v1407_v13, %v1371_v29  ;;  %v555_v52 = vadd.f32 %v467_v60, %v278_v8  ;;  %v1267_v53 = vrot.slane %v1156_v10, 2  ;;  %v1468_v32 = vmul.f32 %v2438_v7, %v2626_v25 }
 0x134   : > { %v1392_v13 = vmul.f32 %v4176_v55, %v2621_v21  ;;  %v378_v5 = vmul.f32 %v2608_v15, %v3980_v54  ;;  %v1024_v3 = vsel %vm427_vm0, %v1021_v46, %v1023_v62  ;;  %v1712_v36 = vmul.f32 %v2438_v7, %v4189_v45  ;;  %v256_v46 = vld [vmem:[%s2598_s5 + $0x1a8] sm:$0x3] }
 0x135   : > { %v1683_v31 = vadd.f32 %v1618_v44, %v1439_v50  ;;  %v800_v12 = vadd.f32 %v712_v63, %v555_v52  ;;  %v294_v17 = vmul.f32 %v2606_v14, %v3817_v24  ;;  %v623_v2 = vmul.f32 %v2610_v16, %v3980_v54 }
 0x136   : > { %v506_v40 = vrot.slane %v378_v5, 1  ;;  %v936_v55 = vmul.f32 %v2617_v19, %v4204_v47  ;;  %v1268_v15 = vsel %vm672_vm1, %v1265_v35, %v1267_v53  ;;  %v1579_v0 = vrot.slane %v1468_v32, 1 }
 0x137   : > { %v1927_v43 = vadd.f32 %v1862_v39, %v1683_v31  ;;  %v868_v8 = vadd.f32 %v836_v37, %v800_v12  ;;  %v751_v61 = vrot.slane %v623_v2, 2  ;;  %v1180_v59 = vmul.f32 %v2619_v20, %v4204_v47  ;;  %v1938_v37 = vpop.xlane.xlu1 %1937 }
 0x138   : > { %v507_v16 = vsel %vm427_vm0, %v504_v22, %v506_v40  ;;  %v1063_v54 = vrot.slane %v936_v55, 1  ;;  %v1823_v19 = vrot.slane %v1712_v36, 2  ;;  %v852_v35 = vmul.f32 %v2615_v18, %v4043_v9 }
 0x139   : > { %v2020_v14 = vsel %vm1929_vm2, %v1927_v43, 0.0  ;;  %v1112_v24 = vadd.f32 %v1024_v3, %v868_v8  ;;  %v571_v41 = vadd.f32 %v507_v16, %v294_v17  ;;  %v752_v49 = vsel %vm672_vm1, %v749_v34, %v751_v61 }
 0x13a   : > { %2021 = vadd.xlane.f32.xlu0 %v2020_v14  ;;  %v1307_v20 = vrot.slane %v1180_v59, 2  ;;  %v1492_v47 = vmul.f32 %v2626_v25, %v256_v46  ;;  %v4598_v29 = vrot.slane %v4180_v30, 1  ;;  %v2501_v26 = vmov 0  }
 0x13b   : > { %v1356_v51 = vadd.f32 %v1268_v15, %v1112_v24  ;;  %v816_v22 = vadd.f32 %v752_v49, %v571_v41  ;;  %2430 = vset.pattern.permute.xlu0 %v2501_v26  ;;  %v1064_v28 = vsel %vm427_vm0, %v1061_v57, %v1063_v54  ;;  %v1736_v34 = vmul.f32 %v4189_v45, %v256_v46  ;;  %v1941_v53 = vpop.xlane.xlu1 %1940 }
 0x13c   : > { %v1580_v42 = vsel %vm427_vm0, %v4598_v29, %v1579_v0  ;;  %v1824_v18 = vsel %vm672_vm1, %v1821_v6, %v1823_v19  ;;  %v1308_v30 = vsel %vm672_vm1, %v1305_v4, %v1307_v20  ;;  %v1619_v44 = vrot.slane %v1492_v47, 1 }
 0x13d   : > { %v1424_v10 = vadd.f32 %v1392_v13, %v1356_v51  ;;  %v884_v9 = vadd.f32 %v852_v35, %v816_v22  ;;  %v1408_v33 = vmul.f32 %v2621_v21, %v4265_v48  ;;  %v1863_v57 = vrot.slane %v1736_v34, 2  ;;  %v2379_v21 = vld [vmem:[%s202_s8] ss:$0 sm:$0xff]  ;;  %v1932_v48 = vpop.xlane.xlu0 %1931 }
 0x13e   : > { %v1620_v11 = vsel %vm427_vm0, %v1617_v58, %v1619_v44  ;;  %v4599_v24 = vlaneseq }
 0x13f   : > { %v1668_v25 = vadd.f32 %v1580_v42, %v1424_v10  ;;  %v1128_v60 = vadd.f32 %v1064_v28, %v884_v9  ;;  %v1864_v38 = vsel %vm672_vm1, %v1861_v23, %v1863_v57  ;;  %v1983_v7 = vpop.xlane.xlu1 %1982 }
 0x140   : > { %v2101_v16 = vand.u32 127, %v4599_v24 }
 0x141   : > { %v1912_v62 = vadd.f32 %v1824_v18, %v1668_v25  ;;  %v1372_v50 = vadd.f32 %v1308_v30, %v1128_v60  ;;  %v1935_v56 = vpop.xlane.xlu0 %1934 }
 0x142   : > { %v2106_v41 = vadd.s32 4294967288, %v2101_v16  ;;  %v4396_v35 = vsub.s32 %v2101_v16, %v2578_v1 }
 0x143   : > { %v1975_v45 = vsel %vm1929_vm2, %v1912_v62, 0.0  ;;  %v1440_v6 = vadd.f32 %v1408_v33, %v1372_v50  ;;  %v1989_v32 = vpop.xlane.xlu1 %1988 }
 0x144   : > { %1976 = vadd.xlane.f32.xlu1 %v1975_v45  ;;  %v4399_v51 = vsub.s32 %v2106_v41, %v2578_v1 }
 0x145   : > { %v1684_v4 = vadd.f32 %v1620_v11, %v1440_v6  ;;  %v1980_v58 = vpop.xlane.xlu0 %1979 }
 0x147   : > { %v1928_v52 = vadd.f32 %v1864_v38, %v1684_v4  ;;  %v1947_v12 = vpop.xlane.xlu1 %1946 }
 0x149   : > { %v2023_v63 = vsel %vm1929_vm2, %v1928_v52, 0.0  ;;  %v1986_v39 = vpop.xlane.xlu0 %1985 }
 0x14a   : > { %2024 = vadd.xlane.f32.xlu1 %v2023_v63 }
 0x14b   : > { %v1995_v5 = vpop.xlane.xlu1 %1994 }
 0x14d   : > { %v1944_v27 = vpop.xlane.xlu0 %1943 }
 0x14f   : > { %v1953_v36 = vpop.xlane.xlu1 %1952 }
 0x150   : > { %2033 = vperm.xlu0 %2430, %v2379_v21  }
 0x151   : > { %v1992_v23 = vpop.xlane.xlu0 %1991 }
 0x153   : > { %v2001_v2 = vpop.xlane.xlu1 %2000 }
 0x155   : > { %v1950_v31 = vpop.xlane.xlu0 %1949 }
 0x159   : > { %v1998_v13 = vpop.xlane.xlu0 %1997 }
 0x15d   : > { %v1956_v3 = vpop.xlane.xlu0 %1955 }
 0x15f   : > { %v1959_v8 = vpop.xlane.xlu1 %1958 }
 0x161   : > { %v2004_v17 = vpop.xlane.xlu0 %2003 }
 0x166   : > { %v1962_v43 = vpop.xlane.xlu0 %1961 }
 0x172   : > { %v2007_v55 = vpop.xlane.xlu1 %2006 }
 0x179   : > { %v2010_v40 = vpop.xlane.xlu0 %2009 }
 0x184   : > { %v1965_v0 = vpop.xlane.xlu1 %1964 }
 0x18b   : > { %v1968_v15 = vpop.xlane.xlu0 %1967 }
 0x197   : > { %v2013_v61 = vpop.xlane.xlu1 %2012 }
 0x19e   : > { %v2016_v46 = vpop.xlane.xlu0 %2015 }
 0x1a8   : > { %v1971_v14 = vpop.xlane.xlu1 %1970 }
 0x1b0   : > { %v1974_v59 = vpop.xlane.xlu0 %1973 }
 0x1bc   : > { %v2019_v19 = vpop.xlane.xlu1 %2018 }
 0x1c3   : > { %v2022_v54 = vpop.xlane.xlu0 %2021 }
 0x1cb   : > { %v2034_v49 = vpop.permute.xlu0 %2033 }
 0x1cc   : > { %v2036_v47 = vadd.f32 %v2034_v49, %v1932_v48  ;;  %v2037_v29 = vadd.f32 %v2034_v49, %v1935_v56  ;;  %v2038_v42 = vadd.f32 %v2034_v49, %v1938_v37  ;;  %v2039_v22 = vadd.f32 %v2034_v49, %v1941_v53 }
 0x1cd   : > { %v1977_v20 = vpop.xlane.xlu1 %1976  ;;  %v2040_v26 = vadd.f32 %v2034_v49, %v1944_v27  ;;  %v2041_v10 = vadd.f32 %v2034_v49, %v1947_v12  ;;  %v2042_v28 = vadd.f32 %v2034_v49, %v1950_v31  ;;  %v2043_v34 = vadd.f32 %v2034_v49, %v1953_v36 }
 0x1ce   : > { %v4401_v18 = vadd.f32 %v2034_v49, %v1956_v3  ;;  %v4403_v9 = vadd.f32 %v2034_v49, %v1959_v8  ;;  %v4405_v25 = vadd.f32 %v2034_v49, %v1962_v43  ;;  %v4407_v30 = vadd.f32 %v2034_v49, %v1965_v0 }
 0x1cf   : > { %v4409_v1 = vadd.f32 %v2034_v49, %v1968_v15  ;;  %v4411_v44 = vadd.f32 %v2034_v49, %v1971_v14  ;;  %v4413_v60 = vadd.f32 %v2034_v49, %v1974_v59  ;;  %v4415_v33 = vadd.f32 %v2034_v49, %v1977_v20 }
 0x1d0   : > { %v2052_v62 = vadd.f32 %v2034_v49, %v1980_v58  ;;  %v2053_v57 = vadd.f32 %v2034_v49, %v1983_v7  ;;  %v2054_v50 = vadd.f32 %v2034_v49, %v1986_v39  ;;  %v2055_v45 = vadd.f32 %v2034_v49, %v1989_v32 }
 0x1d1   : > { %v2056_v11 = vadd.f32 %v2034_v49, %v1992_v23  ;;  %v2057_v6 = vadd.f32 %v2034_v49, %v1995_v5  ;;  %v2058_v38 = vadd.f32 %v2034_v49, %v1998_v13  ;;  %v2059_v4 = vadd.f32 %v2034_v49, %v2001_v2 }
 0x1d2   : > { %v2105_v63 = vrot.slane %v2036_v47, %v4396_v35  ;;  %v2110_v21 = vrot.slane %v2037_v29, %v4399_v51  ;;  %v2116_v48 = vrot.slane %v2038_v42, %v4396_v35  ;;  %v2120_v56 = vrot.slane %v2039_v22, %v4399_v51 }
 0x1d3   : > { %v2025_v52 = vpop.xlane.xlu1 %2024  ;;  %v2125_v58 = vrot.slane %v2040_v26, %v4396_v35  ;;  %v2129_v37 = vrot.slane %v2041_v10, %v4399_v51  ;;  %v2134_v39 = vrot.slane %v2042_v28, %v4396_v35  ;;  %v2138_v53 = vrot.slane %v2043_v34, %v4399_v51 }
 0x1d4   : > { %v2060_v27 = vadd.f32 %v2034_v49, %v2004_v17  ;;  %v2061_v7 = vadd.f32 %v2034_v49, %v2007_v55  ;;  %v2062_v23 = vadd.f32 %v2034_v49, %v2010_v40  ;;  %v2063_v32 = vadd.f32 %v2034_v49, %v2013_v61 }
 0x1d5   : > { %v2064_v31 = vadd.f32 %v2034_v49, %v2016_v46  ;;  %v2065_v12 = vadd.f32 %v2034_v49, %v2019_v19  ;;  %v4426_v13 = vadd.f32 %v2034_v49, %v2022_v54  ;;  %v2067_v5 = vadd.f32 %v2034_v49, %v2025_v52 }
 0x1d6   : > { %v2112_v3 = vsel %vm2111_vm3, %v2110_v21, %v2105_v63  ;;  %v2121_v36 = vsel %vm2111_vm3, %v2120_v56, %v2116_v48  ;;  %v2143_v2 = vrot.slane %v4401_v18, %v4396_v35  ;;  %v2147_v17 = vrot.slane %v4403_v9, %v4399_v51 }
 0x1d7   : > { %v2130_v43 = vsel %vm2111_vm3, %v2129_v37, %v2125_v58  ;;  %v2139_v8 = vsel %vm2111_vm3, %v2138_v53, %v2134_v39  ;;  %v2179_v40 = vrot.slane %v2052_v62, %v4396_v35  ;;  %v2183_v55 = vrot.slane %v2053_v57, %v4399_v51 }
 0x1d8   : > { %v2152_v15 = vrot.slane %v4405_v25, %v4396_v35  ;;  %v2188_v0 = vrot.slane %v2054_v50, %v4396_v35  ;;  %v2192_v46 = vrot.slane %v2055_v45, %v4399_v51  ;;  %v2197_v61 = vrot.slane %v2056_v11, %v4396_v35 }
 0x1d9   : > { %v2156_v59 = vrot.slane %v4407_v30, %v4399_v51  ;;  %v2161_v14 = vrot.slane %v4409_v1, %v4396_v35  ;;  %v2201_v24 = vrot.slane %v2057_v6, %v4399_v51  ;;  %v2206_v16 = vrot.slane %v2058_v38, %v4396_v35 }
 0x1da   : > { %v2165_v54 = vrot.slane %v4411_v44, %v4399_v51  ;;  %v2184_v19 = vsel %vm2111_vm3, %v2183_v55, %v2179_v40  ;;  %v2193_v41 = vsel %vm2111_vm3, %v2192_v46, %v2188_v0  ;;  %v2210_v49 = vrot.slane %v2059_v4, %v4399_v51 }
 0x1db   : > { %v2170_v20 = vrot.slane %v4413_v60, %v4396_v35  ;;  %v2202_v47 = vsel %vm2111_vm3, %v2201_v24, %v2197_v61  ;;  %v2215_v29 = vrot.slane %v2060_v27, %v4396_v35  ;;  %v2219_v42 = vrot.slane %v2061_v7, %v4399_v51 }
 0x1dc   : > { %v2174_v22 = vrot.slane %v4415_v33, %v4399_v51  ;;  %v2224_v26 = vrot.slane %v2062_v23, %v4396_v35  ;;  %v2228_v10 = vrot.slane %v2063_v32, %v4399_v51  ;;  %v2233_v28 = vrot.slane %v2064_v31, %v4396_v35 }
 0x1dd   : > { %v2211_v34 = vsel %vm2111_vm3, %v2210_v49, %v2206_v16  ;;  %v2237_v18 = vrot.slane %v2065_v12, %v4399_v51  ;;  %v2249_v9 = vsel %vm2248_vm4, %v2121_v36, %v2112_v3  ;;  %v2262_v25 = vsel %vm2248_vm4, %v2193_v41, %v2184_v19 }
 0x1de   : > { %v2242_v30 = vrot.slane %v4426_v13, %v4396_v35  ;;  %v2246_v1 = vrot.slane %v2067_v5, %v4399_v51  ;;  %v2251_v44 = vsel %vm2250_vm5, %v2130_v43, %v2249_v9  ;;  %v2263_v60 = vsel %vm2250_vm5, %v2202_v47, %v2262_v25 }
 0x1df   : > { %v2148_v33 = vsel %vm2111_vm3, %v2147_v17, %v2143_v2  ;;  %v2220_v62 = vsel %vm2111_vm3, %v2219_v42, %v2215_v29  ;;  %v2253_v57 = vsel %vm2252_vm6, %v2139_v8, %v2251_v44  ;;  %v2264_v50 = vsel %vm2252_vm6, %v2211_v34, %v2263_v60 }
 0x1e0   : > { %v2157_v45 = vsel %vm2111_vm3, %v2156_v59, %v2152_v15  ;;  %v2229_v35 = vsel %vm2111_vm3, %v2228_v10, %v2224_v26  ;;  %v2255_v51 = vsel %vm2254_vm7, %v2148_v33, %v2253_v57  ;;  %v2265_v11 = vsel %vm2254_vm7, %v2220_v62, %v2264_v50 }
 0x1e1   : > { %v2166_v6 = vsel %vm2111_vm3, %v2165_v54, %v2161_v14  ;;  %v2238_v38 = vsel %vm2111_vm3, %v2237_v18, %v2233_v28  ;;  %v2257_v4 = vsel %vm2256_vm8, %v2157_v45, %v2255_v51  ;;  %v2266_v52 = vsel %vm2256_vm8, %v2229_v35, %v2265_v11 }
 0x1e2   : > { %v2175_v63 = vsel %vm2111_vm3, %v2174_v22, %v2170_v20  ;;  %v2247_v21 = vsel %vm2111_vm3, %v2246_v1, %v2242_v30  ;;  %v2259_v48 = vsel %vm2258_vm9, %v2166_v6, %v2257_v4  ;;  %v2267_v56 = vsel %vm2258_vm9, %v2238_v38, %v2266_v52 }
 0x1e3   : > { %v2261_v58 = vsel %vm2260_vm10, %v2175_v63, %v2259_v48  ;;  %v2268_v37 = vsel %vm2260_vm10, %v2247_v21, %v2267_v56 }
 0x1e4   : > { %2271 = vst.msk [vmem:[%s189_s17] sm:$0xff] %vm1929_vm2, %v2261_v58  ;;  %2272 = vst.msk [vmem:[%s189_s17 + $0x8] sm:$0xff] %vm1929_vm2, %v2268_v37 }
 0x1e5   : > { %2452 = shalt.err (!%p2449_p3)
}
 0x1e6   : > { %s2453_s30 = scalar_lea.hbm %s4494_s24, 256  ;;  %s2457_s6 = scalar_lea.hbm %s4551_s3, 512 }
 0x1e7   : > { %p2454_p4 = scmp.ne.s32.totalorder %s4494_s24, %s2453_s30  ;;  %p2458_p9 = scmp.lt.s32.totalorder %s4494_s24, %s4551_s3 }
 0x1e8   : > { %p2459_p10 = scmp.lt.s32.totalorder %s2457_s6, %s2453_s30 }
 0x1e9   : > { %p2455_p7 = pnand %p2454_p4, %p2563_p5 }
 0x1ea   : > { %p2460_p11 = por %p2459_p10, %p2458_p9 }
 0x1eb   : > { %p2456_p8 = pneg %p2455_p7 }
 0x1ed   : > { %p2461_p12 = pnand %p2460_p11, %p2456_p8 }
 0x1ef   : > { %2464 = shalt.err (!%p2461_p12)
}
 0x1f0   : > { %s2503_s9 = smov 128   ;;  %s2504_s10 = smov 8  }
 0x1f1   : > { %2388 = dma.vmem_to_hbm [thread:$0]  (%p2563_p5), %s4496_s19, 256, %s4494_s24, %s4508_s25, %s2503_s9, %s2503_s9, %s2504_s10  }
 0x1f2 PF: > { %p2394_p13 = scmp.ge.s32.totalorder %s2499_s15, 2  ;;  %s2302_s11 = sand.u32 1, %s2487_s12  }
 0x1f3   : > { %s2303_s17 = scalar_lea.sflag [#allocation3], %s2302_s11 }
 0x1f4   : > { %p2391_p0 = pnand %p2394_p13, %p2567_p6 }
 0x1f6   : > { %p2392_p1 = pneg %p2391_p0 }
 0x1f8   : > { %2482 = dma.done.wait (%p2392_p1), %s2303_s17, 256  }
 0x1f9   : > { %2484 = vsyncadd (%p2392_p1), %s2303_s17, 4294967040  ;;  %p13_p2 = scmp.ge.s32.totalorder %s2550_s18, 4   ;;  %s4600_s12 = smov %s2491_s13 }
 0x1fa   : > { %s4601_s13 = smov %s2495_s14  ;;  %s4602_s14 = smov %s2561_s21 }
 0x1fb   : > { %s4603_s15 = smov %s2550_s18  ;;  %15 = sbr.rel (!%p13_p2) target bundleno = 3 (0x3), region = 73 }
 0x200   :  { %2308 = vsyncpa [#allocation3], 1 }
 0x201   :  { %2310 = vsyncpa [#allocation3 + $0x1], 1 }

</bundles_post_ra>
